<compile_context>
chip_gen: v6e
topology: v6e:2x2x1
jax: 0.10.0
libtpu: 0.0.40
codegen_flags: <defaults>
</compile_context>

<pallas_src>
import jax
import jax.numpy as jnp
from jax.experimental import pallas as pl
from jax.experimental.pallas import tpu as pltpu


# ---------------------------------------------------------------------------
# Fused block kernel (built per static config)
# ---------------------------------------------------------------------------

def _make_block_kernel(kernel_sizes, dilation, Bb, T, SEG, PHA, R,
                       C_br, Cin, Cout, has_ds):
    NB = len(kernel_sizes)
    TRAIL = SEG - PHA - T            # trailing zero rows per segment (>= PH)

    def kernel(*refs):
        # refs: (x, w0[NB], sh0[NB], w1[NB], sh1[NB], [wd, bd], out, xpad, h0pad)
        x_ref = refs[0]
        w0 = refs[1:1 + NB]
        sh0 = refs[1 + NB:1 + 2 * NB]
        w1 = refs[1 + 2 * NB:1 + 3 * NB]
        sh1 = refs[1 + 3 * NB:1 + 4 * NB]
        pos = 1 + 4 * NB
        if has_ds:
            wd_ref = refs[pos]
            bd_ref = refs[pos + 1]
            pos += 2
        o_ref = refs[pos]
        xpad_ref = refs[pos + 1]     # VMEM (Bb*SEG, Cin)  bf16, stacked padded segments
        h0pad_ref = refs[pos + 2]    # VMEM (Bb*SEG, Cout) bf16, stacked padded segments

        # ---- zero ONLY the halo rows (data rows are fully overwritten below) ----
        for b in range(Bb):
            base = b * SEG
            if PHA > 0:
                xpad_ref[base:base + PHA, :] = jnp.zeros((PHA, Cin), jnp.bfloat16)
                h0pad_ref[base:base + PHA, :] = jnp.zeros((PHA, Cout), jnp.bfloat16)
            if TRAIL > 0:
                xpad_ref[base + PHA + T:base + SEG, :] = \
                    jnp.zeros((TRAIL, Cin), jnp.bfloat16)
                h0pad_ref[base + PHA + T:base + SEG, :] = \
                    jnp.zeros((TRAIL, Cout), jnp.bfloat16)

        # ---- stage the Bb input rows (bf16) into their stacked padded segments ----
        for b in range(Bb):
            xpad_ref[b * SEG + PHA:b * SEG + PHA + T, :] = \
                x_ref[b].astype(jnp.bfloat16)

        def conv_acc(src_ref, w_ref, ksz):
            """Centered dilated conv over the whole stacked buffer -> (R, C_br) f32.
            (== Conv1d(pad=(k-1)*d) + symmetric chomp, per the module.)"""
            ph = (ksz - 1) * dilation // 2
            acc = jnp.zeros((R, C_br), jnp.float32)
            for k in range(ksz):                       # static, unrolled taps
                s = PHA - ph + k * dilation
                acc = acc + jnp.dot(src_ref[s:s + R, :], w_ref[k],
                                    preferred_element_type=jnp.float32)
            return acc

        # ---- layer 0: each branch writes its own channel slice of the h0 scratch ----
        for i, ksz in enumerate(kernel_sizes):
            hb = jnp.maximum(conv_acc(xpad_ref, w0[i], ksz) + sh0[i][...], 0.0)
            hb = hb.astype(jnp.bfloat16)   # bf16 staging (see tolerance note in __main__)
            cs = i * C_br
            for b in range(Bb):
                h0pad_ref[b * SEG + PHA:b * SEG + PHA + T, cs:cs + C_br] = \
                    hb[b * SEG:b * SEG + T]

        # ---- layer 1 + lazy per-slice residual + final ReLU ----
        for i, ksz in enumerate(kernel_sizes):
            br = jnp.maximum(conv_acc(h0pad_ref, w1[i], ksz) + sh1[i][...], 0.0)
            cs = i * C_br
            if has_ds:
                # 1x1 downsample split by output-column block; rows aligned with `br`
                # (acc row r == x row r + PHA in the stacked buffer).
                res = jnp.dot(xpad_ref[PHA:PHA + R, :], wd_ref[:, cs:cs + C_br],
                              preferred_element_type=jnp.float32) \
                      + bd_ref[:, cs:cs + C_br]
                outv = jnp.maximum(br + res, 0.0)
                for b in range(Bb):
                    o_ref[b, :, cs:cs + C_br] = \
                        outv[b * SEG:b * SEG + T].astype(o_ref.dtype)
            else:
                for b in range(Bb):
                    res_b = x_ref[b, :, cs:cs + C_br].astype(jnp.float32)
                    o_ref[b, :, cs:cs + C_br] = jnp.maximum(
                        br[b * SEG:b * SEG + T] + res_b, 0.0).astype(o_ref.dtype)

    return kernel


# ---------------------------------------------------------------------------
# Wrapper: BN folding, bf16 weight prep, stacked-segment geometry, BlockSpecs
# ---------------------------------------------------------------------------

def _fold_bn(w, b, gamma, beta, mean, var, eps=1e-5):
    """Fold inference BatchNorm1d into conv weight/bias.
    Returns bf16 folded weight (K, Cin, Cout) and f32 shift (1, Cout)."""
    s = gamma / jnp.sqrt(var + eps)
    t = beta - mean * s
    w_f = (w * s[None, None, :]).astype(jnp.bfloat16)
    shift = (b * s + t).astype(jnp.float32).reshape(1, -1)
    return w_f, shift


def _round_up(x, m):
    return ((x + m - 1) // m) * m


def _pick_batch_block(B, cap=8):
    """Largest divisor of B that is <= cap and keeps the grid length >= 2."""
    best = 1
    for d in range(1, B + 1):
        if B % d == 0 and d <= cap and (B < 2 or B // d >= 2):
            best = d
    return best


def multibranch_temporal_block(x, params, *, kernel_sizes, dilation,
                               batch_block=None):
    """Fused MultibranchTemporalBlock forward.  x: (B, T, Cin) channels-last."""
    B, T, Cin = x.shape
    NB = len(kernel_sizes)
    C_br = params['w0'][0].shape[-1]
    Cout = C_br * NB

    # symm_chomp requires an even chomp size per branch.
    assert all(((k - 1) * dilation) % 2 == 0 for k in kernel_sizes), \
        "symmetric chomp needs (k-1)*dilation even"
    PH = max((k - 1) * dilation // 2 for k in kernel_sizes)
    has_ds = params['wd'] is not None
    if not has_ds:
        assert Cin == Cout, "identity residual requires Cin == Cout"

    Bb = _pick_batch_block(B) if batch_block is None else batch_block
    assert B % Bb == 0, "batch_block must divide the batch size"

    # Stacked-padded segment layout: [PHA zero halo][T data][>= PH zeros], with PHA and
    # SEG 16-row aligned so staged stores / extracted slices start on a bf16
    # sublane-pack boundary (unmasked vst / aligned MXU reads).
    PHA = _round_up(PH, 16)
    SEG = _round_up(T, 16) + 2 * PHA
    R = (Bb - 1) * SEG + T                 # matmul rows per grid step (~= Bb*T)

    w0f, sh0, w1f, sh1 = [], [], [], []
    for i in range(NB):
        wf, sh = _fold_bn(params['w0'][i], params['b0'][i], params['g0'][i],
                          params['be0'][i], params['m0'][i], params['v0'][i])
        w0f.append(wf); sh0.append(sh)
        wf, sh = _fold_bn(params['w1'][i], params['b1'][i], params['g1'][i],
                          params['be1'][i], params['m1'][i], params['v1'][i])
        w1f.append(wf); sh1.append(sh)

    inputs = [x] + w0f + sh0 + w1f + sh1
    if has_ds:
        inputs += [params['wd'].astype(jnp.bfloat16),                 # (Cin, Cout)
                   params['bd'].astype(jnp.float32).reshape(1, Cout)]

    kernel = _make_block_kernel(tuple(kernel_sizes), dilation, Bb, T, SEG, PHA,
                                R, C_br, Cin, Cout, has_ds)

    def build(weight_mode):
        def wspec(shape):
            if weight_mode is None:
                return pl.BlockSpec(shape, lambda g: (0,) * len(shape))
            return pl.BlockSpec(shape, lambda g: (0,) * len(shape),
                                pipeline_mode=weight_mode)

        in_specs = [pl.BlockSpec((Bb, T, Cin), lambda g: (g, 0, 0))]
        in_specs += [wspec((k, Cin, C_br)) for k in kernel_sizes]
        in_specs += [wspec((1, C_br)) for _ in kernel_sizes]
        in_specs += [wspec((k, Cout, C_br)) for k in kernel_sizes]
        in_specs += [wspec((1, C_br)) for _ in kernel_sizes]
        if has_ds:
            in_specs += [wspec((Cin, Cout)), wspec((1, Cout))]

        return pl.pallas_call(
            kernel,
            out_shape=jax.ShapeDtypeStruct((B, T, Cout), x.dtype),
            grid=(B // Bb,),
            in_specs=in_specs,
            out_specs=pl.BlockSpec((Bb, T, Cout), lambda g: (g, 0, 0)),
            scratch_shapes=[pltpu.VMEM((Bb * SEG, Cin), jnp.bfloat16),
                            pltpu.VMEM((Bb * SEG, Cout), jnp.bfloat16)],
            compiler_params=pltpu.CompilerParams(
                dimension_semantics=("parallel",),
                vmem_limit_bytes=64 * 1024 * 1024),
        )

    # Grid-invariant weights/shifts are requested single-buffered; fall back to the
    # default double-buffered pipeline if this jax build rejects pipeline_mode.
    if hasattr(pl, "Buffered"):
        try:
            return build(pl.Buffered(1))(*inputs)
        except Exception:
            pass
    return build(None)(*inputs)


# ---------------------------------------------------------------------------
# Pure-JAX reference (f32) for correctness validation of the fused kernel
# ---------------------------------------------------------------------------

def _cbcr_ref(x, w, b, gamma, beta, mean, var, dilation, eps=1e-5):
    B, T, _ = x.shape
    K = w.shape[0]
    ph = (K - 1) * dilation // 2
    xp = jnp.pad(x, ((0, 0), (ph, ph), (0, 0)))
    acc = jnp.zeros((B, T, w.shape[2]), jnp.float32)
    for k in range(K):
        acc = acc + jnp.einsum('btc,cd->btd',
                               xp[:, k * dilation:k * dilation + T, :], w[k])
    s = gamma / jnp.sqrt(var + eps)
    t = beta - mean * s
    return jnp.maximum((acc + b) * s + t, 0.0)


def _block_ref(x, p, kernel_sizes, dilation):
    NB = len(kernel_sizes)
    outs0 = [_cbcr_ref(x, p['w0'][i], p['b0'][i], p['g0'][i], p['be0'][i],
                       p['m0'][i], p['v0'][i], dilation) for i in range(NB)]
    out0 = jnp.concatenate(outs0, axis=-1)
    outs1 = [_cbcr_ref(out0, p['w1'][i], p['b1'][i], p['g1'][i], p['be1'][i],
                       p['m1'][i], p['v1'][i], dilation) for i in range(NB)]
    out1 = jnp.concatenate(outs1, axis=-1)
    if p['wd'] is not None:
        res = jnp.einsum('btc,cd->btd', x, p['wd']) + p['bd']
    else:
        res = x
    return jnp.maximum(out1 + res, 0.0)


# ---------------------------------------------------------------------------
# Deterministic synthetic params (shapes follow the nn.Module __init__)
# ---------------------------------------------------------------------------

def init_params(key, n_inputs, n_outputs, kernel_sizes):
    NB = len(kernel_sizes)
    assert n_outputs % NB == 0
    C_br = n_outputs // NB
    p = {k: [] for k in ('w0', 'b0', 'g0', 'be0', 'm0', 'v0',
                         'w1', 'b1', 'g1', 'be1', 'm1', 'v1')}
    for k in kernel_sizes:
        key, *ks = jax.random.split(key, 7)
        p['w0'].append(0.1 * jax.random.normal(ks[0], (k, n_inputs, C_br), jnp.float32))
        p['b0'].append(0.1 * jax.random.normal(ks[1], (C_br,), jnp.float32))
        p['g0'].append(1.0 + 0.1 * jax.random.normal(ks[2], (C_br,), jnp.float32))
        p['be0'].append(0.1 * jax.random.normal(ks[3], (C_br,), jnp.float32))
        p['m0'].append(0.1 * jax.random.normal(ks[4], (C_br,), jnp.float32))
        p['v0'].append(1.0 + 0.1 * jnp.abs(jax.random.normal(ks[5], (C_br,), jnp.float32)))
        key, *ks = jax.random.split(key, 7)
        p['w1'].append(0.1 * jax.random.normal(ks[0], (k, n_outputs, C_br), jnp.float32))
        p['b1'].append(0.1 * jax.random.normal(ks[1], (C_br,), jnp.float32))
        p['g1'].append(1.0 + 0.1 * jax.random.normal(ks[2], (C_br,), jnp.float32))
        p['be1'].append(0.1 * jax.random.normal(ks[3], (C_br,), jnp.float32))
        p['m1'].append(0.1 * jax.random.normal(ks[4], (C_br,), jnp.float32))
        p['v1'].append(1.0 + 0.1 * jnp.abs(jax.random.normal(ks[5], (C_br,), jnp.float32)))
    if n_inputs // NB != n_outputs:        # same condition as the nn.Module
        key, k1, k2 = jax.random.split(key, 3)
        p['wd'] = 0.1 * jax.random.normal(k1, (n_inputs, n_outputs), jnp.float32)
        p['bd'] = 0.1 * jax.random.normal(k2, (n_outputs,), jnp.float32)
    else:
        p['wd'], p['bd'] = None, None
    return p


if __name__ == "__main__":
    key = jax.random.PRNGKey(0)
    key, kx = jax.random.split(key)

    # Small demo shapes: batch=4 (-> Bb=2, grid=2), seq=16, n_inputs=8, n_outputs=32,
    # kernel_sizes=[3, 5] (2 branches of 16 channels), dilation=1.
    # NOTE: production tuning must use lane-dense sizes (C_br=256, Cout=768, T~30-160).
    B, T = 4, 16
    n_inputs, n_outputs = 8, 32
    kernel_sizes = [3, 5]
    dilation = 1

    x = jax.random.normal(kx, (B, T, n_inputs), jnp.float32)   # channels-last
    params = init_params(key, n_inputs, n_outputs, kernel_sizes)

    y = multibranch_temporal_block(x, params, kernel_sizes=kernel_sizes,
                                   dilation=dilation)
    jax.block_until_ready(y)

    assert y.shape == (B, T, n_outputs), y.shape
    assert jnp.all(jnp.isfinite(y))

    # Validate against the pure-f32 reference.  Tolerance is loose because the kernel
    # uses bf16 matmul inputs and stages the layer-0 activation in bf16.
    y_ref = _block_ref(x, params, kernel_sizes, dilation)
    max_err = float(jnp.max(jnp.abs(y - y_ref)))
    assert jnp.allclose(y, y_ref, atol=5e-2, rtol=5e-2), max_err

    print("KERNEL_OK")
</pallas_src>

<mosaic_0001>
module attributes {stable_mosaic.version = 11 : i64} {
  func.func @kernel(%arg0: i32, %arg1: memref<2x16x8xf32, #tpu.memory_space<vmem>>, %arg2: memref<3x8x16xbf16, #tpu.memory_space<vmem>>, %arg3: memref<5x8x16xbf16, #tpu.memory_space<vmem>>, %arg4: memref<1x16xf32, #tpu.memory_space<vmem>>, %arg5: memref<1x16xf32, #tpu.memory_space<vmem>>, %arg6: memref<3x32x16xbf16, #tpu.memory_space<vmem>>, %arg7: memref<5x32x16xbf16, #tpu.memory_space<vmem>>, %arg8: memref<1x16xf32, #tpu.memory_space<vmem>>, %arg9: memref<1x16xf32, #tpu.memory_space<vmem>>, %arg10: memref<8x32xbf16, #tpu.memory_space<vmem>>, %arg11: memref<1x32xf32, #tpu.memory_space<vmem>>, %arg12: memref<2x16x32xf32, #tpu.memory_space<vmem>>, %arg13: memref<96x8xbf16, #tpu.memory_space<vmem>>, %arg14: memref<96x32xbf16, #tpu.memory_space<vmem>>) attributes {dimension_semantics = [#tpu.dimension_semantics<parallel>], iteration_bounds = array<i64: 2>, scalar_prefetch = 0 : i64, scratch_operands = 2 : i64, tpu.core_type = #tpu.core_type<tc>, window_params = [{transform_indices = @transform_0, window_bounds = array<i64: 2, 16, 8>}, {pipeline_mode = #tpu.pipeline_mode<synchronous>, transform_indices = @transform_1, window_bounds = array<i64: 3, 8, 16>}, {pipeline_mode = #tpu.pipeline_mode<synchronous>, transform_indices = @transform_2, window_bounds = array<i64: 5, 8, 16>}, {pipeline_mode = #tpu.pipeline_mode<synchronous>, transform_indices = @transform_3, window_bounds = array<i64: 1, 16>}, {pipeline_mode = #tpu.pipeline_mode<synchronous>, transform_indices = @transform_4, window_bounds = array<i64: 1, 16>}, {pipeline_mode = #tpu.pipeline_mode<synchronous>, transform_indices = @transform_5, window_bounds = array<i64: 3, 32, 16>}, {pipeline_mode = #tpu.pipeline_mode<synchronous>, transform_indices = @transform_6, window_bounds = array<i64: 5, 32, 16>}, {pipeline_mode = #tpu.pipeline_mode<synchronous>, transform_indices = @transform_7, window_bounds = array<i64: 1, 16>}, {pipeline_mode = #tpu.pipeline_mode<synchronous>, transform_indices = @transform_8, window_bounds = array<i64: 1, 16>}, {pipeline_mode = #tpu.pipeline_mode<synchronous>, transform_indices = @transform_9, window_bounds = array<i64: 8, 32>}, {pipeline_mode = #tpu.pipeline_mode<synchronous>, transform_indices = @transform_10, window_bounds = array<i64: 1, 32>}, {transform_indices = @transform_11, window_bounds = array<i64: 2, 16, 32>}]} {
    %cst = arith.constant 0.000000e+00 : bf16
    %0 = vector.broadcast %cst : bf16 to vector<16x8xbf16>
    %c0 = arith.constant 0 : index
    %c0_0 = arith.constant 0 : index
    %1 = vector.load %arg13[%c0, %c0_0] : memref<96x8xbf16, #tpu.memory_space<vmem>>, vector<16x8xbf16>
    tpu.vector_store %arg13[%c0, %c0_0], %0 {strides = array<i32>} : memref<96x8xbf16, #tpu.memory_space<vmem>>, vector<16x8xbf16>,
    %cst_1 = arith.constant 0.000000e+00 : bf16
    %2 = vector.broadcast %cst_1 : bf16 to vector<16x32xbf16>
    %c0_2 = arith.constant 0 : index
    %c0_3 = arith.constant 0 : index
    %3 = vector.load %arg14[%c0_2, %c0_3] : memref<96x32xbf16, #tpu.memory_space<vmem>>, vector<16x32xbf16>
    tpu.vector_store %arg14[%c0_2, %c0_3], %2 {strides = array<i32>} : memref<96x32xbf16, #tpu.memory_space<vmem>>, vector<16x32xbf16>,
    %cst_4 = arith.constant 0.000000e+00 : bf16
    %4 = vector.broadcast %cst_4 : bf16 to vector<16x8xbf16>
    %c32 = arith.constant 32 : index
    %c0_5 = arith.constant 0 : index
    %5 = vector.load %arg13[%c32, %c0_5] : memref<96x8xbf16, #tpu.memory_space<vmem>>, vector<16x8xbf16>
    tpu.vector_store %arg13[%c32, %c0_5], %4 {strides = array<i32>} : memref<96x8xbf16, #tpu.memory_space<vmem>>, vector<16x8xbf16>,
    %cst_6 = arith.constant 0.000000e+00 : bf16
    %6 = vector.broadcast %cst_6 : bf16 to vector<16x32xbf16>
    %c32_7 = arith.constant 32 : index
    %c0_8 = arith.constant 0 : index
    %7 = vector.load %arg14[%c32_7, %c0_8] : memref<96x32xbf16, #tpu.memory_space<vmem>>, vector<16x32xbf16>
    tpu.vector_store %arg14[%c32_7, %c0_8], %6 {strides = array<i32>} : memref<96x32xbf16, #tpu.memory_space<vmem>>, vector<16x32xbf16>,
    %cst_9 = arith.constant 0.000000e+00 : bf16
    %8 = vector.broadcast %cst_9 : bf16 to vector<16x8xbf16>
    %c48 = arith.constant 48 : index
    %c0_10 = arith.constant 0 : index
    %9 = vector.load %arg13[%c48, %c0_10] : memref<96x8xbf16, #tpu.memory_space<vmem>>, vector<16x8xbf16>
    tpu.vector_store %arg13[%c48, %c0_10], %8 {strides = array<i32>} : memref<96x8xbf16, #tpu.memory_space<vmem>>, vector<16x8xbf16>,
    %cst_11 = arith.constant 0.000000e+00 : bf16
    %10 = vector.broadcast %cst_11 : bf16 to vector<16x32xbf16>
    %c48_12 = arith.constant 48 : index
    %c0_13 = arith.constant 0 : index
    %11 = vector.load %arg14[%c48_12, %c0_13] : memref<96x32xbf16, #tpu.memory_space<vmem>>, vector<16x32xbf16>
    tpu.vector_store %arg14[%c48_12, %c0_13], %10 {strides = array<i32>} : memref<96x32xbf16, #tpu.memory_space<vmem>>, vector<16x32xbf16>,
    %cst_14 = arith.constant 0.000000e+00 : bf16
    %12 = vector.broadcast %cst_14 : bf16 to vector<16x8xbf16>
    %c80 = arith.constant 80 : index
    %c0_15 = arith.constant 0 : index
    %13 = vector.load %arg13[%c80, %c0_15] : memref<96x8xbf16, #tpu.memory_space<vmem>>, vector<16x8xbf16>
    tpu.vector_store %arg13[%c80, %c0_15], %12 {strides = array<i32>} : memref<96x8xbf16, #tpu.memory_space<vmem>>, vector<16x8xbf16>,
    %cst_16 = arith.constant 0.000000e+00 : bf16
    %14 = vector.broadcast %cst_16 : bf16 to vector<16x32xbf16>
    %c80_17 = arith.constant 80 : index
    %c0_18 = arith.constant 0 : index
    %15 = vector.load %arg14[%c80_17, %c0_18] : memref<96x32xbf16, #tpu.memory_space<vmem>>, vector<16x32xbf16>
    tpu.vector_store %arg14[%c80_17, %c0_18], %14 {strides = array<i32>} : memref<96x32xbf16, #tpu.memory_space<vmem>>, vector<16x32xbf16>,
    %c0_19 = arith.constant 0 : index
    %c0_20 = arith.constant 0 : index
    %c0_21 = arith.constant 0 : index
    %16 = vector.load %arg1[%c0_19, %c0_20, %c0_21] : memref<2x16x8xf32, #tpu.memory_space<vmem>>, vector<1x16x8xf32>
    %17 = vector.shape_cast %16 : vector<1x16x8xf32> to vector<16x8xf32>
    %18 = arith.truncf %17 : vector<16x8xf32> to vector<16x8xbf16>
    %c16 = arith.constant 16 : index
    %c0_22 = arith.constant 0 : index
    %19 = vector.load %arg13[%c16, %c0_22] : memref<96x8xbf16, #tpu.memory_space<vmem>>, vector<16x8xbf16>
    tpu.vector_store %arg13[%c16, %c0_22], %18 {strides = array<i32>} : memref<96x8xbf16, #tpu.memory_space<vmem>>, vector<16x8xbf16>,
    %c1 = arith.constant 1 : index
    %c0_23 = arith.constant 0 : index
    %c0_24 = arith.constant 0 : index
    %20 = vector.load %arg1[%c1, %c0_23, %c0_24] : memref<2x16x8xf32, #tpu.memory_space<vmem>>, vector<1x16x8xf32>
    %21 = vector.shape_cast %20 : vector<1x16x8xf32> to vector<16x8xf32>
    %22 = arith.truncf %21 : vector<16x8xf32> to vector<16x8xbf16>
    %c64 = arith.constant 64 : index
    %c0_25 = arith.constant 0 : index
    %23 = vector.load %arg13[%c64, %c0_25] : memref<96x8xbf16, #tpu.memory_space<vmem>>, vector<16x8xbf16>
    tpu.vector_store %arg13[%c64, %c0_25], %22 {strides = array<i32>} : memref<96x8xbf16, #tpu.memory_space<vmem>>, vector<16x8xbf16>,
    %cst_26 = arith.constant 0.000000e+00 : f32
    %24 = vector.broadcast %cst_26 : f32 to vector<64x16xf32>
    %c15 = arith.constant 15 : index
    %c0_27 = arith.constant 0 : index
    %25 = vector.load %arg13[%c15, %c0_27] : memref<96x8xbf16, #tpu.memory_space<vmem>>, vector<64x8xbf16>
    %c0_28 = arith.constant 0 : index
    %c0_29 = arith.constant 0 : index
    %c0_30 = arith.constant 0 : index
    %26 = vector.load %arg2[%c0_28, %c0_29, %c0_30] : memref<3x8x16xbf16, #tpu.memory_space<vmem>>, vector<1x8x16xbf16>
    %27 = vector.shape_cast %26 : vector<1x8x16xbf16> to vector<8x16xbf16>
    %cst_31 = arith.constant dense<0.000000e+00> : vector<64x16xf32>
    %28 = tpu.matmul %25, %27, %cst_31 {dimension_numbers = #tpu.dot_dimension_numbers<[1], [0], [0], [1], [0, 0, 1, 1], [], []>} : vector<64x8xbf16>, vector<8x16xbf16>, vector<64x16xf32> -> vector<64x16xf32>
    %29 = arith.addf %24, %28 : vector<64x16xf32>
    %c16_32 = arith.constant 16 : index
    %c0_33 = arith.constant 0 : index
    %30 = vector.load %arg13[%c16_32, %c0_33] : memref<96x8xbf16, #tpu.memory_space<vmem>>, vector<64x8xbf16>
    %c1_34 = arith.constant 1 : index
    %c0_35 = arith.constant 0 : index
    %c0_36 = arith.constant 0 : index
    %31 = vector.load %arg2[%c1_34, %c0_35, %c0_36] : memref<3x8x16xbf16, #tpu.memory_space<vmem>>, vector<1x8x16xbf16>
    %32 = vector.shape_cast %31 : vector<1x8x16xbf16> to vector<8x16xbf16>
    %cst_37 = arith.constant dense<0.000000e+00> : vector<64x16xf32>
    %33 = tpu.matmul %30, %32, %cst_37 {dimension_numbers = #tpu.dot_dimension_numbers<[1], [0], [0], [1], [0, 0, 1, 1], [], []>} : vector<64x8xbf16>, vector<8x16xbf16>, vector<64x16xf32> -> vector<64x16xf32>
    %34 = arith.addf %29, %33 : vector<64x16xf32>
    %c17 = arith.constant 17 : index
    %c0_38 = arith.constant 0 : index
    %35 = vector.load %arg13[%c17, %c0_38] : memref<96x8xbf16, #tpu.memory_space<vmem>>, vector<64x8xbf16>
    %c2 = arith.constant 2 : index
    %c0_39 = arith.constant 0 : index
    %c0_40 = arith.constant 0 : index
    %36 = vector.load %arg2[%c2, %c0_39, %c0_40] : memref<3x8x16xbf16, #tpu.memory_space<vmem>>, vector<1x8x16xbf16>
    %37 = vector.shape_cast %36 : vector<1x8x16xbf16> to vector<8x16xbf16>
    %cst_41 = arith.constant dense<0.000000e+00> : vector<64x16xf32>
    %38 = tpu.matmul %35, %37, %cst_41 {dimension_numbers = #tpu.dot_dimension_numbers<[1], [0], [0], [1], [0, 0, 1, 1], [], []>} : vector<64x8xbf16>, vector<8x16xbf16>, vector<64x16xf32> -> vector<64x16xf32>
    %39 = arith.addf %34, %38 : vector<64x16xf32>
    %c0_42 = arith.constant 0 : index
    %c0_43 = arith.constant 0 : index
    %40 = vector.load %arg4[%c0_42, %c0_43] : memref<1x16xf32, #tpu.memory_space<vmem>>, vector<1x16xf32>
    %41 = vector.broadcast %40 : vector<1x16xf32> to vector<64x16xf32>
    %42 = arith.addf %39, %41 : vector<64x16xf32>
    %cst_44 = arith.constant 0.000000e+00 : f32
    %43 = vector.broadcast %cst_44 : f32 to vector<64x16xf32>
    %44 = arith.maximumf %42, %43 : vector<64x16xf32>
    %45 = arith.truncf %44 : vector<64x16xf32> to vector<64x16xbf16>
    %46 = vector.extract_strided_slice %45 {offsets = [0, 0], sizes = [16, 16], strides = [1, 1]} : vector<64x16xbf16> to vector<16x16xbf16>
    %c16_45 = arith.constant 16 : index
    %c0_46 = arith.constant 0 : index
    %47 = vector.load %arg14[%c16_45, %c0_46] : memref<96x32xbf16, #tpu.memory_space<vmem>>, vector<16x16xbf16>
    tpu.vector_store %arg14[%c16_45, %c0_46], %46 {strides = array<i32>} : memref<96x32xbf16, #tpu.memory_space<vmem>>, vector<16x16xbf16>,
    %48 = vector.extract_strided_slice %45 {offsets = [48, 0], sizes = [16, 16], strides = [1, 1]} : vector<64x16xbf16> to vector<16x16xbf16>
    %c64_47 = arith.constant 64 : index
    %c0_48 = arith.constant 0 : index
    %49 = vector.load %arg14[%c64_47, %c0_48] : memref<96x32xbf16, #tpu.memory_space<vmem>>, vector<16x16xbf16>
    tpu.vector_store %arg14[%c64_47, %c0_48], %48 {strides = array<i32>} : memref<96x32xbf16, #tpu.memory_space<vmem>>, vector<16x16xbf16>,
    %cst_49 = arith.constant 0.000000e+00 : f32
    %50 = vector.broadcast %cst_49 : f32 to vector<64x16xf32>
    %c14 = arith.constant 14 : index
    %c0_50 = arith.constant 0 : index
    %51 = vector.load %arg13[%c14, %c0_50] : memref<96x8xbf16, #tpu.memory_space<vmem>>, vector<64x8xbf16>
    %c0_51 = arith.constant 0 : index
    %c0_52 = arith.constant 0 : index
    %c0_53 = arith.constant 0 : index
    %52 = vector.load %arg3[%c0_51, %c0_52, %c0_53] : memref<5x8x16xbf16, #tpu.memory_space<vmem>>, vector<1x8x16xbf16>
    %53 = vector.shape_cast %52 : vector<1x8x16xbf16> to vector<8x16xbf16>
    %cst_54 = arith.constant dense<0.000000e+00> : vector<64x16xf32>
    %54 = tpu.matmul %51, %53, %cst_54 {dimension_numbers = #tpu.dot_dimension_numbers<[1], [0], [0], [1], [0, 0, 1, 1], [], []>} : vector<64x8xbf16>, vector<8x16xbf16>, vector<64x16xf32> -> vector<64x16xf32>
    %55 = arith.addf %50, %54 : vector<64x16xf32>
    %c15_55 = arith.constant 15 : index
    %c0_56 = arith.constant 0 : index
    %56 = vector.load %arg13[%c15_55, %c0_56] : memref<96x8xbf16, #tpu.memory_space<vmem>>, vector<64x8xbf16>
    %c1_57 = arith.constant 1 : index
    %c0_58 = arith.constant 0 : index
    %c0_59 = arith.constant 0 : index
    %57 = vector.load %arg3[%c1_57, %c0_58, %c0_59] : memref<5x8x16xbf16, #tpu.memory_space<vmem>>, vector<1x8x16xbf16>
    %58 = vector.shape_cast %57 : vector<1x8x16xbf16> to vector<8x16xbf16>
    %cst_60 = arith.constant dense<0.000000e+00> : vector<64x16xf32>
    %59 = tpu.matmul %56, %58, %cst_60 {dimension_numbers = #tpu.dot_dimension_numbers<[1], [0], [0], [1], [0, 0, 1, 1], [], []>} : vector<64x8xbf16>, vector<8x16xbf16>, vector<64x16xf32> -> vector<64x16xf32>
    %60 = arith.addf %55, %59 : vector<64x16xf32>
    %c16_61 = arith.constant 16 : index
    %c0_62 = arith.constant 0 : index
    %61 = vector.load %arg13[%c16_61, %c0_62] : memref<96x8xbf16, #tpu.memory_space<vmem>>, vector<64x8xbf16>
    %c2_63 = arith.constant 2 : index
    %c0_64 = arith.constant 0 : index
    %c0_65 = arith.constant 0 : index
    %62 = vector.load %arg3[%c2_63, %c0_64, %c0_65] : memref<5x8x16xbf16, #tpu.memory_space<vmem>>, vector<1x8x16xbf16>
    %63 = vector.shape_cast %62 : vector<1x8x16xbf16> to vector<8x16xbf16>
    %cst_66 = arith.constant dense<0.000000e+00> : vector<64x16xf32>
    %64 = tpu.matmul %61, %63, %cst_66 {dimension_numbers = #tpu.dot_dimension_numbers<[1], [0], [0], [1], [0, 0, 1, 1], [], []>} : vector<64x8xbf16>, vector<8x16xbf16>, vector<64x16xf32> -> vector<64x16xf32>
    %65 = arith.addf %60, %64 : vector<64x16xf32>
    %c17_67 = arith.constant 17 : index
    %c0_68 = arith.constant 0 : index
    %66 = vector.load %arg13[%c17_67, %c0_68] : memref<96x8xbf16, #tpu.memory_space<vmem>>, vector<64x8xbf16>
    %c3 = arith.constant 3 : index
    %c0_69 = arith.constant 0 : index
    %c0_70 = arith.constant 0 : index
    %67 = vector.load %arg3[%c3, %c0_69, %c0_70] : memref<5x8x16xbf16, #tpu.memory_space<vmem>>, vector<1x8x16xbf16>
    %68 = vector.shape_cast %67 : vector<1x8x16xbf16> to vector<8x16xbf16>
    %cst_71 = arith.constant dense<0.000000e+00> : vector<64x16xf32>
    %69 = tpu.matmul %66, %68, %cst_71 {dimension_numbers = #tpu.dot_dimension_numbers<[1], [0], [0], [1], [0, 0, 1, 1], [], []>} : vector<64x8xbf16>, vector<8x16xbf16>, vector<64x16xf32> -> vector<64x16xf32>
    %70 = arith.addf %65, %69 : vector<64x16xf32>
    %c18 = arith.constant 18 : index
    %c0_72 = arith.constant 0 : index
    %71 = vector.load %arg13[%c18, %c0_72] : memref<96x8xbf16, #tpu.memory_space<vmem>>, vector<64x8xbf16>
    %c4 = arith.constant 4 : index
    %c0_73 = arith.constant 0 : index
    %c0_74 = arith.constant 0 : index
    %72 = vector.load %arg3[%c4, %c0_73, %c0_74] : memref<5x8x16xbf16, #tpu.memory_space<vmem>>, vector<1x8x16xbf16>
    %73 = vector.shape_cast %72 : vector<1x8x16xbf16> to vector<8x16xbf16>
    %cst_75 = arith.constant dense<0.000000e+00> : vector<64x16xf32>
    %74 = tpu.matmul %71, %73, %cst_75 {dimension_numbers = #tpu.dot_dimension_numbers<[1], [0], [0], [1], [0, 0, 1, 1], [], []>} : vector<64x8xbf16>, vector<8x16xbf16>, vector<64x16xf32> -> vector<64x16xf32>
    %75 = arith.addf %70, %74 : vector<64x16xf32>
    %c0_76 = arith.constant 0 : index
    %c0_77 = arith.constant 0 : index
    %76 = vector.load %arg5[%c0_76, %c0_77] : memref<1x16xf32, #tpu.memory_space<vmem>>, vector<1x16xf32>
    %77 = vector.broadcast %76 : vector<1x16xf32> to vector<64x16xf32>
    %78 = arith.addf %75, %77 : vector<64x16xf32>
    %cst_78 = arith.constant 0.000000e+00 : f32
    %79 = vector.broadcast %cst_78 : f32 to vector<64x16xf32>
    %80 = arith.maximumf %78, %79 : vector<64x16xf32>
    %81 = arith.truncf %80 : vector<64x16xf32> to vector<64x16xbf16>
    %82 = vector.extract_strided_slice %81 {offsets = [0, 0], sizes = [16, 16], strides = [1, 1]} : vector<64x16xbf16> to vector<16x16xbf16>
    %c16_79 = arith.constant 16 : index
    %c16_80 = arith.constant 16 : index
    %83 = vector.load %arg14[%c16_79, %c16_80] : memref<96x32xbf16, #tpu.memory_space<vmem>>, vector<16x16xbf16>
    tpu.vector_store %arg14[%c16_79, %c16_80], %82 {strides = array<i32>} : memref<96x32xbf16, #tpu.memory_space<vmem>>, vector<16x16xbf16>,
    %84 = vector.extract_strided_slice %81 {offsets = [48, 0], sizes = [16, 16], strides = [1, 1]} : vector<64x16xbf16> to vector<16x16xbf16>
    %c64_81 = arith.constant 64 : index
    %c16_82 = arith.constant 16 : index
    %85 = vector.load %arg14[%c64_81, %c16_82] : memref<96x32xbf16, #tpu.memory_space<vmem>>, vector<16x16xbf16>
    tpu.vector_store %arg14[%c64_81, %c16_82], %84 {strides = array<i32>} : memref<96x32xbf16, #tpu.memory_space<vmem>>, vector<16x16xbf16>,
    %cst_83 = arith.constant 0.000000e+00 : f32
    %86 = vector.broadcast %cst_83 : f32 to vector<64x16xf32>
    %c15_84 = arith.constant 15 : index
    %c0_85 = arith.constant 0 : index
    %87 = vector.load %arg14[%c15_84, %c0_85] : memref<96x32xbf16, #tpu.memory_space<vmem>>, vector<64x32xbf16>
    %c0_86 = arith.constant 0 : index
    %c0_87 = arith.constant 0 : index
    %c0_88 = arith.constant 0 : index
    %88 = vector.load %arg6[%c0_86, %c0_87, %c0_88] : memref<3x32x16xbf16, #tpu.memory_space<vmem>>, vector<1x32x16xbf16>
    %89 = vector.shape_cast %88 : vector<1x32x16xbf16> to vector<32x16xbf16>
    %cst_89 = arith.constant dense<0.000000e+00> : vector<64x16xf32>
    %90 = tpu.matmul %87, %89, %cst_89 {dimension_numbers = #tpu.dot_dimension_numbers<[1], [0], [0], [1], [0, 0, 1, 1], [], []>} : vector<64x32xbf16>, vector<32x16xbf16>, vector<64x16xf32> -> vector<64x16xf32>
    %91 = arith.addf %86, %90 : vector<64x16xf32>
    %c16_90 = arith.constant 16 : index
    %c0_91 = arith.constant 0 : index
    %92 = vector.load %arg14[%c16_90, %c0_91] : memref<96x32xbf16, #tpu.memory_space<vmem>>, vector<64x32xbf16>
    %c1_92 = arith.constant 1 : index
    %c0_93 = arith.constant 0 : index
    %c0_94 = arith.constant 0 : index
    %93 = vector.load %arg6[%c1_92, %c0_93, %c0_94] : memref<3x32x16xbf16, #tpu.memory_space<vmem>>, vector<1x32x16xbf16>
    %94 = vector.shape_cast %93 : vector<1x32x16xbf16> to vector<32x16xbf16>
    %cst_95 = arith.constant dense<0.000000e+00> : vector<64x16xf32>
    %95 = tpu.matmul %92, %94, %cst_95 {dimension_numbers = #tpu.dot_dimension_numbers<[1], [0], [0], [1], [0, 0, 1, 1], [], []>} : vector<64x32xbf16>, vector<32x16xbf16>, vector<64x16xf32> -> vector<64x16xf32>
    %96 = arith.addf %91, %95 : vector<64x16xf32>
    %c17_96 = arith.constant 17 : index
    %c0_97 = arith.constant 0 : index
    %97 = vector.load %arg14[%c17_96, %c0_97] : memref<96x32xbf16, #tpu.memory_space<vmem>>, vector<64x32xbf16>
    %c2_98 = arith.constant 2 : index
    %c0_99 = arith.constant 0 : index
    %c0_100 = arith.constant 0 : index
    %98 = vector.load %arg6[%c2_98, %c0_99, %c0_100] : memref<3x32x16xbf16, #tpu.memory_space<vmem>>, vector<1x32x16xbf16>
    %99 = vector.shape_cast %98 : vector<1x32x16xbf16> to vector<32x16xbf16>
    %cst_101 = arith.constant dense<0.000000e+00> : vector<64x16xf32>
    %100 = tpu.matmul %97, %99, %cst_101 {dimension_numbers = #tpu.dot_dimension_numbers<[1], [0], [0], [1], [0, 0, 1, 1], [], []>} : vector<64x32xbf16>, vector<32x16xbf16>, vector<64x16xf32> -> vector<64x16xf32>
    %101 = arith.addf %96, %100 : vector<64x16xf32>
    %c0_102 = arith.constant 0 : index
    %c0_103 = arith.constant 0 : index
    %102 = vector.load %arg8[%c0_102, %c0_103] : memref<1x16xf32, #tpu.memory_space<vmem>>, vector<1x16xf32>
    %103 = vector.broadcast %102 : vector<1x16xf32> to vector<64x16xf32>
    %104 = arith.addf %101, %103 : vector<64x16xf32>
    %cst_104 = arith.constant 0.000000e+00 : f32
    %105 = vector.broadcast %cst_104 : f32 to vector<64x16xf32>
    %106 = arith.maximumf %104, %105 : vector<64x16xf32>
    %c16_105 = arith.constant 16 : index
    %c0_106 = arith.constant 0 : index
    %107 = vector.load %arg13[%c16_105, %c0_106] : memref<96x8xbf16, #tpu.memory_space<vmem>>, vector<64x8xbf16>
    %c0_107 = arith.constant 0 : index
    %c0_108 = arith.constant 0 : index
    %108 = vector.load %arg10[%c0_107, %c0_108] : memref<8x32xbf16, #tpu.memory_space<vmem>>, vector<8x16xbf16>
    %cst_109 = arith.constant dense<0.000000e+00> : vector<64x16xf32>
    %109 = tpu.matmul %107, %108, %cst_109 {dimension_numbers = #tpu.dot_dimension_numbers<[1], [0], [0], [1], [0, 0, 1, 1], [], []>} : vector<64x8xbf16>, vector<8x16xbf16>, vector<64x16xf32> -> vector<64x16xf32>
    %c0_110 = arith.constant 0 : index
    %c0_111 = arith.constant 0 : index
    %110 = vector.load %arg11[%c0_110, %c0_111] : memref<1x32xf32, #tpu.memory_space<vmem>>, vector<1x16xf32>
    %111 = vector.broadcast %110 : vector<1x16xf32> to vector<64x16xf32>
    %112 = arith.addf %109, %111 : vector<64x16xf32>
    %113 = arith.addf %106, %112 : vector<64x16xf32>
    %cst_112 = arith.constant 0.000000e+00 : f32
    %114 = vector.broadcast %cst_112 : f32 to vector<64x16xf32>
    %115 = arith.maximumf %113, %114 : vector<64x16xf32>
    %116 = vector.extract_strided_slice %115 {offsets = [0, 0], sizes = [16, 16], strides = [1, 1]} : vector<64x16xf32> to vector<16x16xf32>
    %c0_113 = arith.constant 0 : index
    %c0_114 = arith.constant 0 : index
    %c0_115 = arith.constant 0 : index
    %117 = vector.load %arg12[%c0_113, %c0_114, %c0_115] : memref<2x16x32xf32, #tpu.memory_space<vmem>>, vector<1x16x16xf32>
    %118 = vector.shape_cast %117 : vector<1x16x16xf32> to vector<16x16xf32>
    %119 = vector.shape_cast %116 : vector<16x16xf32> to vector<1x16x16xf32>
    tpu.vector_store %arg12[%c0_113, %c0_114, %c0_115], %119 {strides = array<i32>} : memref<2x16x32xf32, #tpu.memory_space<vmem>>, vector<1x16x16xf32>,
    %120 = vector.extract_strided_slice %115 {offsets = [48, 0], sizes = [16, 16], strides = [1, 1]} : vector<64x16xf32> to vector<16x16xf32>
    %c1_116 = arith.constant 1 : index
    %c0_117 = arith.constant 0 : index
    %c0_118 = arith.constant 0 : index
    %121 = vector.load %arg12[%c1_116, %c0_117, %c0_118] : memref<2x16x32xf32, #tpu.memory_space<vmem>>, vector<1x16x16xf32>
    %122 = vector.shape_cast %121 : vector<1x16x16xf32> to vector<16x16xf32>
    %123 = vector.shape_cast %120 : vector<16x16xf32> to vector<1x16x16xf32>
    tpu.vector_store %arg12[%c1_116, %c0_117, %c0_118], %123 {strides = array<i32>} : memref<2x16x32xf32, #tpu.memory_space<vmem>>, vector<1x16x16xf32>,
    %cst_119 = arith.constant 0.000000e+00 : f32
    %124 = vector.broadcast %cst_119 : f32 to vector<64x16xf32>
    %c14_120 = arith.constant 14 : index
    %c0_121 = arith.constant 0 : index
    %125 = vector.load %arg14[%c14_120, %c0_121] : memref<96x32xbf16, #tpu.memory_space<vmem>>, vector<64x32xbf16>
    %c0_122 = arith.constant 0 : index
    %c0_123 = arith.constant 0 : index
    %c0_124 = arith.constant 0 : index
    %126 = vector.load %arg7[%c0_122, %c0_123, %c0_124] : memref<5x32x16xbf16, #tpu.memory_space<vmem>>, vector<1x32x16xbf16>
    %127 = vector.shape_cast %126 : vector<1x32x16xbf16> to vector<32x16xbf16>
    %cst_125 = arith.constant dense<0.000000e+00> : vector<64x16xf32>
    %128 = tpu.matmul %125, %127, %cst_125 {dimension_numbers = #tpu.dot_dimension_numbers<[1], [0], [0], [1], [0, 0, 1, 1], [], []>} : vector<64x32xbf16>, vector<32x16xbf16>, vector<64x16xf32> -> vector<64x16xf32>
    %129 = arith.addf %124, %128 : vector<64x16xf32>
    %c15_126 = arith.constant 15 : index
    %c0_127 = arith.constant 0 : index
    %130 = vector.load %arg14[%c15_126, %c0_127] : memref<96x32xbf16, #tpu.memory_space<vmem>>, vector<64x32xbf16>
    %c1_128 = arith.constant 1 : index
    %c0_129 = arith.constant 0 : index
    %c0_130 = arith.constant 0 : index
    %131 = vector.load %arg7[%c1_128, %c0_129, %c0_130] : memref<5x32x16xbf16, #tpu.memory_space<vmem>>, vector<1x32x16xbf16>
    %132 = vector.shape_cast %131 : vector<1x32x16xbf16> to vector<32x16xbf16>
    %cst_131 = arith.constant dense<0.000000e+00> : vector<64x16xf32>
    %133 = tpu.matmul %130, %132, %cst_131 {dimension_numbers = #tpu.dot_dimension_numbers<[1], [0], [0], [1], [0, 0, 1, 1], [], []>} : vector<64x32xbf16>, vector<32x16xbf16>, vector<64x16xf32> -> vector<64x16xf32>
    %134 = arith.addf %129, %133 : vector<64x16xf32>
    %c16_132 = arith.constant 16 : index
    %c0_133 = arith.constant 0 : index
    %135 = vector.load %arg14[%c16_132, %c0_133] : memref<96x32xbf16, #tpu.memory_space<vmem>>, vector<64x32xbf16>
    %c2_134 = arith.constant 2 : index
    %c0_135 = arith.constant 0 : index
    %c0_136 = arith.constant 0 : index
    %136 = vector.load %arg7[%c2_134, %c0_135, %c0_136] : memref<5x32x16xbf16, #tpu.memory_space<vmem>>, vector<1x32x16xbf16>
    %137 = vector.shape_cast %136 : vector<1x32x16xbf16> to vector<32x16xbf16>
    %cst_137 = arith.constant dense<0.000000e+00> : vector<64x16xf32>
    %138 = tpu.matmul %135, %137, %cst_137 {dimension_numbers = #tpu.dot_dimension_numbers<[1], [0], [0], [1], [0, 0, 1, 1], [], []>} : vector<64x32xbf16>, vector<32x16xbf16>, vector<64x16xf32> -> vector<64x16xf32>
    %139 = arith.addf %134, %138 : vector<64x16xf32>
    %c17_138 = arith.constant 17 : index
    %c0_139 = arith.constant 0 : index
    %140 = vector.load %arg14[%c17_138, %c0_139] : memref<96x32xbf16, #tpu.memory_space<vmem>>, vector<64x32xbf16>
    %c3_140 = arith.constant 3 : index
    %c0_141 = arith.constant 0 : index
    %c0_142 = arith.constant 0 : index
    %141 = vector.load %arg7[%c3_140, %c0_141, %c0_142] : memref<5x32x16xbf16, #tpu.memory_space<vmem>>, vector<1x32x16xbf16>
    %142 = vector.shape_cast %141 : vector<1x32x16xbf16> to vector<32x16xbf16>
    %cst_143 = arith.constant dense<0.000000e+00> : vector<64x16xf32>
    %143 = tpu.matmul %140, %142, %cst_143 {dimension_numbers = #tpu.dot_dimension_numbers<[1], [0], [0], [1], [0, 0, 1, 1], [], []>} : vector<64x32xbf16>, vector<32x16xbf16>, vector<64x16xf32> -> vector<64x16xf32>
    %144 = arith.addf %139, %143 : vector<64x16xf32>
    %c18_144 = arith.constant 18 : index
    %c0_145 = arith.constant 0 : index
    %145 = vector.load %arg14[%c18_144, %c0_145] : memref<96x32xbf16, #tpu.memory_space<vmem>>, vector<64x32xbf16>
    %c4_146 = arith.constant 4 : index
    %c0_147 = arith.constant 0 : index
    %c0_148 = arith.constant 0 : index
    %146 = vector.load %arg7[%c4_146, %c0_147, %c0_148] : memref<5x32x16xbf16, #tpu.memory_space<vmem>>, vector<1x32x16xbf16>
    %147 = vector.shape_cast %146 : vector<1x32x16xbf16> to vector<32x16xbf16>
    %cst_149 = arith.constant dense<0.000000e+00> : vector<64x16xf32>
    %148 = tpu.matmul %145, %147, %cst_149 {dimension_numbers = #tpu.dot_dimension_numbers<[1], [0], [0], [1], [0, 0, 1, 1], [], []>} : vector<64x32xbf16>, vector<32x16xbf16>, vector<64x16xf32> -> vector<64x16xf32>
    %149 = arith.addf %144, %148 : vector<64x16xf32>
    %c0_150 = arith.constant 0 : index
    %c0_151 = arith.constant 0 : index
    %150 = vector.load %arg9[%c0_150, %c0_151] : memref<1x16xf32, #tpu.memory_space<vmem>>, vector<1x16xf32>
    %151 = vector.broadcast %150 : vector<1x16xf32> to vector<64x16xf32>
    %152 = arith.addf %149, %151 : vector<64x16xf32>
    %cst_152 = arith.constant 0.000000e+00 : f32
    %153 = vector.broadcast %cst_152 : f32 to vector<64x16xf32>
    %154 = arith.maximumf %152, %153 : vector<64x16xf32>
    %c16_153 = arith.constant 16 : index
    %c0_154 = arith.constant 0 : index
    %155 = vector.load %arg13[%c16_153, %c0_154] : memref<96x8xbf16, #tpu.memory_space<vmem>>, vector<64x8xbf16>
    %c0_155 = arith.constant 0 : index
    %c16_156 = arith.constant 16 : index
    %156 = vector.load %arg10[%c0_155, %c16_156] : memref<8x32xbf16, #tpu.memory_space<vmem>>, vector<8x16xbf16>
    %cst_157 = arith.constant dense<0.000000e+00> : vector<64x16xf32>
    %157 = tpu.matmul %155, %156, %cst_157 {dimension_numbers = #tpu.dot_dimension_numbers<[1], [0], [0], [1], [0, 0, 1, 1], [], []>} : vector<64x8xbf16>, vector<8x16xbf16>, vector<64x16xf32> -> vector<64x16xf32>
    %c0_158 = arith.constant 0 : index
    %c16_159 = arith.constant 16 : index
    %158 = vector.load %arg11[%c0_158, %c16_159] : memref<1x32xf32, #tpu.memory_space<vmem>>, vector<1x16xf32>
    %159 = vector.broadcast %158 : vector<1x16xf32> to vector<64x16xf32>
    %160 = arith.addf %157, %159 : vector<64x16xf32>
    %161 = arith.addf %154, %160 : vector<64x16xf32>
    %cst_160 = arith.constant 0.000000e+00 : f32
    %162 = vector.broadcast %cst_160 : f32 to vector<64x16xf32>
    %163 = arith.maximumf %161, %162 : vector<64x16xf32>
    %164 = vector.extract_strided_slice %163 {offsets = [0, 0], sizes = [16, 16], strides = [1, 1]} : vector<64x16xf32> to vector<16x16xf32>
    %c0_161 = arith.constant 0 : index
    %c0_162 = arith.constant 0 : index
    %c16_163 = arith.constant 16 : index
    %165 = vector.load %arg12[%c0_161, %c0_162, %c16_163] : memref<2x16x32xf32, #tpu.memory_space<vmem>>, vector<1x16x16xf32>
    %166 = vector.shape_cast %165 : vector<1x16x16xf32> to vector<16x16xf32>
    %167 = vector.shape_cast %164 : vector<16x16xf32> to vector<1x16x16xf32>
    tpu.vector_store %arg12[%c0_161, %c0_162, %c16_163], %167 {strides = array<i32>} : memref<2x16x32xf32, #tpu.memory_space<vmem>>, vector<1x16x16xf32>,
    %168 = vector.extract_strided_slice %163 {offsets = [48, 0], sizes = [16, 16], strides = [1, 1]} : vector<64x16xf32> to vector<16x16xf32>
    %c1_164 = arith.constant 1 : index
    %c0_165 = arith.constant 0 : index
    %c16_166 = arith.constant 16 : index
    %169 = vector.load %arg12[%c1_164, %c0_165, %c16_166] : memref<2x16x32xf32, #tpu.memory_space<vmem>>, vector<1x16x16xf32>
    %170 = vector.shape_cast %169 : vector<1x16x16xf32> to vector<16x16xf32>
    %171 = vector.shape_cast %168 : vector<16x16xf32> to vector<1x16x16xf32>
    tpu.vector_store %arg12[%c1_164, %c0_165, %c16_166], %171 {strides = array<i32>} : memref<2x16x32xf32, #tpu.memory_space<vmem>>, vector<1x16x16xf32>,
    return
  }
  func.func @transform_0(%arg0: i32) -> (i32, i32, i32) {
    %c0_i32 = arith.constant 0 : i32
    %c0_i32_0 = arith.constant 0 : i32
    %c0_i32_1 = arith.constant 0 : i32
    return %arg0, %c0_i32, %c0_i32_0 : i32, i32, i32
  }
  func.func @transform_1(%arg0: i32) -> (i32, i32, i32) {
    %c0_i32 = arith.constant 0 : i32
    %c0_i32_0 = arith.constant 0 : i32
    %c0_i32_1 = arith.constant 0 : i32
    %c0_i32_2 = arith.constant 0 : i32
    return %c0_i32, %c0_i32_0, %c0_i32_1 : i32, i32, i32
  }
  func.func @transform_2(%arg0: i32) -> (i32, i32, i32) {
    %c0_i32 = arith.constant 0 : i32
    %c0_i32_0 = arith.constant 0 : i32
    %c0_i32_1 = arith.constant 0 : i32
    %c0_i32_2 = arith.constant 0 : i32
    return %c0_i32, %c0_i32_0, %c0_i32_1 : i32, i32, i32
  }
  func.func @transform_3(%arg0: i32) -> (i32, i32) {
    %c0_i32 = arith.constant 0 : i32
    %c0_i32_0 = arith.constant 0 : i32
    %c0_i32_1 = arith.constant 0 : i32
    return %c0_i32, %c0_i32_0 : i32, i32
  }
  func.func @transform_4(%arg0: i32) -> (i32, i32) {
    %c0_i32 = arith.constant 0 : i32
    %c0_i32_0 = arith.constant 0 : i32
    %c0_i32_1 = arith.constant 0 : i32
    return %c0_i32, %c0_i32_0 : i32, i32
  }
  func.func @transform_5(%arg0: i32) -> (i32, i32, i32) {
    %c0_i32 = arith.constant 0 : i32
    %c0_i32_0 = arith.constant 0 : i32
    %c0_i32_1 = arith.constant 0 : i32
    %c0_i32_2 = arith.constant 0 : i32
    return %c0_i32, %c0_i32_0, %c0_i32_1 : i32, i32, i32
  }
  func.func @transform_6(%arg0: i32) -> (i32, i32, i32) {
    %c0_i32 = arith.constant 0 : i32
    %c0_i32_0 = arith.constant 0 : i32
    %c0_i32_1 = arith.constant 0 : i32
    %c0_i32_2 = arith.constant 0 : i32
    return %c0_i32, %c0_i32_0, %c0_i32_1 : i32, i32, i32
  }
  func.func @transform_7(%arg0: i32) -> (i32, i32) {
    %c0_i32 = arith.constant 0 : i32
    %c0_i32_0 = arith.constant 0 : i32
    %c0_i32_1 = arith.constant 0 : i32
    return %c0_i32, %c0_i32_0 : i32, i32
  }
  func.func @transform_8(%arg0: i32) -> (i32, i32) {
    %c0_i32 = arith.constant 0 : i32
    %c0_i32_0 = arith.constant 0 : i32
    %c0_i32_1 = arith.constant 0 : i32
    return %c0_i32, %c0_i32_0 : i32, i32
  }
  func.func @transform_9(%arg0: i32) -> (i32, i32) {
    %c0_i32 = arith.constant 0 : i32
    %c0_i32_0 = arith.constant 0 : i32
    %c0_i32_1 = arith.constant 0 : i32
    return %c0_i32, %c0_i32_0 : i32, i32
  }
  func.func @transform_10(%arg0: i32) -> (i32, i32) {
    %c0_i32 = arith.constant 0 : i32
    %c0_i32_0 = arith.constant 0 : i32
    %c0_i32_1 = arith.constant 0 : i32
    return %c0_i32, %c0_i32_0 : i32, i32
  }
  func.func @transform_11(%arg0: i32) -> (i32, i32, i32) {
    %c0_i32 = arith.constant 0 : i32
    %c0_i32_0 = arith.constant 0 : i32
    %c0_i32_1 = arith.constant 0 : i32
    return %arg0, %c0_i32, %c0_i32_0 : i32, i32, i32
  }
}

module attributes {stable_mosaic.version = 11 : i64} {
  func.func @kernel(%arg0: i32, %arg1: memref<2x16x8xf32, #tpu.memory_space<vmem>>, %arg2: memref<3x8x16xbf16, #tpu.memory_space<vmem>>, %arg3: memref<5x8x16xbf16, #tpu.memory_space<vmem>>, %arg4: memref<1x16xf32, #tpu.memory_space<vmem>>, %arg5: memref<1x16xf32, #tpu.memory_space<vmem>>, %arg6: memref<3x32x16xbf16, #tpu.memory_space<vmem>>, %arg7: memref<5x32x16xbf16, #tpu.memory_space<vmem>>, %arg8: memref<1x16xf32, #tpu.memory_space<vmem>>, %arg9: memref<1x16xf32, #tpu.memory_space<vmem>>, %arg10: memref<8x32xbf16, #tpu.memory_space<vmem>>, %arg11: memref<1x32xf32, #tpu.memory_space<vmem>>, %arg12: memref<2x16x32xf32, #tpu.memory_space<vmem>>, %arg13: memref<96x8xbf16, #tpu.memory_space<vmem>>, %arg14: memref<96x32xbf16, #tpu.memory_space<vmem>>) attributes {dimension_semantics = [#tpu.dimension_semantics<parallel>], iteration_bounds = array<i64: 2>, scalar_prefetch = 0 : i64, scratch_operands = 2 : i64, tpu.core_type = #tpu.core_type<tc>, window_params = [{transform_indices = @transform_0, window_bounds = array<i64: 2, 16, 8>}, {pipeline_mode = #tpu.pipeline_mode<synchronous>, transform_indices = @transform_1, window_bounds = array<i64: 3, 8, 16>}, {pipeline_mode = #tpu.pipeline_mode<synchronous>, transform_indices = @transform_2, window_bounds = array<i64: 5, 8, 16>}, {pipeline_mode = #tpu.pipeline_mode<synchronous>, transform_indices = @transform_3, window_bounds = array<i64: 1, 16>}, {pipeline_mode = #tpu.pipeline_mode<synchronous>, transform_indices = @transform_4, window_bounds = array<i64: 1, 16>}, {pipeline_mode = #tpu.pipeline_mode<synchronous>, transform_indices = @transform_5, window_bounds = array<i64: 3, 32, 16>}, {pipeline_mode = #tpu.pipeline_mode<synchronous>, transform_indices = @transform_6, window_bounds = array<i64: 5, 32, 16>}, {pipeline_mode = #tpu.pipeline_mode<synchronous>, transform_indices = @transform_7, window_bounds = array<i64: 1, 16>}, {pipeline_mode = #tpu.pipeline_mode<synchronous>, transform_indices = @transform_8, window_bounds = array<i64: 1, 16>}, {pipeline_mode = #tpu.pipeline_mode<synchronous>, transform_indices = @transform_9, window_bounds = array<i64: 8, 32>}, {pipeline_mode = #tpu.pipeline_mode<synchronous>, transform_indices = @transform_10, window_bounds = array<i64: 1, 32>}, {transform_indices = @transform_11, window_bounds = array<i64: 2, 16, 32>}]} {
    %cst = arith.constant 0.000000e+00 : bf16
    %0 = vector.broadcast %cst : bf16 to vector<16x8xbf16>
    %c0 = arith.constant 0 : index
    %c0_0 = arith.constant 0 : index
    %1 = vector.load %arg13[%c0, %c0_0] : memref<96x8xbf16, #tpu.memory_space<vmem>>, vector<16x8xbf16>
    tpu.vector_store %arg13[%c0, %c0_0], %0 {strides = array<i32>} : memref<96x8xbf16, #tpu.memory_space<vmem>>, vector<16x8xbf16>,
    %cst_1 = arith.constant 0.000000e+00 : bf16
    %2 = vector.broadcast %cst_1 : bf16 to vector<16x32xbf16>
    %c0_2 = arith.constant 0 : index
    %c0_3 = arith.constant 0 : index
    %3 = vector.load %arg14[%c0_2, %c0_3] : memref<96x32xbf16, #tpu.memory_space<vmem>>, vector<16x32xbf16>
    tpu.vector_store %arg14[%c0_2, %c0_3], %2 {strides = array<i32>} : memref<96x32xbf16, #tpu.memory_space<vmem>>, vector<16x32xbf16>,
    %cst_4 = arith.constant 0.000000e+00 : bf16
    %4 = vector.broadcast %cst_4 : bf16 to vector<16x8xbf16>
    %c32 = arith.constant 32 : index
    %c0_5 = arith.constant 0 : index
    %5 = vector.load %arg13[%c32, %c0_5] : memref<96x8xbf16, #tpu.memory_space<vmem>>, vector<16x8xbf16>
    tpu.vector_store %arg13[%c32, %c0_5], %4 {strides = array<i32>} : memref<96x8xbf16, #tpu.memory_space<vmem>>, vector<16x8xbf16>,
    %cst_6 = arith.constant 0.000000e+00 : bf16
    %6 = vector.broadcast %cst_6 : bf16 to vector<16x32xbf16>
    %c32_7 = arith.constant 32 : index
    %c0_8 = arith.constant 0 : index
    %7 = vector.load %arg14[%c32_7, %c0_8] : memref<96x32xbf16, #tpu.memory_space<vmem>>, vector<16x32xbf16>
    tpu.vector_store %arg14[%c32_7, %c0_8], %6 {strides = array<i32>} : memref<96x32xbf16, #tpu.memory_space<vmem>>, vector<16x32xbf16>,
    %cst_9 = arith.constant 0.000000e+00 : bf16
    %8 = vector.broadcast %cst_9 : bf16 to vector<16x8xbf16>
    %c48 = arith.constant 48 : index
    %c0_10 = arith.constant 0 : index
    %9 = vector.load %arg13[%c48, %c0_10] : memref<96x8xbf16, #tpu.memory_space<vmem>>, vector<16x8xbf16>
    tpu.vector_store %arg13[%c48, %c0_10], %8 {strides = array<i32>} : memref<96x8xbf16, #tpu.memory_space<vmem>>, vector<16x8xbf16>,
    %cst_11 = arith.constant 0.000000e+00 : bf16
    %10 = vector.broadcast %cst_11 : bf16 to vector<16x32xbf16>
    %c48_12 = arith.constant 48 : index
    %c0_13 = arith.constant 0 : index
    %11 = vector.load %arg14[%c48_12, %c0_13] : memref<96x32xbf16, #tpu.memory_space<vmem>>, vector<16x32xbf16>
    tpu.vector_store %arg14[%c48_12, %c0_13], %10 {strides = array<i32>} : memref<96x32xbf16, #tpu.memory_space<vmem>>, vector<16x32xbf16>,
    %cst_14 = arith.constant 0.000000e+00 : bf16
    %12 = vector.broadcast %cst_14 : bf16 to vector<16x8xbf16>
    %c80 = arith.constant 80 : index
    %c0_15 = arith.constant 0 : index
    %13 = vector.load %arg13[%c80, %c0_15] : memref<96x8xbf16, #tpu.memory_space<vmem>>, vector<16x8xbf16>
    tpu.vector_store %arg13[%c80, %c0_15], %12 {strides = array<i32>} : memref<96x8xbf16, #tpu.memory_space<vmem>>, vector<16x8xbf16>,
    %cst_16 = arith.constant 0.000000e+00 : bf16
    %14 = vector.broadcast %cst_16 : bf16 to vector<16x32xbf16>
    %c80_17 = arith.constant 80 : index
    %c0_18 = arith.constant 0 : index
    %15 = vector.load %arg14[%c80_17, %c0_18] : memref<96x32xbf16, #tpu.memory_space<vmem>>, vector<16x32xbf16>
    tpu.vector_store %arg14[%c80_17, %c0_18], %14 {strides = array<i32>} : memref<96x32xbf16, #tpu.memory_space<vmem>>, vector<16x32xbf16>,
    %c0_19 = arith.constant 0 : index
    %c0_20 = arith.constant 0 : index
    %c0_21 = arith.constant 0 : index
    %16 = vector.load %arg1[%c0_19, %c0_20, %c0_21] : memref<2x16x8xf32, #tpu.memory_space<vmem>>, vector<1x16x8xf32>
    %17 = vector.shape_cast %16 : vector<1x16x8xf32> to vector<16x8xf32>
    %18 = arith.truncf %17 : vector<16x8xf32> to vector<16x8xbf16>
    %c16 = arith.constant 16 : index
    %c0_22 = arith.constant 0 : index
    %19 = vector.load %arg13[%c16, %c0_22] : memref<96x8xbf16, #tpu.memory_space<vmem>>, vector<16x8xbf16>
    tpu.vector_store %arg13[%c16, %c0_22], %18 {strides = array<i32>} : memref<96x8xbf16, #tpu.memory_space<vmem>>, vector<16x8xbf16>,
    %c1 = arith.constant 1 : index
    %c0_23 = arith.constant 0 : index
    %c0_24 = arith.constant 0 : index
    %20 = vector.load %arg1[%c1, %c0_23, %c0_24] : memref<2x16x8xf32, #tpu.memory_space<vmem>>, vector<1x16x8xf32>
    %21 = vector.shape_cast %20 : vector<1x16x8xf32> to vector<16x8xf32>
    %22 = arith.truncf %21 : vector<16x8xf32> to vector<16x8xbf16>
    %c64 = arith.constant 64 : index
    %c0_25 = arith.constant 0 : index
    %23 = vector.load %arg13[%c64, %c0_25] : memref<96x8xbf16, #tpu.memory_space<vmem>>, vector<16x8xbf16>
    tpu.vector_store %arg13[%c64, %c0_25], %22 {strides = array<i32>} : memref<96x8xbf16, #tpu.memory_space<vmem>>, vector<16x8xbf16>,
    %cst_26 = arith.constant 0.000000e+00 : f32
    %24 = vector.broadcast %cst_26 : f32 to vector<64x16xf32>
    %c15 = arith.constant 15 : index
    %c0_27 = arith.constant 0 : index
    %25 = vector.load %arg13[%c15, %c0_27] : memref<96x8xbf16, #tpu.memory_space<vmem>>, vector<64x8xbf16>
    %c0_28 = arith.constant 0 : index
    %c0_29 = arith.constant 0 : index
    %c0_30 = arith.constant 0 : index
    %26 = vector.load %arg2[%c0_28, %c0_29, %c0_30] : memref<3x8x16xbf16, #tpu.memory_space<vmem>>, vector<1x8x16xbf16>
    %27 = vector.shape_cast %26 : vector<1x8x16xbf16> to vector<8x16xbf16>
    %cst_31 = arith.constant dense<0.000000e+00> : vector<64x16xf32>
    %28 = tpu.matmul %25, %27, %cst_31 {dimension_numbers = #tpu.dot_dimension_numbers<[1], [0], [0], [1], [0, 0, 1, 1], [], []>} : vector<64x8xbf16>, vector<8x16xbf16>, vector<64x16xf32> -> vector<64x16xf32>
    %29 = arith.addf %24, %28 : vector<64x16xf32>
    %c16_32 = arith.constant 16 : index
    %c0_33 = arith.constant 0 : index
    %30 = vector.load %arg13[%c16_32, %c0_33] : memref<96x8xbf16, #tpu.memory_space<vmem>>, vector<64x8xbf16>
    %c1_34 = arith.constant 1 : index
    %c0_35 = arith.constant 0 : index
    %c0_36 = arith.constant 0 : index
    %31 = vector.load %arg2[%c1_34, %c0_35, %c0_36] : memref<3x8x16xbf16, #tpu.memory_space<vmem>>, vector<1x8x16xbf16>
    %32 = vector.shape_cast %31 : vector<1x8x16xbf16> to vector<8x16xbf16>
    %cst_37 = arith.constant dense<0.000000e+00> : vector<64x16xf32>
    %33 = tpu.matmul %30, %32, %cst_37 {dimension_numbers = #tpu.dot_dimension_numbers<[1], [0], [0], [1], [0, 0, 1, 1], [], []>} : vector<64x8xbf16>, vector<8x16xbf16>, vector<64x16xf32> -> vector<64x16xf32>
    %34 = arith.addf %29, %33 : vector<64x16xf32>
    %c17 = arith.constant 17 : index
    %c0_38 = arith.constant 0 : index
    %35 = vector.load %arg13[%c17, %c0_38] : memref<96x8xbf16, #tpu.memory_space<vmem>>, vector<64x8xbf16>
    %c2 = arith.constant 2 : index
    %c0_39 = arith.constant 0 : index
    %c0_40 = arith.constant 0 : index
    %36 = vector.load %arg2[%c2, %c0_39, %c0_40] : memref<3x8x16xbf16, #tpu.memory_space<vmem>>, vector<1x8x16xbf16>
    %37 = vector.shape_cast %36 : vector<1x8x16xbf16> to vector<8x16xbf16>
    %cst_41 = arith.constant dense<0.000000e+00> : vector<64x16xf32>
    %38 = tpu.matmul %35, %37, %cst_41 {dimension_numbers = #tpu.dot_dimension_numbers<[1], [0], [0], [1], [0, 0, 1, 1], [], []>} : vector<64x8xbf16>, vector<8x16xbf16>, vector<64x16xf32> -> vector<64x16xf32>
    %39 = arith.addf %34, %38 : vector<64x16xf32>
    %c0_42 = arith.constant 0 : index
    %c0_43 = arith.constant 0 : index
    %40 = vector.load %arg4[%c0_42, %c0_43] : memref<1x16xf32, #tpu.memory_space<vmem>>, vector<1x16xf32>
    %41 = vector.broadcast %40 : vector<1x16xf32> to vector<64x16xf32>
    %42 = arith.addf %39, %41 : vector<64x16xf32>
    %cst_44 = arith.constant 0.000000e+00 : f32
    %43 = vector.broadcast %cst_44 : f32 to vector<64x16xf32>
    %44 = arith.maximumf %42, %43 : vector<64x16xf32>
    %45 = arith.truncf %44 : vector<64x16xf32> to vector<64x16xbf16>
    %46 = vector.extract_strided_slice %45 {offsets = [0, 0], sizes = [16, 16], strides = [1, 1]} : vector<64x16xbf16> to vector<16x16xbf16>
    %c16_45 = arith.constant 16 : index
    %c0_46 = arith.constant 0 : index
    %47 = vector.load %arg14[%c16_45, %c0_46] : memref<96x32xbf16, #tpu.memory_space<vmem>>, vector<16x16xbf16>
    tpu.vector_store %arg14[%c16_45, %c0_46], %46 {strides = array<i32>} : memref<96x32xbf16, #tpu.memory_space<vmem>>, vector<16x16xbf16>,
    %48 = vector.extract_strided_slice %45 {offsets = [48, 0], sizes = [16, 16], strides = [1, 1]} : vector<64x16xbf16> to vector<16x16xbf16>
    %c64_47 = arith.constant 64 : index
    %c0_48 = arith.constant 0 : index
    %49 = vector.load %arg14[%c64_47, %c0_48] : memref<96x32xbf16, #tpu.memory_space<vmem>>, vector<16x16xbf16>
    tpu.vector_store %arg14[%c64_47, %c0_48], %48 {strides = array<i32>} : memref<96x32xbf16, #tpu.memory_space<vmem>>, vector<16x16xbf16>,
    %cst_49 = arith.constant 0.000000e+00 : f32
    %50 = vector.broadcast %cst_49 : f32 to vector<64x16xf32>
    %c14 = arith.constant 14 : index
    %c0_50 = arith.constant 0 : index
    %51 = vector.load %arg13[%c14, %c0_50] : memref<96x8xbf16, #tpu.memory_space<vmem>>, vector<64x8xbf16>
    %c0_51 = arith.constant 0 : index
    %c0_52 = arith.constant 0 : index
    %c0_53 = arith.constant 0 : index
    %52 = vector.load %arg3[%c0_51, %c0_52, %c0_53] : memref<5x8x16xbf16, #tpu.memory_space<vmem>>, vector<1x8x16xbf16>
    %53 = vector.shape_cast %52 : vector<1x8x16xbf16> to vector<8x16xbf16>
    %cst_54 = arith.constant dense<0.000000e+00> : vector<64x16xf32>
    %54 = tpu.matmul %51, %53, %cst_54 {dimension_numbers = #tpu.dot_dimension_numbers<[1], [0], [0], [1], [0, 0, 1, 1], [], []>} : vector<64x8xbf16>, vector<8x16xbf16>, vector<64x16xf32> -> vector<64x16xf32>
    %55 = arith.addf %50, %54 : vector<64x16xf32>
    %c15_55 = arith.constant 15 : index
    %c0_56 = arith.constant 0 : index
    %56 = vector.load %arg13[%c15_55, %c0_56] : memref<96x8xbf16, #tpu.memory_space<vmem>>, vector<64x8xbf16>
    %c1_57 = arith.constant 1 : index
    %c0_58 = arith.constant 0 : index
    %c0_59 = arith.constant 0 : index
    %57 = vector.load %arg3[%c1_57, %c0_58, %c0_59] : memref<5x8x16xbf16, #tpu.memory_space<vmem>>, vector<1x8x16xbf16>
    %58 = vector.shape_cast %57 : vector<1x8x16xbf16> to vector<8x16xbf16>
    %cst_60 = arith.constant dense<0.000000e+00> : vector<64x16xf32>
    %59 = tpu.matmul %56, %58, %cst_60 {dimension_numbers = #tpu.dot_dimension_numbers<[1], [0], [0], [1], [0, 0, 1, 1], [], []>} : vector<64x8xbf16>, vector<8x16xbf16>, vector<64x16xf32> -> vector<64x16xf32>
    %60 = arith.addf %55, %59 : vector<64x16xf32>
    %c16_61 = arith.constant 16 : index
    %c0_62 = arith.constant 0 : index
    %61 = vector.load %arg13[%c16_61, %c0_62] : memref<96x8xbf16, #tpu.memory_space<vmem>>, vector<64x8xbf16>
    %c2_63 = arith.constant 2 : index
    %c0_64 = arith.constant 0 : index
    %c0_65 = arith.constant 0 : index
    %62 = vector.load %arg3[%c2_63, %c0_64, %c0_65] : memref<5x8x16xbf16, #tpu.memory_space<vmem>>, vector<1x8x16xbf16>
    %63 = vector.shape_cast %62 : vector<1x8x16xbf16> to vector<8x16xbf16>
    %cst_66 = arith.constant dense<0.000000e+00> : vector<64x16xf32>
    %64 = tpu.matmul %61, %63, %cst_66 {dimension_numbers = #tpu.dot_dimension_numbers<[1], [0], [0], [1], [0, 0, 1, 1], [], []>} : vector<64x8xbf16>, vector<8x16xbf16>, vector<64x16xf32> -> vector<64x16xf32>
    %65 = arith.addf %60, %64 : vector<64x16xf32>
    %c17_67 = arith.constant 17 : index
    %c0_68 = arith.constant 0 : index
    %66 = vector.load %arg13[%c17_67, %c0_68] : memref<96x8xbf16, #tpu.memory_space<vmem>>, vector<64x8xbf16>
    %c3 = arith.constant 3 : index
    %c0_69 = arith.constant 0 : index
    %c0_70 = arith.constant 0 : index
    %67 = vector.load %arg3[%c3, %c0_69, %c0_70] : memref<5x8x16xbf16, #tpu.memory_space<vmem>>, vector<1x8x16xbf16>
    %68 = vector.shape_cast %67 : vector<1x8x16xbf16> to vector<8x16xbf16>
    %cst_71 = arith.constant dense<0.000000e+00> : vector<64x16xf32>
    %69 = tpu.matmul %66, %68, %cst_71 {dimension_numbers = #tpu.dot_dimension_numbers<[1], [0], [0], [1], [0, 0, 1, 1], [], []>} : vector<64x8xbf16>, vector<8x16xbf16>, vector<64x16xf32> -> vector<64x16xf32>
    %70 = arith.addf %65, %69 : vector<64x16xf32>
    %c18 = arith.constant 18 : index
    %c0_72 = arith.constant 0 : index
    %71 = vector.load %arg13[%c18, %c0_72] : memref<96x8xbf16, #tpu.memory_space<vmem>>, vector<64x8xbf16>
    %c4 = arith.constant 4 : index
    %c0_73 = arith.constant 0 : index
    %c0_74 = arith.constant 0 : index
    %72 = vector.load %arg3[%c4, %c0_73, %c0_74] : memref<5x8x16xbf16, #tpu.memory_space<vmem>>, vector<1x8x16xbf16>
    %73 = vector.shape_cast %72 : vector<1x8x16xbf16> to vector<8x16xbf16>
    %cst_75 = arith.constant dense<0.000000e+00> : vector<64x16xf32>
    %74 = tpu.matmul %71, %73, %cst_75 {dimension_numbers = #tpu.dot_dimension_numbers<[1], [0], [0], [1], [0, 0, 1, 1], [], []>} : vector<64x8xbf16>, vector<8x16xbf16>, vector<64x16xf32> -> vector<64x16xf32>
    %75 = arith.addf %70, %74 : vector<64x16xf32>
    %c0_76 = arith.constant 0 : index
    %c0_77 = arith.constant 0 : index
    %76 = vector.load %arg5[%c0_76, %c0_77] : memref<1x16xf32, #tpu.memory_space<vmem>>, vector<1x16xf32>
    %77 = vector.broadcast %76 : vector<1x16xf32> to vector<64x16xf32>
    %78 = arith.addf %75, %77 : vector<64x16xf32>
    %cst_78 = arith.constant 0.000000e+00 : f32
    %79 = vector.broadcast %cst_78 : f32 to vector<64x16xf32>
    %80 = arith.maximumf %78, %79 : vector<64x16xf32>
    %81 = arith.truncf %80 : vector<64x16xf32> to vector<64x16xbf16>
    %82 = vector.extract_strided_slice %81 {offsets = [0, 0], sizes = [16, 16], strides = [1, 1]} : vector<64x16xbf16> to vector<16x16xbf16>
    %c16_79 = arith.constant 16 : index
    %c16_80 = arith.constant 16 : index
    %83 = vector.load %arg14[%c16_79, %c16_80] : memref<96x32xbf16, #tpu.memory_space<vmem>>, vector<16x16xbf16>
    tpu.vector_store %arg14[%c16_79, %c16_80], %82 {strides = array<i32>} : memref<96x32xbf16, #tpu.memory_space<vmem>>, vector<16x16xbf16>,
    %84 = vector.extract_strided_slice %81 {offsets = [48, 0], sizes = [16, 16], strides = [1, 1]} : vector<64x16xbf16> to vector<16x16xbf16>
    %c64_81 = arith.constant 64 : index
    %c16_82 = arith.constant 16 : index
    %85 = vector.load %arg14[%c64_81, %c16_82] : memref<96x32xbf16, #tpu.memory_space<vmem>>, vector<16x16xbf16>
    tpu.vector_store %arg14[%c64_81, %c16_82], %84 {strides = array<i32>} : memref<96x32xbf16, #tpu.memory_space<vmem>>, vector<16x16xbf16>,
    %cst_83 = arith.constant 0.000000e+00 : f32
    %86 = vector.broadcast %cst_83 : f32 to vector<64x16xf32>
    %c15_84 = arith.constant 15 : index
    %c0_85 = arith.constant 0 : index
    %87 = vector.load %arg14[%c15_84, %c0_85] : memref<96x32xbf16, #tpu.memory_space<vmem>>, vector<64x32xbf16>
    %c0_86 = arith.constant 0 : index
    %c0_87 = arith.constant 0 : index
    %c0_88 = arith.constant 0 : index
    %88 = vector.load %arg6[%c0_86, %c0_87, %c0_88] : memref<3x32x16xbf16, #tpu.memory_space<vmem>>, vector<1x32x16xbf16>
    %89 = vector.shape_cast %88 : vector<1x32x16xbf16> to vector<32x16xbf16>
    %cst_89 = arith.constant dense<0.000000e+00> : vector<64x16xf32>
    %90 = tpu.matmul %87, %89, %cst_89 {dimension_numbers = #tpu.dot_dimension_numbers<[1], [0], [0], [1], [0, 0, 1, 1], [], []>} : vector<64x32xbf16>, vector<32x16xbf16>, vector<64x16xf32> -> vector<64x16xf32>
    %91 = arith.addf %86, %90 : vector<64x16xf32>
    %c16_90 = arith.constant 16 : index
    %c0_91 = arith.constant 0 : index
    %92 = vector.load %arg14[%c16_90, %c0_91] : memref<96x32xbf16, #tpu.memory_space<vmem>>, vector<64x32xbf16>
    %c1_92 = arith.constant 1 : index
    %c0_93 = arith.constant 0 : index
    %c0_94 = arith.constant 0 : index
    %93 = vector.load %arg6[%c1_92, %c0_93, %c0_94] : memref<3x32x16xbf16, #tpu.memory_space<vmem>>, vector<1x32x16xbf16>
    %94 = vector.shape_cast %93 : vector<1x32x16xbf16> to vector<32x16xbf16>
    %cst_95 = arith.constant dense<0.000000e+00> : vector<64x16xf32>
    %95 = tpu.matmul %92, %94, %cst_95 {dimension_numbers = #tpu.dot_dimension_numbers<[1], [0], [0], [1], [0, 0, 1, 1], [], []>} : vector<64x32xbf16>, vector<32x16xbf16>, vector<64x16xf32> -> vector<64x16xf32>
    %96 = arith.addf %91, %95 : vector<64x16xf32>
    %c17_96 = arith.constant 17 : index
    %c0_97 = arith.constant 0 : index
    %97 = vector.load %arg14[%c17_96, %c0_97] : memref<96x32xbf16, #tpu.memory_space<vmem>>, vector<64x32xbf16>
    %c2_98 = arith.constant 2 : index
    %c0_99 = arith.constant 0 : index
    %c0_100 = arith.constant 0 : index
    %98 = vector.load %arg6[%c2_98, %c0_99, %c0_100] : memref<3x32x16xbf16, #tpu.memory_space<vmem>>, vector<1x32x16xbf16>
    %99 = vector.shape_cast %98 : vector<1x32x16xbf16> to vector<32x16xbf16>
    %cst_101 = arith.constant dense<0.000000e+00> : vector<64x16xf32>
    %100 = tpu.matmul %97, %99, %cst_101 {dimension_numbers = #tpu.dot_dimension_numbers<[1], [0], [0], [1], [0, 0, 1, 1], [], []>} : vector<64x32xbf16>, vector<32x16xbf16>, vector<64x16xf32> -> vector<64x16xf32>
    %101 = arith.addf %96, %100 : vector<64x16xf32>
    %c0_102 = arith.constant 0 : index
    %c0_103 = arith.constant 0 : index
    %102 = vector.load %arg8[%c0_102, %c0_103] : memref<1x16xf32, #tpu.memory_space<vmem>>, vector<1x16xf32>
    %103 = vector.broadcast %102 : vector<1x16xf32> to vector<64x16xf32>
    %104 = arith.addf %101, %103 : vector<64x16xf32>
    %cst_104 = arith.constant 0.000000e+00 : f32
    %105 = vector.broadcast %cst_104 : f32 to vector<64x16xf32>
    %106 = arith.maximumf %104, %105 : vector<64x16xf32>
    %c16_105 = arith.constant 16 : index
    %c0_106 = arith.constant 0 : index
    %107 = vector.load %arg13[%c16_105, %c0_106] : memref<96x8xbf16, #tpu.memory_space<vmem>>, vector<64x8xbf16>
    %c0_107 = arith.constant 0 : index
    %c0_108 = arith.constant 0 : index
    %108 = vector.load %arg10[%c0_107, %c0_108] : memref<8x32xbf16, #tpu.memory_space<vmem>>, vector<8x16xbf16>
    %cst_109 = arith.constant dense<0.000000e+00> : vector<64x16xf32>
    %109 = tpu.matmul %107, %108, %cst_109 {dimension_numbers = #tpu.dot_dimension_numbers<[1], [0], [0], [1], [0, 0, 1, 1], [], []>} : vector<64x8xbf16>, vector<8x16xbf16>, vector<64x16xf32> -> vector<64x16xf32>
    %c0_110 = arith.constant 0 : index
    %c0_111 = arith.constant 0 : index
    %110 = vector.load %arg11[%c0_110, %c0_111] : memref<1x32xf32, #tpu.memory_space<vmem>>, vector<1x16xf32>
    %111 = vector.broadcast %110 : vector<1x16xf32> to vector<64x16xf32>
    %112 = arith.addf %109, %111 : vector<64x16xf32>
    %113 = arith.addf %106, %112 : vector<64x16xf32>
    %cst_112 = arith.constant 0.000000e+00 : f32
    %114 = vector.broadcast %cst_112 : f32 to vector<64x16xf32>
    %115 = arith.maximumf %113, %114 : vector<64x16xf32>
    %116 = vector.extract_strided_slice %115 {offsets = [0, 0], sizes = [16, 16], strides = [1, 1]} : vector<64x16xf32> to vector<16x16xf32>
    %c0_113 = arith.constant 0 : index
    %c0_114 = arith.constant 0 : index
    %c0_115 = arith.constant 0 : index
    %117 = vector.load %arg12[%c0_113, %c0_114, %c0_115] : memref<2x16x32xf32, #tpu.memory_space<vmem>>, vector<1x16x16xf32>
    %118 = vector.shape_cast %117 : vector<1x16x16xf32> to vector<16x16xf32>
    %119 = vector.shape_cast %116 : vector<16x16xf32> to vector<1x16x16xf32>
    tpu.vector_store %arg12[%c0_113, %c0_114, %c0_115], %119 {strides = array<i32>} : memref<2x16x32xf32, #tpu.memory_space<vmem>>, vector<1x16x16xf32>,
    %120 = vector.extract_strided_slice %115 {offsets = [48, 0], sizes = [16, 16], strides = [1, 1]} : vector<64x16xf32> to vector<16x16xf32>
    %c1_116 = arith.constant 1 : index
    %c0_117 = arith.constant 0 : index
    %c0_118 = arith.constant 0 : index
    %121 = vector.load %arg12[%c1_116, %c0_117, %c0_118] : memref<2x16x32xf32, #tpu.memory_space<vmem>>, vector<1x16x16xf32>
    %122 = vector.shape_cast %121 : vector<1x16x16xf32> to vector<16x16xf32>
    %123 = vector.shape_cast %120 : vector<16x16xf32> to vector<1x16x16xf32>
    tpu.vector_store %arg12[%c1_116, %c0_117, %c0_118], %123 {strides = array<i32>} : memref<2x16x32xf32, #tpu.memory_space<vmem>>, vector<1x16x16xf32>,
    %cst_119 = arith.constant 0.000000e+00 : f32
    %124 = vector.broadcast %cst_119 : f32 to vector<64x16xf32>
    %c14_120 = arith.constant 14 : index
    %c0_121 = arith.constant 0 : index
    %125 = vector.load %arg14[%c14_120, %c0_121] : memref<96x32xbf16, #tpu.memory_space<vmem>>, vector<64x32xbf16>
    %c0_122 = arith.constant 0 : index
    %c0_123 = arith.constant 0 : index
    %c0_124 = arith.constant 0 : index
    %126 = vector.load %arg7[%c0_122, %c0_123, %c0_124] : memref<5x32x16xbf16, #tpu.memory_space<vmem>>, vector<1x32x16xbf16>
    %127 = vector.shape_cast %126 : vector<1x32x16xbf16> to vector<32x16xbf16>
    %cst_125 = arith.constant dense<0.000000e+00> : vector<64x16xf32>
    %128 = tpu.matmul %125, %127, %cst_125 {dimension_numbers = #tpu.dot_dimension_numbers<[1], [0], [0], [1], [0, 0, 1, 1], [], []>} : vector<64x32xbf16>, vector<32x16xbf16>, vector<64x16xf32> -> vector<64x16xf32>
    %129 = arith.addf %124, %128 : vector<64x16xf32>
    %c15_126 = arith.constant 15 : index
    %c0_127 = arith.constant 0 : index
    %130 = vector.load %arg14[%c15_126, %c0_127] : memref<96x32xbf16, #tpu.memory_space<vmem>>, vector<64x32xbf16>
    %c1_128 = arith.constant 1 : index
    %c0_129 = arith.constant 0 : index
    %c0_130 = arith.constant 0 : index
    %131 = vector.load %arg7[%c1_128, %c0_129, %c0_130] : memref<5x32x16xbf16, #tpu.memory_space<vmem>>, vector<1x32x16xbf16>
    %132 = vector.shape_cast %131 : vector<1x32x16xbf16> to vector<32x16xbf16>
    %cst_131 = arith.constant dense<0.000000e+00> : vector<64x16xf32>
    %133 = tpu.matmul %130, %132, %cst_131 {dimension_numbers = #tpu.dot_dimension_numbers<[1], [0], [0], [1], [0, 0, 1, 1], [], []>} : vector<64x32xbf16>, vector<32x16xbf16>, vector<64x16xf32> -> vector<64x16xf32>
    %134 = arith.addf %129, %133 : vector<64x16xf32>
    %c16_132 = arith.constant 16 : index
    %c0_133 = arith.constant 0 : index
    %135 = vector.load %arg14[%c16_132, %c0_133] : memref<96x32xbf16, #tpu.memory_space<vmem>>, vector<64x32xbf16>
    %c2_134 = arith.constant 2 : index
    %c0_135 = arith.constant 0 : index
    %c0_136 = arith.constant 0 : index
    %136 = vector.load %arg7[%c2_134, %c0_135, %c0_136] : memref<5x32x16xbf16, #tpu.memory_space<vmem>>, vector<1x32x16xbf16>
    %137 = vector.shape_cast %136 : vector<1x32x16xbf16> to vector<32x16xbf16>
    %cst_137 = arith.constant dense<0.000000e+00> : vector<64x16xf32>
    %138 = tpu.matmul %135, %137, %cst_137 {dimension_numbers = #tpu.dot_dimension_numbers<[1], [0], [0], [1], [0, 0, 1, 1], [], []>} : vector<64x32xbf16>, vector<32x16xbf16>, vector<64x16xf32> -> vector<64x16xf32>
    %139 = arith.addf %134, %138 : vector<64x16xf32>
    %c17_138 = arith.constant 17 : index
    %c0_139 = arith.constant 0 : index
    %140 = vector.load %arg14[%c17_138, %c0_139] : memref<96x32xbf16, #tpu.memory_space<vmem>>, vector<64x32xbf16>
    %c3_140 = arith.constant 3 : index
    %c0_141 = arith.constant 0 : index
    %c0_142 = arith.constant 0 : index
    %141 = vector.load %arg7[%c3_140, %c0_141, %c0_142] : memref<5x32x16xbf16, #tpu.memory_space<vmem>>, vector<1x32x16xbf16>
    %142 = vector.shape_cast %141 : vector<1x32x16xbf16> to vector<32x16xbf16>
    %cst_143 = arith.constant dense<0.000000e+00> : vector<64x16xf32>
    %143 = tpu.matmul %140, %142, %cst_143 {dimension_numbers = #tpu.dot_dimension_numbers<[1], [0], [0], [1], [0, 0, 1, 1], [], []>} : vector<64x32xbf16>, vector<32x16xbf16>, vector<64x16xf32> -> vector<64x16xf32>
    %144 = arith.addf %139, %143 : vector<64x16xf32>
    %c18_144 = arith.constant 18 : index
    %c0_145 = arith.constant 0 : index
    %145 = vector.load %arg14[%c18_144, %c0_145] : memref<96x32xbf16, #tpu.memory_space<vmem>>, vector<64x32xbf16>
    %c4_146 = arith.constant 4 : index
    %c0_147 = arith.constant 0 : index
    %c0_148 = arith.constant 0 : index
    %146 = vector.load %arg7[%c4_146, %c0_147, %c0_148] : memref<5x32x16xbf16, #tpu.memory_space<vmem>>, vector<1x32x16xbf16>
    %147 = vector.shape_cast %146 : vector<1x32x16xbf16> to vector<32x16xbf16>
    %cst_149 = arith.constant dense<0.000000e+00> : vector<64x16xf32>
    %148 = tpu.matmul %145, %147, %cst_149 {dimension_numbers = #tpu.dot_dimension_numbers<[1], [0], [0], [1], [0, 0, 1, 1], [], []>} : vector<64x32xbf16>, vector<32x16xbf16>, vector<64x16xf32> -> vector<64x16xf32>
    %149 = arith.addf %144, %148 : vector<64x16xf32>
    %c0_150 = arith.constant 0 : index
    %c0_151 = arith.constant 0 : index
    %150 = vector.load %arg9[%c0_150, %c0_151] : memref<1x16xf32, #tpu.memory_space<vmem>>, vector<1x16xf32>
    %151 = vector.broadcast %150 : vector<1x16xf32> to vector<64x16xf32>
    %152 = arith.addf %149, %151 : vector<64x16xf32>
    %cst_152 = arith.constant 0.000000e+00 : f32
    %153 = vector.broadcast %cst_152 : f32 to vector<64x16xf32>
    %154 = arith.maximumf %152, %153 : vector<64x16xf32>
    %c16_153 = arith.constant 16 : index
    %c0_154 = arith.constant 0 : index
    %155 = vector.load %arg13[%c16_153, %c0_154] : memref<96x8xbf16, #tpu.memory_space<vmem>>, vector<64x8xbf16>
    %c0_155 = arith.constant 0 : index
    %c16_156 = arith.constant 16 : index
    %156 = vector.load %arg10[%c0_155, %c16_156] : memref<8x32xbf16, #tpu.memory_space<vmem>>, vector<8x16xbf16>
    %cst_157 = arith.constant dense<0.000000e+00> : vector<64x16xf32>
    %157 = tpu.matmul %155, %156, %cst_157 {dimension_numbers = #tpu.dot_dimension_numbers<[1], [0], [0], [1], [0, 0, 1, 1], [], []>} : vector<64x8xbf16>, vector<8x16xbf16>, vector<64x16xf32> -> vector<64x16xf32>
    %c0_158 = arith.constant 0 : index
    %c16_159 = arith.constant 16 : index
    %158 = vector.load %arg11[%c0_158, %c16_159] : memref<1x32xf32, #tpu.memory_space<vmem>>, vector<1x16xf32>
    %159 = vector.broadcast %158 : vector<1x16xf32> to vector<64x16xf32>
    %160 = arith.addf %157, %159 : vector<64x16xf32>
    %161 = arith.addf %154, %160 : vector<64x16xf32>
    %cst_160 = arith.constant 0.000000e+00 : f32
    %162 = vector.broadcast %cst_160 : f32 to vector<64x16xf32>
    %163 = arith.maximumf %161, %162 : vector<64x16xf32>
    %164 = vector.extract_strided_slice %163 {offsets = [0, 0], sizes = [16, 16], strides = [1, 1]} : vector<64x16xf32> to vector<16x16xf32>
    %c0_161 = arith.constant 0 : index
    %c0_162 = arith.constant 0 : index
    %c16_163 = arith.constant 16 : index
    %165 = vector.load %arg12[%c0_161, %c0_162, %c16_163] : memref<2x16x32xf32, #tpu.memory_space<vmem>>, vector<1x16x16xf32>
    %166 = vector.shape_cast %165 : vector<1x16x16xf32> to vector<16x16xf32>
    %167 = vector.shape_cast %164 : vector<16x16xf32> to vector<1x16x16xf32>
    tpu.vector_store %arg12[%c0_161, %c0_162, %c16_163], %167 {strides = array<i32>} : memref<2x16x32xf32, #tpu.memory_space<vmem>>, vector<1x16x16xf32>,
    %168 = vector.extract_strided_slice %163 {offsets = [48, 0], sizes = [16, 16], strides = [1, 1]} : vector<64x16xf32> to vector<16x16xf32>
    %c1_164 = arith.constant 1 : index
    %c0_165 = arith.constant 0 : index
    %c16_166 = arith.constant 16 : index
    %169 = vector.load %arg12[%c1_164, %c0_165, %c16_166] : memref<2x16x32xf32, #tpu.memory_space<vmem>>, vector<1x16x16xf32>
    %170 = vector.shape_cast %169 : vector<1x16x16xf32> to vector<16x16xf32>
    %171 = vector.shape_cast %168 : vector<16x16xf32> to vector<1x16x16xf32>
    tpu.vector_store %arg12[%c1_164, %c0_165, %c16_166], %171 {strides = array<i32>} : memref<2x16x32xf32, #tpu.memory_space<vmem>>, vector<1x16x16xf32>,
    return
  }
  func.func @transform_0(%arg0: i32) -> (i32, i32, i32) {
    %c0_i32 = arith.constant 0 : i32
    %c0_i32_0 = arith.constant 0 : i32
    %c0_i32_1 = arith.constant 0 : i32
    return %arg0, %c0_i32, %c0_i32_0 : i32, i32, i32
  }
  func.func @transform_1(%arg0: i32) -> (i32, i32, i32) {
    %c0_i32 = arith.constant 0 : i32
    %c0_i32_0 = arith.constant 0 : i32
    %c0_i32_1 = arith.constant 0 : i32
    %c0_i32_2 = arith.constant 0 : i32
    return %c0_i32, %c0_i32_0, %c0_i32_1 : i32, i32, i32
  }
  func.func @transform_2(%arg0: i32) -> (i32, i32, i32) {
    %c0_i32 = arith.constant 0 : i32
    %c0_i32_0 = arith.constant 0 : i32
    %c0_i32_1 = arith.constant 0 : i32
    %c0_i32_2 = arith.constant 0 : i32
    return %c0_i32, %c0_i32_0, %c0_i32_1 : i32, i32, i32
  }
  func.func @transform_3(%arg0: i32) -> (i32, i32) {
    %c0_i32 = arith.constant 0 : i32
    %c0_i32_0 = arith.constant 0 : i32
    %c0_i32_1 = arith.constant 0 : i32
    return %c0_i32, %c0_i32_0 : i32, i32
  }
  func.func @transform_4(%arg0: i32) -> (i32, i32) {
    %c0_i32 = arith.constant 0 : i32
    %c0_i32_0 = arith.constant 0 : i32
    %c0_i32_1 = arith.constant 0 : i32
    return %c0_i32, %c0_i32_0 : i32, i32
  }
  func.func @transform_5(%arg0: i32) -> (i32, i32, i32) {
    %c0_i32 = arith.constant 0 : i32
    %c0_i32_0 = arith.constant 0 : i32
    %c0_i32_1 = arith.constant 0 : i32
    %c0_i32_2 = arith.constant 0 : i32
    return %c0_i32, %c0_i32_0, %c0_i32_1 : i32, i32, i32
  }
  func.func @transform_6(%arg0: i32) -> (i32, i32, i32) {
    %c0_i32 = arith.constant 0 : i32
    %c0_i32_0 = arith.constant 0 : i32
    %c0_i32_1 = arith.constant 0 : i32
    %c0_i32_2 = arith.constant 0 : i32
    return %c0_i32, %c0_i32_0, %c0_i32_1 : i32, i32, i32
  }
  func.func @transform_7(%arg0: i32) -> (i32, i32) {
    %c0_i32 = arith.constant 0 : i32
    %c0_i32_0 = arith.constant 0 : i32
    %c0_i32_1 = arith.constant 0 : i32
    return %c0_i32, %c0_i32_0 : i32, i32
  }
  func.func @transform_8(%arg0: i32) -> (i32, i32) {
    %c0_i32 = arith.constant 0 : i32
    %c0_i32_0 = arith.constant 0 : i32
    %c0_i32_1 = arith.constant 0 : i32
    return %c0_i32, %c0_i32_0 : i32, i32
  }
  func.func @transform_9(%arg0: i32) -> (i32, i32) {
    %c0_i32 = arith.constant 0 : i32
    %c0_i32_0 = arith.constant 0 : i32
    %c0_i32_1 = arith.constant 0 : i32
    return %c0_i32, %c0_i32_0 : i32, i32
  }
  func.func @transform_10(%arg0: i32) -> (i32, i32) {
    %c0_i32 = arith.constant 0 : i32
    %c0_i32_0 = arith.constant 0 : i32
    %c0_i32_1 = arith.constant 0 : i32
    return %c0_i32, %c0_i32_0 : i32, i32
  }
  func.func @transform_11(%arg0: i32) -> (i32, i32, i32) {
    %c0_i32 = arith.constant 0 : i32
    %c0_i32_0 = arith.constant 0 : i32
    %c0_i32_1 = arith.constant 0 : i32
    return %arg0, %c0_i32, %c0_i32_0 : i32, i32, i32
  }
}

</mosaic_0001>

<bundles_post_ra>
// kernel: tpu_custom_call.1
= control target key start
LH: loop header
LB: loop body
LE: loop exit
PB: predicated region body
PF: predicated region fallthrough
CT: control target
= control target key end

     0   :  { %s4318_s0 = inlined_call_operand.vmem [shape: f32[4,16,8], index: 0, kind: input, shape index: {}]   ;;  %s4319_s1 = inlined_call_operand.vmem [shape: bf16[3,8,16], index: 1, kind: input, shape index: {}]   ;;  %s4320_s2 = inlined_call_operand.vmem [shape: bf16[5,8,16], index: 2, kind: input, shape index: {}]   ;;  %s4321_s3 = inlined_call_operand.vmem [shape: f32[1,16], index: 3, kind: input, shape index: {}]   ;;  %s4322_s4 = inlined_call_operand.vmem [shape: f32[1,16], index: 4, kind: input, shape index: {}]   ;;  %s4323_s5 = inlined_call_operand.vmem [shape: bf16[3,32,16], index: 5, kind: input, shape index: {}]   ;;  %s4324_s6 = inlined_call_operand.vmem [shape: bf16[5,32,16], index: 6, kind: input, shape index: {}]   ;;  %s4325_s7 = inlined_call_operand.vmem [shape: f32[1,16], index: 7, kind: input, shape index: {}]   ;;  %s4326_s8 = inlined_call_operand.vmem [shape: f32[1,16], index: 8, kind: input, shape index: {}]   ;;  %s4327_s9 = inlined_call_operand.vmem [shape: bf16[8,32], index: 9, kind: input, shape index: {}]   ;;  %s4328_s10 = inlined_call_operand.vmem [shape: f32[1,32], index: 10, kind: input, shape index: {}]   ;;  %s4329_s11 = inlined_call_operand.hbm [shape: f32[4,16,32], index: 11, kind: output, shape index: {}]  }
   0x1   :  { %4330 = sst [smem:[#allocation7_spill]] %s4318_s0 }
   0x2   :  { %16 = vsyncpa [#allocation5], 0 }
   0x3   :  { %18 = vsyncpa [#allocation5 + $0x1], 0  ;;  %s3717_s17 = smov 0   ;;  %s3719_s18 = smov 0  }
   0x4   :  { %s3721_s19 = smov 0   ;;  %s3723_s20 = smov 0  }
   0x5 LB: > { %s3738_s21 = sadd.s32 4294967295, %s3649_s20   ;;  %s2919_s22 = sadd.s32 4294967294, %s3649_s20   ;;  %s3649_s20 = sphi %s3723_s20, %s4337_s20   ;;  %s3645_s19 = sphi %s3721_s19, %s4336_s19   ;;  %s3641_s18 = sphi %s3719_s18, %s4335_s18   ;;  %s3637_s17 = sphi %s3717_s17, %s4334_s17  }
   0x6   : > { %s3742_s23 = sadd.s32 1, %s3649_s20   ;;  %s267_s24 = sadd.s32 1, %s3645_s19 }
   0x7   : > { %s264_s25 = ssub.s32 %s3649_s20, %s3742_s23  ;;  %p277_p0 = scmp.ne.s32.totalorder %s3645_s19, %s3641_s18 }
   0x8   : > { %p265_p1 = scmp.eq.s32.totalorder %s264_s25, 0  ;;  %p278_p2 = scmp.eq.s32.totalorder %s3738_s21, 1 }
   0x9   : > { %p283_p3 = scmp.ne.s32.totalorder %s3641_s18, %s3637_s17  ;;  %p284_p4 = scmp.eq.s32.totalorder %s2919_s22, 1 }
   0xa   : > { %s3753_s26 = scalar_select %p265_p1, %s3645_s19, %s267_s24  }
   0xb   : > { %p3755_p5 = por %p278_p2, %p277_p0  ;;  %p3759_p6 = por %p284_p4, %p283_p3 }
   0xc   : > { %p2922_p7 = scmp.ge.s32.totalorder %s3649_s20, 1  ;;  %p342_p8 = scmp.lt.s32.totalorder %s3649_s20, 3 }
   0xe   : > { %p343_p9 = pnand %p2922_p7, %p342_p8 }
   0xf   : > { %s2924_s12 = sshll.u32 (!%p343_p9), %s3738_s21, 1  ;;  %s4333_s0 = sld [smem:[#allocation7_spill]] (!%p343_p9) }
  0x10   : > { %346 = sbr.rel (%p343_p9) target bundleno = 839 (0x347), region = 64  ;;  %p384_p10 = scmp.lt.s32.totalorder (!%p343_p9), %s2924_s12, 3 }
  0x11   : > { %s3652_s14 = smov (!%p343_p9), 16   ;;  %s3653_s24 = smov (!%p343_p9), 112  }
  0x12   : > { %s380_s29 = sand.u32 (!%p343_p9), 1, %s3641_s18   ;;  %s3158_s16 = sshll.u32 (!%p343_p9), %s3738_s21, 9 }
  0x13   : > { %s2923_s30 = sshll.u32 (!%p343_p9), %s380_s29, 5  ;;  %s3654_s21 = smov (!%p343_p9), [#allocation4]  }
  0x15   : > { %v2933_v0 = vld [vmem:[%s4319_s1 + $0x4] sm:$0xf]  ;;  %vm480_vm0 = vcmask 1043456   ;;  %vm392_vm1 = vcmask 60416   ;;  %v3651_v2 = vmov 0   ;;  %s4339_s12 = smov (!%p384_p10, %s2924_s12), 3 }
  0x16   : > { %3453 = vmatprep.subr.msk.bf16.mxu0 %vm480_vm0, %v2933_v0  ;;  %v482_v1 = vsel %vm480_vm0, %v2933_v0, 0  ;;  %394 = vst.msk [vmem:[#allocation2 + $0x4] sm:$0xf] %vm392_vm1, %v3651_v2  ;;  %398 = vst.msk [vmem:[#allocation2 + $0x10] sm:$0xf] %vm392_vm1, %v3651_v2  ;;  %s3144_s25 = sshll.u32 %s4339_s12, 4 }
  0x17   : > { %399 = vst.msk [vmem:[#allocation2 + $0x14] sm:$0xf] %vm392_vm1, %v3651_v2  ;;  %402 = vst.msk [vmem:[#allocation2 + $0x18] sm:$0xf] %vm392_vm1, %v3651_v2  ;;  %v444_v3 = vld [vmem:[%s4319_s1] sm:$0xf]  ;;  %3258 = vmatpush3.bf16.msra.mxu0 %v482_v1  ;;  %s388_s13 = scalar_lea.vmem %s4333_s0, %s3144_s25 }
  0x18   : > { %403 = vst.msk [vmem:[#allocation2 + $0x1c] sm:$0xf] %vm392_vm1, %v3651_v2  ;;  %406 = vst.msk [vmem:[#allocation2 + $0x28] sm:$0xf] %vm392_vm1, %v3651_v2  ;;  %3454 = vmatprep.subr.msk.bf16.mxu1 %vm480_vm0, %v444_v3  ;;  %v610_v4 = vsel %vm480_vm0, %v444_v3, 0  ;;  %v410_v7 = vld [vmem:[%s388_s13] sm:$0xff] }
  0x19   : > { %v2951_v5 = vld [vmem:[%s4319_s1 + $0x8] sm:$0xf]  ;;  %3268 = vmatpush3.bf16.msra.mxu1 %v610_v4  ;;  %v2966_v6 = vld [vmem:[%s4320_s2 + $0x4] sm:$0xf]  ;;  %v2929_v9 = vld [vmem:[%s388_s13 + $0x10] sm:$0xff]  ;;  %v3145_v10 = vpack.c.bf16 %v410_v7, %v410_v7  ;;  %vm467_vm2 = vcmask 64512  }
  0x1a   : > { %3455 = vmatprep.subr.msk.bf16.mxu0 %vm480_vm0, %v2951_v5  ;;  %3456 = vmatprep.subr.msk.bf16.mxu1 %vm480_vm0, %v2966_v6  ;;  %v411_v8 = vld [vmem:[%s388_s13 + $0x8] sm:$0xff]  ;;  %v3147_v13 = vpack.c.bf16 %v2929_v9, %v2929_v9  ;;  %v2930_v15 = vld [vmem:[%s388_s13 + $0x18] sm:$0xff]  ;;  %v3804_v16 = vld [vmem:[%s4320_s2] sm:$0xf]  ;;  %v757_v23 = vsel %vm480_vm0, %v2951_v5, 0  ;;  %v3817_v26 = vsel %vm480_vm0, %v2966_v6, 0 }
  0x1b   : > { %v3146_v11 = vpack.c.bf16 %v411_v8, %v411_v8  ;;  %420 = vst.msk [vmem:[#allocation2 + $0x8] sm:$0xf] %vm392_vm1, %v3145_v10  ;;  %v3148_v18 = vpack.c.bf16 %v2930_v15, %v2930_v15  ;;  %v3821_v27 = vsel %vm480_vm0, %v3804_v16, 0  ;;  %vm552_vm3 = vsmask.f32 4352  ;;  %s4245_s13 = scalar_lea.vmem [#allocation4], %s2923_s30  ;;  %s4271_s30 = scalar_lea.hbm %s4329_s11, %s3158_s16 }
  0x1c   : > { %433 = vst.msk [vmem:[#allocation2 + $0x20] sm:$0xf] %vm392_vm1, %v3147_v13  ;;  %vm707_vm4 = vsmask.f32 7424  ;;  %vm1019_vm5 = vcmask 1044480   ;;  %vm1347_vm6 = vcmask 1046528  }
  0x1d   : > { %421 = vst.msk [vmem:[#allocation2 + $0xc] sm:$0xf] %vm392_vm1, %v3146_v11  ;;  %434 = vst.msk [vmem:[#allocation2 + $0x24] sm:$0xf] %vm392_vm1, %v3148_v18  ;;  %v435_v24 = vld [vmem:[#allocation2 + $0x4] sm:$0x8] }
  0x1e   : > { %v439_v12 = vld [vmem:[#allocation2 + $0x14] sm:$0xf]  ;;  %v3799_v14 = vld [vmem:[#allocation2 + $0x18] sm:$0xf]  ;;  %v438_v25 = vld [vmem:[#allocation2 + $0x10] sm:$0xf] }
  0x1f   : > { %v2944_v17 = vcombine.low %v439_v12, %v3799_v14  ;;  %v3810_v19 = vld [vmem:[#allocation2 + $0x10] sm:$0xff]   ;;  %v3812_v20 = vld [vmem:[#allocation2 + $0x18] sm:$0xff]   ;;  %v2935_v39 = vcombine.low %v438_v25, %v439_v12  ;;  %v860_v56 = vld [vmem:[#allocation2 + $0x4] sm:$0x8]  ;;  %vm848_vm7 = vcmask 125952   ;;  %vm395_vm8 = vcmask 257024  }
  0x20   : > { %v441_v28 = vld [vmem:[#allocation2 + $0x1c] sm:$0xf]  ;;  %v716_v29 = vshll.u32 %v3810_v19, 16  ;;  %v720_v30 = vshrl.u32 %v3810_v19, 16  ;;  %v3825_v31 = vld [vmem:[#allocation2 + $0x14] sm:$0xf] }
  0x21   : > { %v571_v21 = vshrl.u32 %v2944_v17, 16  ;;  %v574_v22 = vshll.u32 %v2944_v17, 16  ;;  %v724_v34 = vshll.u32 %v3812_v20, 16  ;;  %v728_v35 = vshrl.u32 %v3812_v20, 16  ;;  %v3829_v36 = vld [vmem:[#allocation2 + $0x18] sm:$0xf] }
  0x22   : > { %v436_v37 = vld [vmem:[#allocation2 + $0x8] sm:$0xf]  ;;  %v2936_v40 = vcombine.low %v3799_v14, %v441_v28  ;;  %v3835_v49 = vrot.slane %v716_v29, 1  ;;  %v3841_v51 = vcombine.low %v3825_v31, %v3829_v36  ;;  %v3846_v61 = vld [vmem:[#allocation2 + $0x10] sm:$0xf]  ;;  %vm1465_vm9 = vcmask 257152  }
  0x23   : > { %v573_v32 = vrot.slane %v571_v21, 3  ;;  %v576_v33 = vrot.slane %v574_v22, 4  ;;  %v3832_v41 = vld [vmem:[#allocation2 + $0x20] sm:$0xf]  ;;  %v2942_v43 = vcombine.low %v435_v24, %v436_v37  ;;  %v3837_v50 = vrot.slane %v724_v34, 1  ;;  %s2857_s22 = sshll.u32 %s4245_s13, 4  ;;  %s4273_s22 = int_to_ptr.vmem [resolvable:$true] %s2857_s22 }
  0x24   : > { %v437_v38 = vld [vmem:[#allocation2 + $0xc] sm:$0xf]  ;;  %v2945_v45 = vcombine.low %v441_v28, %v3832_v41  ;;  %v443_v47 = vld [vmem:[#allocation2 + $0x24] sm:$0xf]  ;;  %v3849_v3 = vld [vmem:[#allocation2 + $0x8] sm:$0xf]  ;;  %v722_v28 = vor.u32 %v720_v30, %v3835_v49 }
  0x25   : > { %v2934_v42 = vcombine.low %v436_v37, %v437_v38  ;;  %v2943_v44 = vcombine.low %v437_v38, %v438_v25  ;;  %v577_v46 = vor.u32 %v576_v33, %v573_v32  ;;  %v3514_v48 = vld [vmem:[#allocation2 + $0x8] sm:$0xff]   ;;  %v554_v52 = vshrl.u32 %v2942_v43, 16  ;;  %v3855_v13 = vld [vmem:[#allocation2 + $0x20] sm:$0xff]   ;;  %v3878_v33 = vld [vmem:[#allocation2 + $0x1c] sm:$0xf]  ;;  %s3589_s15 = scalar_lea.vmem %s4273_s22, 512 }
  0x26   : > { %v557_v53 = vshll.u32 %v2942_v43, 16  ;;  %v2937_v57 = vcombine.low %v3832_v41, %v443_v47  ;;  %v2946_v58 = vcombine.low %v443_v47, %v443_v47  ;;  %v580_v59 = vshrl.u32 %v2945_v45, 16  ;;  %v3853_v8 = vld [vmem:[#allocation2 + $0xc] sm:$0xf]  ;;  %v3869_v24 = vld [vmem:[%s4320_s2 + $0x8] sm:$0xf]  ;;  %p3590_p11 = scmp.ne.s32.totalorder %s4273_s22, %s3589_s15 }
  0x27   : > { %3259 = vmatprep.mubr.msk.bf16.mxu0 %vm467_vm2, %v2934_v42  ;;  %v562_v54 = vshrl.u32 %v2943_v44, 16  ;;  %v565_v55 = vshll.u32 %v2943_v44, 16  ;;  %v583_v60 = vshll.u32 %v2945_v45, 16  ;;  %v556_v62 = vrot.slane %v554_v52, 3  ;;  %v3880_v34 = vld [vmem:[#allocation2 + $0x20] sm:$0xf] }
  0x28   : > { %3260 = vmatmul.mubr.msk.bf16.vlgmr.msra.gmra.mxu0 %vm467_vm2, %v2935_v39  ;;  %v559_v63 = vrot.slane %v557_v53, 4  ;;  %v582_v4 = vrot.slane %v580_v59, 3  ;;  %v589_v6 = vshrl.u32 %v2946_v58, 16  ;;  %v592_v7 = vshll.u32 %v2946_v58, 16  ;;  %v3894_v47 = vld [vmem:[#allocation2 + $0x24] sm:$0xf]  ;;  %p3591_p12 = pnand %p3590_p11, %p3755_p5 }
  0x29   : > { %v564_v0 = vrot.slane %v562_v54, 3  ;;  %v567_v1 = vrot.slane %v565_v55, 4  ;;  %3278 = vmatpush3.bf16.msra.mxu0 %v757_v23  ;;  %3263 = vmatprep.mubr.msk.bf16.mxu0 %vm467_vm2, %v2936_v40  ;;  %v585_v5 = vrot.slane %v583_v60, 4  ;;  %v709_v11 = vshrl.u32 %v3514_v48, 16  ;;  %397 = vst.msk [vmem:[#allocation3 + $0x4] sm:$0xf] %vm395_vm8, %v3651_v2 }
  0x2a   : > { %3457 = vmatprep.subr.msk.bf16.mxu0 %vm480_vm0, %v3804_v16  ;;  %v560_v9 = vor.u32 %v559_v63, %v556_v62  ;;  %v711_v12 = vshll.u32 %v3514_v48, 16  ;;  %v591_v15 = vrot.slane %v589_v6, 3  ;;  %v594_v17 = vrot.slane %v592_v7, 4  ;;  %v3522_v41 = vld [vmem:[#allocation2 + $0x28] ss:$0 sps:$4 sm:$0x11]   ;;  %p3592_p13 = pneg %p3591_p12 }
  0x2b   : > { %v568_v10 = vor.u32 %v567_v1, %v564_v0  ;;  %v586_v14 = vor.u32 %v585_v5, %v582_v4  ;;  %v3858_v18 = vcombine.low %v860_v56, %v3849_v3  ;;  %v3864_v16 = vcombine.low %v3853_v8, %v3846_v61  ;;  %v2990_v0 = vld [vmem:[%s4320_s2 + $0xc] sm:$0xf]  ;;  %v1191_v1 = vld [vmem:[#allocation2 + $0x8] sm:$0xf]  ;;  %400 = vst.msk [vmem:[#allocation3 + $0x10] sm:$0xf] %vm395_vm8, %v3651_v2 }
  0x2c   : > { %v713_v23 = vrot.slane %v711_v12, 1  ;;  %v732_v40 = vshll.u32 %v3855_v13, 16  ;;  %v595_v19 = vor.u32 %v594_v17, %v591_v15  ;;  %v914_v43 = vshrl.u32 %v3841_v51, 16  ;;  %v3919_v6 = vld [vmem:[#allocation2 + $0xc] sm:$0xf]  ;;  %s3593_s12 = sshll.u32 %s3654_s21, 4  ;;  %s3594_s12 = int_to_ptr.vmem [resolvable:$false] %s3593_s12 }
  0x2d   : > { %v569_v21 = vsel %vm552_vm3, %v560_v9, %v568_v10  ;;  %v578_v22 = vsel %vm552_vm3, %v568_v10, %v577_v46  ;;  %v587_v25 = vsel %vm552_vm3, %v577_v46, %v586_v14  ;;  %v897_v29 = vshrl.u32 %v3858_v18, 16  ;;  %401 = vst.msk [vmem:[#allocation3 + $0x14] sm:$0xf] %vm395_vm8, %v3651_v2  ;;  %404 = vst.msk [vmem:[#allocation3 + $0x18] sm:$0xf] %vm395_vm8, %v3651_v2  ;;  %s3595_s16 = scalar_lea.vmem %s3594_s12, 1024  ;;  %p3596_p0 = scmp.lt.s32.totalorder %s4273_s22, %s3594_s12 }
  0x2e   : > { %3269 = vmatprep.mubr.msk.bf16.mxu1 %vm467_vm2, %v569_v21  ;;  %v900_v32 = vshll.u32 %v3858_v18, 16  ;;  %v714_v37 = vor.u32 %v713_v23, %v709_v11  ;;  %v905_v38 = vshrl.u32 %v3864_v16, 16  ;;  %v908_v39 = vshll.u32 %v3864_v16, 16  ;;  %405 = vst.msk [vmem:[#allocation3 + $0x1c] sm:$0xf] %vm395_vm8, %v3651_v2  ;;  %p3597_p1 = scmp.lt.s32.totalorder %s3595_s16, %s3589_s15 }
  0x2f   : > { %3270 = vmatmul.mubr.msk.bf16.vlgmr.msra.gmra.mxu1 %vm467_vm2, %v578_v22  ;;  %v899_v30 = vrot.slane %v897_v29, 3  ;;  %v730_v48 = vor.u32 %v728_v35, %v3837_v50  ;;  %v734_v52 = vrot.slane %v732_v40, 1  ;;  %v917_v53 = vshll.u32 %v3841_v51, 16  ;;  %v3933_v29 = vld [vmem:[#allocation2 + $0x10] sm:$0xff]   ;;  %408 = vst.msk [vmem:[#allocation3 + $0x28] sm:$0xf] %vm395_vm8, %v3651_v2 }
  0x30   : > { %3288 = vmatpush3.bf16.msra.mxu1 %v3817_v26  ;;  %3264 = vmatmul.mubr.msk.bf16.gmra.mxu0 %vm467_vm2, %v2937_v57  ;;  %v902_v42 = vrot.slane %v900_v32, 4  ;;  %v719_v44 = vsel %vm707_vm4, %v714_v37, %v3835_v49  ;;  %v907_v45 = vrot.slane %v905_v38, 3  ;;  %v910_v46 = vrot.slane %v908_v39, 4  ;;  %p3598_p2 = por %p3597_p1, %p3596_p0 }
  0x31   : > { %3273 = vmatprep.mubr.msk.bf16.mxu1 %vm467_vm2, %v587_v25  ;;  %3458 = vmatprep.subr.msk.bf16.mxu1 %vm480_vm0, %v3869_v24  ;;  %v727_v49 = vsel %vm707_vm4, %v722_v28, %v3837_v50  ;;  %v916_v55 = vrot.slane %v914_v43, 3  ;;  %v3905_v56 = vcombine.low %v3878_v33, %v3880_v34  ;;  %v596_v57 = vsel %vm552_vm3, %v586_v14, %v595_v19  ;;  %v3526_v28 = vld [vmem:[#allocation2 + $0x24] ss:$0 sps:$4 sm:$0x77]  }
  0x32   : > { %3279 = vmatprep.mubr.msk.bf16.mxu0 %vm467_vm2, %v719_v44  ;;  %v903_v26 = vor.u32 %v902_v42, %v899_v30  ;;  %v911_v54 = vor.u32 %v910_v46, %v907_v45  ;;  %v919_v58 = vrot.slane %v917_v53, 4  ;;  %v736_v59 = vshrl.u32 %v3855_v13, 16  ;;  %v3531_v46 = vld [vmem:[#allocation2 + $0x18] sm:$0xff]   ;;  %v3533_v53 = vld [vmem:[#allocation2 + $0x20] sm:$0xff]   ;;  %p3599_p3 = pnand %p3598_p2, %p3592_p13 }
  0x33   : > { %v2971_v20 = vcombine.low %v3894_v47, %v3894_v47  ;;  %v740_v60 = vshll.u32 %v3522_v41, 16  ;;  %v923_v62 = vshrl.u32 %v3905_v56, 16  ;;  %v926_v50 = vshll.u32 %v3905_v56, 16 }
  0x34   : > { %v912_v35 = vsel %vm552_vm3, %v903_v26, %v911_v54  ;;  %v735_v63 = vsel %vm707_vm4, %v730_v48, %v734_v52  ;;  %v920_v7 = vor.u32 %v919_v58, %v916_v55  ;;  %v738_v11 = vor.u32 %v736_v59, %v734_v52  ;;  %v1341_v52 = vld [vmem:[#allocation2 + $0x8] sm:$0xe] }
  0x35   : > { %v925_v4 = vrot.slane %v923_v62, 3  ;;  %v928_v5 = vrot.slane %v926_v50, 4  ;;  %v932_v9 = vshrl.u32 %v2971_v20, 16  ;;  %v935_v10 = vshll.u32 %v2971_v20, 16 }
  0x36   : > { %v742_v12 = vrot.slane %v740_v60, 1  ;;  %v1020_v14 = vrot.slane %v3858_v18, 3  ;;  %v1021_v15 = vrot.slane %v3864_v16, 3  ;;  %v2991_v17 = vcombine.low %v1191_v1, %v3919_v6 }
  0x37   : > { %3274 = vmatmul.mubr.msk.bf16.gmra.mxu1 %vm467_vm2, %v596_v57  ;;  %v929_v13 = vor.u32 %v928_v5, %v925_v4  ;;  %v1124_v21 = vsel %vm480_vm0, %v3869_v24, 0  ;;  %v921_v22 = vsel %vm552_vm3, %v911_v54, %v920_v7  ;;  %v937_v23 = vrot.slane %v935_v10, 4  ;;  %v3000_v24 = vld [vmem:[%s4320_s2 + $0x10] sm:$0xf] }
  0x38   : > { %3280 = vmatmul.mubr.msk.bf16.vlgmr.msra.gmra.mxu0 %vm467_vm2, %v727_v49  ;;  %3289 = vmatprep.mubr.msk.bf16.mxu1 %vm467_vm2, %v912_v35  ;;  %v743_v25 = vsel %vm707_vm4, %v738_v11, %v742_v12  ;;  %v1022_v16 = vsel %vm1019_vm5, %v1020_v14, %v1021_v15  ;;  %v1228_v32 = vshll.u32 %v2991_v17, 16  ;;  %v1274_v37 = vsel %vm480_vm0, %v2990_v0, 0  ;;  %v3534_v35 = vld [vmem:[#allocation2 + $0x28] ss:$0 sps:$4 sm:$0x11]  }
  0x39   : > { %3298 = vmatpush3.bf16.msra.mxu0 %v3821_v27  ;;  %3283 = vmatprep.mubr.msk.bf16.mxu0 %vm467_vm2, %v735_v63  ;;  %v934_v27 = vrot.slane %v932_v9, 3  ;;  %v930_v18 = vsel %vm552_vm3, %v920_v7, %v929_v13  ;;  %v1023_v39 = vrot.slane %v3841_v51, 3  ;;  %v1025_v40 = vrot.slane %v3905_v56, 3 }
  0x3a   : > { %3459 = vmatprep.subr.msk.bf16.mxu0 %vm480_vm0, %v2990_v0  ;;  %v1027_v41 = vrot.slane %v3526_v28, 3  ;;  %v1233_v19 = vshll.u32 %v3933_v29, 16  ;;  %v1226_v30 = vshrl.u32 %v2991_v17, 16  ;;  %v1230_v42 = vrot.slane %v1228_v32, 1 }
  0x3b   : > { %v938_v38 = vor.u32 %v937_v23, %v934_v27  ;;  %v2982_v44 = vcombine.low %v3849_v3, %v3853_v8  ;;  %v1024_v51 = vsel %vm1019_vm5, %v1021_v15, %v1023_v39  ;;  %v1026_v45 = vsel %vm1019_vm5, %v1023_v39, %v1025_v40 }
  0x3c   : > { %v1231_v26 = vor.u32 %v1230_v42, %v1226_v30  ;;  %v1235_v48 = vrot.slane %v1233_v19, 1  ;;  %v2983_v3 = vcombine.low %v3846_v61, %v3825_v31  ;;  %v1370_v8 = vsel %vm480_vm0, %v3000_v24, 0 }
  0x3d   : > { %v939_v43 = vsel %vm552_vm3, %v929_v13, %v938_v38  ;;  %v1241_v49 = vshll.u32 %v3531_v46, 16  ;;  %v1028_v54 = vsel %vm1019_vm5, %v1025_v40, %v1027_v41  ;;  %v2984_v55 = vcombine.low %v3829_v36, %v3878_v33  ;;  %v2961_v40 = vld [vmem:[%s4321_s3] ss:$0 sm:$0xff] }
  0x3e   : > { %v1237_v56 = vshrl.u32 %v3933_v29, 16  ;;  %v3001_v57 = vcombine.low %v1341_v52, %v3919_v6  ;;  %v1236_v58 = vsel %vm707_vm4, %v1231_v26, %v1235_v48  ;;  %v1245_v59 = vshrl.u32 %v3531_v46, 16 }
  0x3f   : > { %3290 = vmatmul.mubr.msk.bf16.vlgmr.msra.gmra.mxu1 %vm467_vm2, %v921_v22  ;;  %v1249_v20 = vshll.u32 %v3533_v53, 16  ;;  %v1243_v31 = vrot.slane %v1241_v49, 1  ;;  %v1349_v33 = vrot.slane %v3933_v29, 1  ;;  %v2985_v50 = vcombine.low %v3880_v34, %v3894_v47 }
  0x40   : > { %3308 = vmatpush3.bf16.msra.mxu1 %v1124_v21  ;;  %3284 = vmatmul.mubr.msk.bf16.gmra.mxu0 %vm467_vm2, %v743_v25  ;;  %v1239_v61 = vor.u32 %v1237_v56, %v1235_v48  ;;  %v1348_v36 = vrot.slane %v3001_v57, 1  ;;  %v1253_v1 = vshrl.u32 %v3533_v53, 16  ;;  %v1257_v4 = vshll.u32 %v3534_v35, 16 }
  0x41   : > { %3293 = vmatprep.mubr.msk.bf16.mxu1 %vm467_vm2, %v930_v18  ;;  %3299 = vmatprep.mubr.msk.bf16.mxu0 %vm467_vm2, %v1022_v16  ;;  %v1247_v60 = vor.u32 %v1245_v59, %v1243_v31  ;;  %v1251_v62 = vrot.slane %v1249_v20, 1  ;;  %v1351_v6 = vrot.slane %v3531_v46, 1  ;;  %v1353_v34 = vrot.slane %v3533_v53, 1 }
  0x42   : > { %3460 = vmatprep.subr.msk.bf16.mxu1 %vm480_vm0, %v3000_v24  ;;  %v1244_v63 = vsel %vm707_vm4, %v1239_v61, %v1243_v31  ;;  %v1350_v0 = vsel %vm1347_vm6, %v1348_v36, %v1349_v33  ;;  %v1259_v9 = vrot.slane %v1257_v4, 1  ;;  %v1355_v12 = vrot.slane %v3534_v35, 1 }
  0x43   : > { %v1252_v5 = vsel %vm707_vm4, %v1247_v60, %v1251_v62  ;;  %v1255_v7 = vor.u32 %v1253_v1, %v1251_v62  ;;  %v1352_v47 = vsel %vm1347_vm6, %v1349_v33, %v1351_v6  ;;  %v1354_v11 = vsel %vm1347_vm6, %v1351_v6, %v1353_v34 }
  0x44   : > { %v1356_v13 = vsel %vm1347_vm6, %v1353_v34, %v1355_v12  ;;  %vm1531_vm10 = vcmask 261120   ;;  %vm2038_vm11 = vcmask 130048   ;;  %vm2829_vm12 = vcmask 261248  }
  0x45   : > { %v1260_v10 = vsel %vm707_vm4, %v1255_v7, %v1259_v9 }
  0x47   : > { %3294 = vmatmul.mubr.msk.bf16.gmra.mxu1 %vm467_vm2, %v939_v43 }
  0x48   : > { %3300 = vmatmul.mubr.msk.bf16.vlgmr.msra.gmra.mxu0 %vm467_vm2, %v1024_v51  ;;  %3309 = vmatprep.mubr.msk.bf16.mxu1 %vm467_vm2, %v2982_v44 }
  0x49   : > { %3318 = vmatpush3.bf16.msra.mxu0 %v1274_v37  ;;  %3303 = vmatprep.mubr.msk.bf16.mxu0 %vm467_vm2, %v1026_v45 }
  0x4f   : > { %3310 = vmatmul.mubr.msk.bf16.vlgmr.msra.gmra.mxu1 %vm467_vm2, %v2983_v3 }
  0x50   : > { %3328 = vmatpush3.bf16.msra.mxu1 %v1370_v8  ;;  %3304 = vmatmul.mubr.msk.bf16.gmra.mxu0 %vm467_vm2, %v1028_v54 }
  0x51   : > { %3313 = vmatprep.mubr.msk.bf16.mxu1 %vm467_vm2, %v2984_v55  ;;  %3319 = vmatprep.mubr.msk.bf16.mxu0 %vm467_vm2, %v1236_v58 }
  0x57   : > { %3314 = vmatmul.mubr.msk.bf16.gmra.mxu1 %vm467_vm2, %v2985_v50 }
  0x58   : > { %3320 = vmatmul.mubr.msk.bf16.vlgmr.msra.gmra.mxu0 %vm467_vm2, %v1244_v63  ;;  %3329 = vmatprep.mubr.msk.bf16.mxu1 %vm467_vm2, %v1350_v0 }
  0x59   : > { %3323 = vmatprep.mubr.msk.bf16.mxu0 %vm467_vm2, %v1252_v5 }
  0x5f   : > { %3330 = vmatmul.mubr.msk.bf16.vlgmr.msra.gmra.mxu1 %vm467_vm2, %v1352_v47 }
  0x60   : > { %3324 = vmatmul.mubr.msk.bf16.gmra.mxu0 %vm467_vm2, %v1260_v10  ;;  %3333 = vmatprep.mubr.msk.bf16.mxu1 %vm467_vm2, %v1354_v11 }
  0x67   : > { %3334 = vmatmul.mubr.msk.bf16.gmra.mxu1 %vm467_vm2, %v1356_v13 }
  0xe8   : > { %v3261_v14 = vpop.f32.mrf.mxu0 }
  0xea   : > { %v518_v15 = vpop.f32.mrf.mxu0 }
  0xec   : > { %v3262_v17 = vpop.f32.mrf.mxu0 }
  0xee   : > { %v521_v21 = vpop.f32.mrf.mxu0 }
  0xef   : > { %v3271_v22 = vpop.f32.mrf.mxu1 }
  0xf0   : > { %v3265_v27 = vpop.f32.mrf.mxu0 }
  0xf1   : > { %v646_v23 = vpop.f32.mrf.mxu1 }
  0xf2   : > { %v532_v25 = vpop.f32.mrf.mxu0  ;;  %v647_v24 = vadd.f32 %v646_v23, %v518_v15 }
  0xf3   : > { %v3272_v28 = vpop.f32.mrf.mxu1 }
  0xf4   : > { %v3266_v29 = vpop.f32.mrf.mxu0 }
  0xf5   : > { %v649_v18 = vpop.f32.mrf.mxu1 }
  0xf6   : > { %v534_v16 = vpop.f32.mrf.mxu0  ;;  %v650_v42 = vadd.f32 %v649_v18, %v521_v21  ;;  %v3536_v18 = vld [vmem:[%s4323_s5 + $0x18] sm:$0xff]  }
  0xf7   : > { %v3275_v32 = vpop.f32.mrf.mxu1  ;;  %3337 = vmatprep.subr.bf16.mxu0 %v3536_v18 }
  0xf8   : > { %v3281_v37 = vpop.f32.mrf.mxu0  ;;  %v667_v45 = vadd.f32 %v3275_v32, %v3265_v27  ;;  %3338 = vmatpush3.bf16.msra.mxu0 %v3536_v18 }
  0xf9   : > { %v660_v38 = vpop.f32.mrf.mxu1 }
  0xfa   : > { %v793_v39 = vpop.f32.mrf.mxu0 }
  0xfb   : > { %v820_v41 = vadd.f32 %v793_v39, %v647_v24  ;;  %v3276_v19 = vpop.f32.mrf.mxu1 }
  0xfc   : > { %v3282_v30 = vpop.f32.mrf.mxu0  ;;  %v670_v55 = vadd.f32 %v3276_v19, %v3266_v29  ;;  %v3537_v19 = vld [vmem:[%s4323_s5 + $0x8] sm:$0xff]  }
  0xfd   : > { %v831_v43 = vadd.f32 %v2961_v40, %v820_v41  ;;  %v662_v44 = vpop.f32.mrf.mxu1  ;;  %v3006_v41 = vld [vmem:[%s4322_s4] ss:$0 sm:$0xff]  ;;  %3349 = vmatprep.subr.bf16.mxu1 %v3537_v19 }
  0xfe   : > { %v796_v51 = vpop.f32.mrf.mxu0  ;;  %3350 = vmatpush3.bf16.msra.mxu1 %v3537_v19 }
  0xff   : > { %v835_v46 = vmax.f32 %v831_v43, 0.0  ;;  %v821_v26 = vadd.f32 %v796_v51, %v650_v42  ;;  %v3291_v48 = vpop.f32.mrf.mxu1  ;;  %v3538_v51 = vld [vmem:[%s4323_s5 + $0x10] sm:$0xff]  }
 0x100   : > { %v3285_v52 = vpop.f32.mrf.mxu0  ;;  %3339 = vmatprep.subr.bf16.mxu0 %v3538_v51 }
 0x101   : > { %v3149_v53 = vpack.c.bf16 %v835_v46, %v835_v46  ;;  %v832_v3 = vadd.f32 %v2961_v40, %v821_v26  ;;  %v822_v8 = vadd.f32 %v3285_v52, %v667_v45  ;;  %v989_v49 = vpop.f32.mrf.mxu1  ;;  %3340 = vmatpush3.bf16.msra.mxu0 %v3538_v51 }
 0x102   : > { %v807_v54 = vpop.f32.mrf.mxu0 }
 0x103   : > { %v836_v56 = vmax.f32 %v832_v3, 0.0  ;;  %v833_v57 = vadd.f32 %v2961_v40, %v822_v8  ;;  %v3292_v58 = vpop.f32.mrf.mxu1  ;;  %849 = vst.msk [vmem:[#allocation3 + $0x8] sm:$0xf] %vm848_vm7, %v3149_v53 }
 0x104   : > { %v3286_v59 = vpop.f32.mrf.mxu0 }
 0x105   : > { %v3150_v20 = vpack.c.bf16 %v836_v56, %v836_v56  ;;  %v837_v31 = vmax.f32 %v833_v57, 0.0  ;;  %v823_v61 = vadd.f32 %v3286_v59, %v670_v55  ;;  %v992_v36 = vpop.f32.mrf.mxu1  ;;  %v3539_v56 = vld [vmem:[%s4323_s5] sm:$0xff]  }
 0x106   : > { %v809_v33 = vpop.f32.mrf.mxu0  ;;  %3351 = vmatprep.subr.bf16.mxu1 %v3539_v56 }
 0x107   : > { %v3151_v35 = vpack.c.bf16 %v837_v31, %v837_v31  ;;  %v834_v60 = vadd.f32 %v2961_v40, %v823_v61  ;;  %v3295_v62 = vpop.f32.mrf.mxu1  ;;  %850 = vst.msk [vmem:[#allocation3 + $0xc] sm:$0xf] %vm848_vm7, %v3150_v20  ;;  %3352 = vmatpush3.bf16.msra.mxu1 %v3539_v56 }
 0x108   : > { %v3301_v50 = vpop.f32.mrf.mxu0 }
 0x109   : > { %v838_v63 = vmax.f32 %v834_v60, 0.0  ;;  %v1003_v0 = vpop.f32.mrf.mxu1  ;;  %858 = vst.msk [vmem:[#allocation3 + $0x20] sm:$0xf] %vm848_vm7, %v3151_v35 }
 0x10a   : > { %v1078_v1 = vpop.f32.mrf.mxu0 }
 0x10b   : > { %v3152_v4 = vpack.c.bf16 %v838_v63, %v838_v63  ;;  %v3296_v5 = vpop.f32.mrf.mxu1  ;;  %v1079_v25 = vadd.f32 %v1078_v1, %v989_v49  ;;  %v4021_v63 = vld [vmem:[%s4323_s5 + $0x28] sm:$0xff]  }
 0x10c   : > { %v3302_v6 = vpop.f32.mrf.mxu0  ;;  %3361 = vmatprep.subr.bf16.mxu0 %v4021_v63 }
 0x10d   : > { %v1005_v7 = vpop.f32.mrf.mxu1  ;;  %859 = vst.msk [vmem:[#allocation3 + $0x24] sm:$0xf] %vm848_vm7, %v3152_v4 }
 0x10e   : > { %v1081_v9 = vpop.f32.mrf.mxu0 }
 0x10f   : > { %v3311_v34 = vpop.f32.mrf.mxu1  ;;  %v1082_v24 = vadd.f32 %v1081_v9, %v992_v36  ;;  %v4032_v9 = vld [vmem:[%s4327_s9] sm:$0xf] }
 0x110   : > { %v3305_v47 = vpop.f32.mrf.mxu0  ;;  %3461 = vmatprep.subr.msk.bf16.mxu1 %vm480_vm0, %v4032_v9  ;;  %v4040_v34 = vld [vmem:[%s4328_s10] ss:$0 sm:$0xff] }
 0x111   : > { %v1160_v10 = vpop.f32.mrf.mxu1  ;;  %v1099_v30 = vadd.f32 %v3305_v47, %v3295_v62 }
 0x112   : > { %v1092_v11 = vpop.f32.mrf.mxu0  ;;  %v1187_v16 = vadd.f32 %v1160_v10, %v1079_v25  ;;  %v1485_v10 = vld [vmem:[#allocation3 + $0x14] sm:$0xf] }
 0x113   : > { %v3312_v12 = vpop.f32.mrf.mxu1  ;;  %v1486_v11 = vld [vmem:[#allocation3 + $0x18] sm:$0xf] }
 0x114   : > { %v3306_v13 = vpop.f32.mrf.mxu0  ;;  %v3027_v12 = vcombine.low %v1485_v10, %v1486_v11 }
 0x115   : > { %v1163_v14 = vpop.f32.mrf.mxu1  ;;  %v1102_v53 = vadd.f32 %v3306_v13, %v3296_v5  ;;  %v3535_v5 = vld [vmem:[%s4327_s9] ss:$0 sps:$4 sm:$0xff]  }
 0x116   : > { %v1094_v15 = vpop.f32.mrf.mxu0  ;;  %v1188_v42 = vadd.f32 %v1163_v14, %v1082_v24  ;;  %v4049_v24 = vld [vmem:[#allocation3 + $0x18] sm:$0xff]  }
 0x117   : > { %v3315_v17 = vpop.f32.mrf.mxu1  ;;  %v1481_v15 = vld [vmem:[#allocation3 + $0x4] sm:$0x8] }
 0x118   : > { %v3321_v21 = vpop.f32.mrf.mxu0  ;;  %v1189_v45 = vadd.f32 %v3315_v17, %v1099_v30  ;;  %v1630_v17 = vshrl.u32 %v3027_v12, 16 }
 0x119   : > { %v1174_v22 = vpop.f32.mrf.mxu1  ;;  %v1633_v21 = vshll.u32 %v3027_v12, 16 }
 0x11a   : > { %v1310_v27 = vpop.f32.mrf.mxu0 }
 0x11b   : > { %v3316_v23 = vpop.f32.mrf.mxu1  ;;  %v1337_v38 = vadd.f32 %v1310_v27, %v1187_v16  ;;  %v4046_v27 = vld [vmem:[#allocation3 + $0x10] sm:$0xff]  }
 0x11c   : > { %v3322_v28 = vpop.f32.mrf.mxu0  ;;  %v1190_v57 = vadd.f32 %v3316_v23, %v1102_v53  ;;  %v1484_v23 = vld [vmem:[#allocation3 + $0x10] sm:$0xf] }
 0x11d   : > { %v1176_v29 = vpop.f32.mrf.mxu1 }
 0x11e   : > { %v1313_v32 = vpop.f32.mrf.mxu0  ;;  %v1487_v29 = vld [vmem:[#allocation3 + $0x1c] sm:$0xf] }
 0x11f   : > { %v3331_v37 = vpop.f32.mrf.mxu1  ;;  %v1338_v46 = vadd.f32 %v1313_v32, %v1188_v42  ;;  %v1632_v32 = vrot.slane %v1630_v17, 3  ;;  %v3017_v42 = vcombine.low %v1486_v11, %v1487_v29 }
 0x120   : > { %v3325_v39 = vpop.f32.mrf.mxu0  ;;  %v1635_v37 = vrot.slane %v1633_v21, 4 }
 0x121   : > { %v1406_v40 = vpop.f32.mrf.mxu1  ;;  %v1339_v3 = vadd.f32 %v3325_v39, %v1189_v45  ;;  %v3016_v39 = vcombine.low %v1484_v23, %v1485_v10  ;;  %v2044_v10 = vld [vmem:[#allocation3 + $0x4] sm:$0x8] }
 0x122   : > { %v1433_v2 = vadd.f32 %v1406_v40, %v1337_v38  ;;  %v1324_v43 = vpop.f32.mrf.mxu0 }
 0x123   : > { %v3332_v44 = vpop.f32.mrf.mxu1 }
 0x124   : > { %v3326_v26 = vpop.f32.mrf.mxu0  ;;  %v1444_v48 = vadd.f32 %v3006_v41, %v1433_v2  ;;  %v3551_v2 = vld [vmem:[%s4323_s5 + $0x20] sm:$0xff]  }
 0x125   : > { %v1409_v52 = vpop.f32.mrf.mxu1  ;;  %v1340_v61 = vadd.f32 %v3326_v26, %v1190_v57 }
 0x126   : > { %v1434_v8 = vadd.f32 %v1409_v52, %v1338_v46  ;;  %v1326_v49 = vpop.f32.mrf.mxu0  ;;  %v1448_v54 = vmax.f32 %v1444_v48, 0.0  ;;  %v1636_v52 = vor.u32 %v1635_v37, %v1632_v32  ;;  %v3555_v37 = vld [vmem:[#allocation2 + $0x8] sm:$0xff]  }
 0x127   : > { %v3335_v55 = vpop.f32.mrf.mxu1 }
 0x128   : > { %v1445_v58 = vadd.f32 %v3006_v41, %v1434_v8  ;;  %v1435_v59 = vadd.f32 %v3335_v55, %v1339_v3  ;;  %v3153_v20 = vpack.c.bf16 %v1448_v54, %v1448_v54  ;;  %v1794_v8 = vshll.u32 %v4049_v24, 16 }
 0x129   : > { %v1420_v31 = vpop.f32.mrf.mxu1 }
 0x12a   : > { %v1449_v36 = vmax.f32 %v1445_v58, 0.0  ;;  %1459 = vrot.lane.b32.xlu0 %v3153_v20, %s3652_s14  ;;  %v1446_v33 = vadd.f32 %v3006_v41, %v1435_v59  ;;  %v4063_v59 = vld [vmem:[%s4324_s6 + $0x18] sm:$0xff]  }
 0x12b   : > { %v3336_v35 = vpop.f32.mrf.mxu1 }
 0x12c   : > { %v3154_v60 = vpack.c.bf16 %v1449_v36, %v1449_v36  ;;  %v1436_v62 = vadd.f32 %v3336_v35, %v1340_v61  ;;  %v1450_v50 = vmax.f32 %v1446_v33, 0.0  ;;  %v1967_v33 = vsel %vm480_vm0, %v4032_v9, 0 }
 0x12d   : > { %v1422_v0 = vpop.f32.mrf.mxu1 }
 0x12e   : > { %v1447_v1 = vadd.f32 %v3006_v41, %v1436_v62  ;;  %1461 = vrot.lane.b32.xlu0 %v3154_v60, %s3652_s14  ;;  %v3155_v4 = vpack.c.bf16 %v1450_v50, %v1450_v50  ;;  %v1786_v41 = vshll.u32 %v4046_v27, 16  ;;  %v1790_v62 = vshrl.u32 %v4046_v27, 16 }
 0x130   : > { %v1451_v6 = vmax.f32 %v1447_v1, 0.0  ;;  %1473 = vrot.lane.b32.xlu1 %v3155_v4, %s3652_s14  ;;  %v1788_v3 = vrot.slane %v1786_v41, 1  ;;  %v4108_v41 = vld [vmem:[#allocation3 + $0x1c] sm:$0xf] }
 0x132   : > { %v3156_v7 = vpack.c.bf16 %v1451_v6, %v1451_v6  ;;  %2732 = vrot.lane.b32.xlu0 %v3535_v5, %s3653_s24 }
 0x134   : > { %1475 = vrot.lane.b32.xlu1 %v3156_v7, %s3652_s14 }
 0x138   : > { %2734 = vrot.lane.b32.xlu1 %v4040_v34, %s3653_s24 }
 0x19c   : > { %v1460_v47 = vpop.permute.xlu0 %1459 }
 0x19d   : > { %1466 = vst.msk [vmem:[#allocation3 + $0x8] sm:$0xf] %vm1465_vm9, %v1460_v47  ;;  %v4081_v47 = vld [vmem:[%s4324_s6 + $0x8] sm:$0xff]  }
 0x1a0   : > { %v1462_v13 = vpop.permute.xlu0 %1461 }
 0x1a1   : > { %1467 = vst.msk [vmem:[#allocation3 + $0xc] sm:$0xf] %vm1465_vm9, %v1462_v13  ;;  %v1796_v13 = vrot.slane %v1794_v8, 1  ;;  %v3568_v8 = vld [vmem:[%s4324_s6 + $0x28] sm:$0xff]  }
 0x1a2   : > { %v1474_v14 = vpop.permute.xlu1 %1473 }
 0x1a3   : > { %1479 = vst.msk [vmem:[#allocation3 + $0x20] sm:$0xf] %vm1465_vm9, %v1474_v14  ;;  %v1798_v14 = vshrl.u32 %v4049_v24, 16  ;;  %v4103_v24 = vld [vmem:[#allocation3 + $0x18] sm:$0xf] }
 0x1a4   : > { %v1482_v22 = vld [vmem:[#allocation3 + $0x8] sm:$0xf] }
 0x1a5   : > { %v3025_v25 = vcombine.low %v1481_v15, %v1482_v22  ;;  %v4085_v15 = vld [vmem:[#allocation3 + $0x8] sm:$0xf] }
 0x1a6   : > { %v1476_v28 = vpop.permute.xlu1 %1475 }
 0x1a7   : > { %1480 = vst.msk [vmem:[#allocation3 + $0x24] sm:$0xf] %vm1465_vm9, %v1476_v28  ;;  %v1613_v18 = vshrl.u32 %v3025_v25, 16  ;;  %v1616_v16 = vshll.u32 %v3025_v25, 16  ;;  %v4099_v28 = vcombine.low %v2044_v10, %v4085_v15 }
 0x1a8   : > { %v1483_v38 = vld [vmem:[#allocation3 + $0xc] sm:$0xf] }
 0x1a9   : > { %v3549_v40 = vld [vmem:[#allocation3 + $0x8] sm:$0xff]   ;;  %v3015_v19 = vcombine.low %v1482_v22, %v1483_v38  ;;  %v3026_v30 = vcombine.low %v1483_v38, %v1484_v23  ;;  %v1615_v43 = vrot.slane %v1613_v18, 3  ;;  %v1618_v45 = vrot.slane %v1616_v16, 4  ;;  %v4101_v18 = vld [vmem:[#allocation3 + $0x14] sm:$0xf] }
 0x1aa   : > { %v1488_v44 = vld [vmem:[#allocation3 + $0x20] sm:$0xf]  ;;  %v1781_v51 = vshll.u32 %v3549_v40, 16  ;;  %v1779_v58 = vshrl.u32 %v3549_v40, 16  ;;  %v4074_v6 = vld [vmem:[#allocation3 + $0xc] sm:$0xf]  ;;  %v1792_v23 = vor.u32 %v1790_v62, %v1788_v3  ;;  %v1800_v16 = vor.u32 %v1798_v14, %v1796_v13 }
 0x1ab   : > { %3341 = vmatprep.mubr.msk.bf16.mxu0 %vm1531_vm10, %v3015_v19  ;;  %v1621_v46 = vshrl.u32 %v3026_v30, 16  ;;  %v1624_v26 = vshll.u32 %v3026_v30, 16  ;;  %v3028_v48 = vcombine.low %v1487_v29, %v1488_v44  ;;  %v1619_v20 = vor.u32 %v1618_v45, %v1615_v43  ;;  %v3558_v29 = vld [vmem:[#allocation3 + $0x28] ss:$0 sps:$4 sm:$0x11]   ;;  %v3563_v43 = vld [vmem:[%s4324_s6 + $0x10] sm:$0xff]  }
 0x1ac   : > { %3342 = vmatmul.mubr.msk.bf16.vlgmr.msra.gmra.mxu0 %vm1531_vm10, %v3016_v39  ;;  %v1783_v53 = vrot.slane %v1781_v51, 1  ;;  %v1797_v40 = vsel %vm707_vm4, %v1792_v23, %v1796_v13  ;;  %v4110_v19 = vld [vmem:[#allocation3 + $0x20] sm:$0xf]  ;;  %v4121_v51 = vcombine.low %v4101_v18, %v4103_v24  ;;  %v4159_v14 = vld [vmem:[#allocation3 + $0xc] sm:$0xf] }
 0x1ad   : > { %3362 = vmatpush3.bf16.msra.mxu0 %v4021_v63  ;;  %v1623_v49 = vrot.slane %v1621_v46, 3  ;;  %v1626_v54 = vrot.slane %v1624_v26, 4  ;;  %3345 = vmatprep.mubr.msk.bf16.mxu0 %vm1531_vm10, %v3017_v42  ;;  %v1639_v55 = vshrl.u32 %v3028_v48, 16  ;;  %v1642_v56 = vshll.u32 %v3028_v48, 16  ;;  %v4070_v63 = vld [vmem:[#allocation3 + $0x10] sm:$0xf] }
 0x1ae   : > { %v1489_v57 = vld [vmem:[#allocation3 + $0x24] sm:$0xf]  ;;  %3363 = vmatprep.subr.bf16.mxu0 %v3551_v2  ;;  %v1784_v60 = vor.u32 %v1783_v53, %v1779_v58  ;;  %v4093_v27 = vcombine.low %v4074_v6, %v4070_v63  ;;  %v2087_v42 = vshrl.u32 %v4099_v28, 16  ;;  %v4128_v48 = vcombine.low %v4108_v41, %v4110_v19 }
 0x1af   : > { %v1627_v31 = vor.u32 %v1626_v54, %v1623_v49  ;;  %v3029_v61 = vcombine.low %v1489_v57, %v1489_v57  ;;  %v1641_v36 = vrot.slane %v1639_v55, 3  ;;  %v1644_v35 = vrot.slane %v1642_v56, 4  ;;  %v4068_v50 = vld [vmem:[#allocation3 + $0x20] sm:$0xff]  }
 0x1b0   : > { %v3018_v7 = vcombine.low %v1488_v44, %v1489_v57  ;;  %v1789_v21 = vsel %vm707_vm4, %v1784_v60, %v1788_v3  ;;  %v1802_v22 = vshll.u32 %v4068_v50, 16  ;;  %v2095_v38 = vshrl.u32 %v4093_v27, 16  ;;  %v3557_v49 = vld [vmem:[#allocation2 + $0x10] sm:$0xff]  }
 0x1b1   : > { %v1628_v0 = vsel %vm552_vm3, %v1619_v20, %v1627_v31  ;;  %v1637_v1 = vsel %vm552_vm3, %v1627_v31, %v1636_v52  ;;  %3364 = vmatpush3.bf16.msra.mxu0 %v3551_v2  ;;  %v1648_v4 = vshrl.u32 %v3029_v61, 16  ;;  %v1651_v5 = vshll.u32 %v3029_v61, 16  ;;  %v4140_v31 = vld [vmem:[#allocation3 + $0x24] sm:$0xf]  ;;  %v3564_v61 = vld [vmem:[#allocation2 + $0x18] sm:$0xff]  }
 0x1b2   : > { %3353 = vmatprep.mubr.msk.bf16.mxu1 %vm1531_vm10, %v1628_v0  ;;  %v1645_v9 = vor.u32 %v1644_v35, %v1641_v36  ;;  %3383 = vmatprep.subr.bf16.mxu0 %v4063_v59  ;;  %v1804_v32 = vrot.slane %v1802_v22, 1  ;;  %v2098_v39 = vshll.u32 %v4093_v27, 16  ;;  %v2090_v2 = vshll.u32 %v4099_v28, 16  ;;  %v2410_v22 = vld [vmem:[#allocation3 + $0x8] sm:$0xf] }
 0x1b3   : > { %3354 = vmatmul.mubr.msk.bf16.vlgmr.msra.gmra.mxu1 %vm1531_vm10, %v1637_v1  ;;  %v1650_v11 = vrot.slane %v1648_v4, 3  ;;  %v1653_v12 = vrot.slane %v1651_v5, 4  ;;  %v1810_v44 = vshll.u32 %v3558_v29, 16  ;;  %v2097_v46 = vrot.slane %v2095_v38, 3  ;;  %v3569_v5 = vld [vmem:[%s4324_s6 + $0x38] sm:$0xff]  }
 0x1b4   : > { %3374 = vmatpush3.bf16.msra.mxu1 %v1967_v33  ;;  %3346 = vmatmul.mubr.msk.bf16.gmra.mxu0 %vm1531_vm10, %v3018_v7  ;;  %v1646_v17 = vsel %vm552_vm3, %v1636_v52, %v1645_v9  ;;  %v1805_v45 = vsel %vm707_vm4, %v1800_v16, %v1804_v32  ;;  %v2100_v26 = vrot.slane %v2098_v39, 4  ;;  %v1806_v52 = vshrl.u32 %v4068_v50, 16  ;;  %v3565_v33 = vld [vmem:[%s4324_s6] sm:$0xff]  }
 0x1b5   : > { %3357 = vmatprep.mubr.msk.bf16.mxu1 %vm1531_vm10, %v1646_v17  ;;  %3365 = vmatprep.mubr.msk.bf16.mxu0 %vm1531_vm10, %v1789_v21  ;;  %v1654_v25 = vor.u32 %v1653_v12, %v1650_v11  ;;  %v2089_v53 = vrot.slane %v2087_v42, 3  ;;  %v2092_v3 = vrot.slane %v2090_v2, 4  ;;  %v1812_v55 = vrot.slane %v1810_v44, 1  ;;  %v3572_v21 = vld [vmem:[%s4324_s6 + $0x20] sm:$0xff]   ;;  %v3573_v42 = vld [vmem:[%s4324_s6 + $0x30] sm:$0xff]  }
 0x1b6   : > { %3395 = vmatprep.subr.bf16.mxu1 %v4081_v47  ;;  %v1808_v54 = vor.u32 %v1806_v52, %v1804_v32  ;;  %v2104_v56 = vshrl.u32 %v4121_v51, 16  ;;  %v2107_v57 = vshll.u32 %v4121_v51, 16  ;;  %v2101_v58 = vor.u32 %v2100_v26, %v2097_v46  ;;  %v3577_v32 = vld [vmem:[%s4324_s6 + $0x48] sm:$0xff]   ;;  %v3574_v2 = vld [vmem:[#allocation3 + $0x24] ss:$0 sps:$4 sm:$0x77]  }
 0x1b7   : > { %v1655_v30 = vsel %vm552_vm3, %v1645_v9, %v1654_v25  ;;  %v2113_v20 = vshrl.u32 %v4128_v48, 16  ;;  %v2093_v36 = vor.u32 %v2092_v3, %v2089_v53  ;;  %v3071_v50 = vcombine.low %v4140_v31, %v4140_v31  ;;  %v3566_v9 = vld [vmem:[#allocation2 + $0x20] sm:$0xff]   ;;  %v4188_v46 = vld [vmem:[#allocation3 + $0x18] sm:$0xff]   ;;  %v2733_v53 = vpop.permute.xlu0 %2732 }
 0x1b8   : > { %v1813_v35 = vsel %vm707_vm4, %v1808_v54, %v1812_v55  ;;  %v2106_v60 = vrot.slane %v2104_v56, 3  ;;  %v2109_v62 = vrot.slane %v2107_v57, 4  ;;  %v2219_v7 = vrot.slane %v4093_v27, 3  ;;  %v3581_v54 = vld [vmem:[#allocation3 + $0x20] sm:$0xff]   ;;  %v3583_v57 = vld [vmem:[%s4324_s6 + $0x40] sm:$0xff]  }
 0x1b9   : > { %v2102_v0 = vsel %vm552_vm3, %v2093_v36, %v2101_v58  ;;  %v2115_v1 = vrot.slane %v2113_v20, 3  ;;  %v2125_v11 = vshll.u32 %v3071_v50, 16  ;;  %v2218_v12 = vrot.slane %v4099_v28, 3 }
 0x1ba   : > { %v2110_v10 = vor.u32 %v2109_v62, %v2106_v60  ;;  %v3103_v29 = vcombine.low %v2410_v22, %v4159_v14  ;;  %v2221_v16 = vrot.slane %v4121_v51, 3  ;;  %v2223_v39 = vrot.slane %v4128_v48, 3  ;;  %v3584_v62 = vld [vmem:[#allocation3 + $0x28] ss:$0 sps:$4 sm:$0x11]  }
 0x1bb   : > { %3358 = vmatmul.mubr.msk.bf16.gmra.mxu1 %vm1531_vm10, %v1655_v30  ;;  %v2220_v17 = vsel %vm1019_vm5, %v2218_v12, %v2219_v7  ;;  %v2127_v25 = vrot.slane %v2125_v11, 4  ;;  %v3089_v44 = vcombine.low %v4085_v15, %v4074_v6  ;;  %v2225_v52 = vrot.slane %v3574_v2, 3 }
 0x1bc   : > { %3366 = vmatmul.mubr.msk.bf16.vlgmr.msra.gmra.mxu0 %vm1531_vm10, %v1797_v40  ;;  %3375 = vmatprep.mubr.msk.bf16.mxu1 %vm467_vm2, %v3555_v37  ;;  %v2111_v27 = vsel %vm552_vm3, %v2101_v58, %v2110_v10  ;;  %v2450_v38 = vshll.u32 %v3103_v29, 16  ;;  %v4177_v40 = vld [vmem:[#allocation3 + $0x10] sm:$0xff]   ;;  %v2222_v30 = vsel %vm1019_vm5, %v2219_v7, %v2221_v16  ;;  %v2224_v26 = vsel %vm1019_vm5, %v2221_v16, %v2223_v39 }
 0x1bd   : > { %3369 = vmatprep.mubr.msk.bf16.mxu0 %vm1531_vm10, %v1805_v45  ;;  %3384 = vmatpush3.bf16.msra.mxu0 %v4063_v59  ;;  %v2116_v59 = vshll.u32 %v4128_v48, 16  ;;  %v2455_v45 = vshll.u32 %v4177_v40, 16  ;;  %v2448_v48 = vshrl.u32 %v3103_v29, 16  ;;  %v2463_v15 = vshll.u32 %v4188_v46, 16 }
 0x1be   : > { %3385 = vmatprep.subr.bf16.mxu0 %v3563_v43  ;;  %v2452_v51 = vrot.slane %v2450_v38, 1  ;;  %v3091_v55 = vcombine.low %v4103_v24, %v4108_v41  ;;  %v2226_v56 = vsel %vm1019_vm5, %v2223_v39, %v2225_v52  ;;  %v2471_v24 = vshll.u32 %v3581_v54, 16 }
 0x1bf   : > { %v2118_v4 = vrot.slane %v2116_v59, 4  ;;  %v2457_v6 = vrot.slane %v2455_v45, 1  ;;  %v2467_v59 = vshrl.u32 %v4188_v46, 16  ;;  %v2475_v7 = vshrl.u32 %v3581_v54, 16 }
 0x1c0   : > { %v2453_v3 = vor.u32 %v2452_v51, %v2448_v48 }
 0x1c1   : > { %3386 = vmatpush3.bf16.msra.mxu0 %v3563_v43  ;;  %v2119_v13 = vor.u32 %v2118_v4, %v2115_v1  ;;  %v2479_v1 = vshll.u32 %v3584_v62, 16 }
 0x1c2   : > { %3407 = vmatprep.subr.bf16.mxu0 %v3568_v8  ;;  %v2458_v58 = vsel %vm707_vm4, %v2453_v3, %v2457_v6 }
 0x1c3   : > { %3376 = vmatmul.mubr.msk.bf16.vlgmr.msra.gmra.mxu1 %vm467_vm2, %v3557_v49  ;;  %v2120_v28 = vsel %vm552_vm3, %v2110_v10, %v2119_v13  ;;  %v2459_v49 = vshrl.u32 %v4177_v40, 16  ;;  %v2481_v10 = vrot.slane %v2479_v1, 1 }
 0x1c4   : > { %3396 = vmatpush3.bf16.msra.mxu1 %v4081_v47  ;;  %3370 = vmatmul.mubr.msk.bf16.gmra.mxu0 %vm1531_vm10, %v1813_v35  ;;  %v2122_v47 = vshrl.u32 %v3071_v50, 16  ;;  %v2473_v35 = vrot.slane %v2471_v24, 1  ;;  %v2750_v50 = vsel %vm480_vm0, %v2733_v53, 0 }
 0x1c5   : > { %3387 = vmatprep.mubr.msk.bf16.mxu0 %vm1531_vm10, %v2102_v0  ;;  %3379 = vmatprep.mubr.msk.bf16.mxu1 %vm467_vm2, %v3564_v61  ;;  %v2461_v20 = vor.u32 %v2459_v49, %v2457_v6  ;;  %v2582_v61 = vrot.slane %v4177_v40, 1  ;;  %v3092_v0 = vcombine.low %v4110_v19, %v4140_v31  ;;  %v2586_v19 = vrot.slane %v3581_v54, 1  ;;  %v3585_v31 = vld [vmem:[#allocation2 + $0x8] sm:$0xff]  }
 0x1c6   : > { %3397 = vmatprep.subr.bf16.mxu1 %v3565_v33  ;;  %v2124_v23 = vrot.slane %v2122_v47, 3  ;;  %v2584_v47 = vrot.slane %v4188_v46, 1 }
 0x1c8   : > { %3398 = vmatpush3.bf16.msra.mxu1 %v3565_v33  ;;  %v2128_v37 = vor.u32 %v2127_v25, %v2124_v23  ;;  %v2585_v11 = vsel %vm1347_vm6, %v2582_v61, %v2584_v47 }
 0x1c9   : > { %3419 = vmatprep.subr.bf16.mxu1 %v3569_v5 }
 0x1ca   : > { %v2129_v43 = vsel %vm552_vm3, %v2119_v13, %v2128_v37  ;;  %v2587_v13 = vsel %vm1347_vm6, %v2584_v47, %v2586_v19 }
 0x1cb   : > { %3380 = vmatmul.mubr.msk.bf16.gmra.mxu1 %vm467_vm2, %v3566_v9  ;;  %v2477_v9 = vor.u32 %v2475_v7, %v2473_v35 }
 0x1cc   : > { %3388 = vmatmul.mubr.msk.bf16.vlgmr.msra.gmra.mxu0 %vm1531_vm10, %v2111_v27  ;;  %3399 = vmatprep.mubr.msk.bf16.mxu1 %vm1531_vm10, %v2220_v17  ;;  %v2588_v17 = vrot.slane %v3584_v62, 1  ;;  %v3588_v27 = vld [vmem:[#allocation2 + $0x20] sm:$0xff]  }
 0x1cd   : > { %3391 = vmatprep.mubr.msk.bf16.mxu0 %vm1531_vm10, %v2120_v28  ;;  %3408 = vmatpush3.bf16.msra.mxu0 %v3568_v8  ;;  %v3090_v8 = vcombine.low %v4070_v63, %v4101_v18  ;;  %v2465_v63 = vrot.slane %v2463_v15, 1  ;;  %v2572_v18 = vld [vmem:[#allocation3 + $0x8] sm:$0xe]  ;;  %v2482_v12 = vsel %vm707_vm4, %v2477_v9, %v2481_v10 }
 0x1ce   : > { %3409 = vmatprep.subr.bf16.mxu0 %v3572_v21  ;;  %v3118_v41 = vcombine.low %v2572_v18, %v4159_v14  ;;  %v3586_v14 = vld [vmem:[#allocation2 + $0x10] sm:$0xff]   ;;  %v2589_v22 = vsel %vm1347_vm6, %v2586_v19, %v2588_v17 }
 0x1cf   : > { %v2466_v36 = vsel %vm707_vm4, %v2461_v20, %v2465_v63  ;;  %v2469_v33 = vor.u32 %v2467_v59, %v2465_v63 }
 0x1d0   : > { %v2581_v60 = vrot.slane %v3118_v41, 1 }
 0x1d1   : > { %3410 = vmatpush3.bf16.msra.mxu0 %v3572_v21  ;;  %v2474_v4 = vsel %vm707_vm4, %v2469_v33, %v2473_v35  ;;  %v3587_v21 = vld [vmem:[#allocation2 + $0x18] sm:$0xff]  }
 0x1d2   : > { %3431 = vmatprep.subr.bf16.mxu0 %v3577_v32 }
 0x1d3   : > { %3400 = vmatmul.mubr.msk.bf16.vlgmr.msra.gmra.mxu1 %vm1531_vm10, %v2222_v30 }
 0x1d4   : > { %3420 = vmatpush3.bf16.msra.mxu1 %v3569_v5  ;;  %3392 = vmatmul.mubr.msk.bf16.gmra.mxu0 %vm1531_vm10, %v2129_v43  ;;  %v2583_v5 = vsel %vm1347_vm6, %v2581_v60, %v2582_v61 }
 0x1d5   : > { %3403 = vmatprep.mubr.msk.bf16.mxu1 %vm1531_vm10, %v2224_v26  ;;  %3411 = vmatprep.mubr.msk.bf16.mxu0 %vm1531_vm10, %v3089_v44  ;;  %v3051_v26 = vld [vmem:[%s4325_s7] ss:$0 sm:$0xff] }
 0x1d6   : > { %3421 = vmatprep.subr.bf16.mxu1 %v3573_v42 }
 0x1d8   : > { %3422 = vmatpush3.bf16.msra.mxu1 %v3573_v42 }
 0x1d9   : > { %3462 = vmatprep.subr.msk.bf16.mxu1 %vm480_vm0, %v2733_v53 }
 0x1db   : > { %3404 = vmatmul.mubr.msk.bf16.gmra.mxu1 %vm1531_vm10, %v2226_v56 }
 0x1dc   : > { %3412 = vmatmul.mubr.msk.bf16.vlgmr.msra.gmra.mxu0 %vm1531_vm10, %v3090_v8  ;;  %3423 = vmatprep.mubr.msk.bf16.mxu1 %vm1531_vm10, %v2458_v58 }
 0x1dd   : > { %3432 = vmatpush3.bf16.msra.mxu0 %v3577_v32  ;;  %3415 = vmatprep.mubr.msk.bf16.mxu0 %vm1531_vm10, %v3091_v55 }
 0x1de   : > { %3433 = vmatprep.subr.bf16.mxu0 %v3583_v57 }
 0x1e1   : > { %3434 = vmatpush3.bf16.msra.mxu0 %v3583_v57 }
 0x1e3   : > { %3424 = vmatmul.mubr.msk.bf16.vlgmr.msra.gmra.mxu1 %vm1531_vm10, %v2466_v36 }
 0x1e4   : > { %3444 = vmatpush3.bf16.msra.mxu1 %v2750_v50  ;;  %3416 = vmatmul.mubr.msk.bf16.gmra.mxu0 %vm1531_vm10, %v3092_v0 }
 0x1e5   : > { %3427 = vmatprep.mubr.msk.bf16.mxu1 %vm1531_vm10, %v2474_v4  ;;  %3435 = vmatprep.mubr.msk.bf16.mxu0 %vm1531_vm10, %v2583_v5 }
 0x1eb   : > { %3428 = vmatmul.mubr.msk.bf16.gmra.mxu1 %vm1531_vm10, %v2482_v12 }
 0x1ec   : > { %3436 = vmatmul.mubr.msk.bf16.vlgmr.msra.gmra.mxu0 %vm1531_vm10, %v2585_v11  ;;  %3445 = vmatprep.mubr.msk.bf16.mxu1 %vm467_vm2, %v3585_v31 }
 0x1ed   : > { %3439 = vmatprep.mubr.msk.bf16.mxu0 %vm1531_vm10, %v2587_v13 }
 0x1f3   : > { %3446 = vmatmul.mubr.msk.bf16.vlgmr.msra.gmra.mxu1 %vm467_vm2, %v3586_v14 }
 0x1f4   : > { %3440 = vmatmul.mubr.msk.bf16.gmra.mxu0 %vm1531_vm10, %v2589_v22  ;;  %3449 = vmatprep.mubr.msk.bf16.mxu1 %vm467_vm2, %v3587_v21 }
 0x1fb   : > { %3450 = vmatmul.mubr.msk.bf16.gmra.mxu1 %vm467_vm2, %v3588_v27 }
 0x26c   : > { %v3343_v23 = vpop.f32.mrf.mxu0 }
 0x26e   : > { %v1578_v25 = vpop.f32.mrf.mxu0 }
 0x270   : > { %v3344_v29 = vpop.f32.mrf.mxu0 }
 0x272   : > { %v1581_v28 = vpop.f32.mrf.mxu0 }
 0x273   : > { %v3355_v16 = vpop.f32.mrf.mxu1 }
 0x274   : > { %v3347_v32 = vpop.f32.mrf.mxu0 }
 0x275   : > { %v1714_v37 = vpop.f32.mrf.mxu1 }
 0x276   : > { %v1592_v38 = vpop.f32.mrf.mxu0  ;;  %v1715_v44 = vadd.f32 %v1714_v37, %v1578_v25 }
 0x277   : > { %v3356_v39 = vpop.f32.mrf.mxu1 }
 0x278   : > { %v3348_v40 = vpop.f32.mrf.mxu0 }
 0x279   : > { %v1717_v30 = vpop.f32.mrf.mxu1 }
 0x27a   : > { %v1594_v42 = vpop.f32.mrf.mxu0  ;;  %v1718_v53 = vadd.f32 %v1717_v30, %v1581_v28 }
 0x27b   : > { %v3359_v2 = vpop.f32.mrf.mxu1 }
 0x27c   : > { %v3367_v43 = vpop.f32.mrf.mxu0  ;;  %v1735_v8 = vadd.f32 %v3359_v2, %v3347_v32 }
 0x27d   : > { %v1728_v51 = vpop.f32.mrf.mxu1 }
 0x27e   : > { %v1872_v45 = vpop.f32.mrf.mxu0 }
 0x27f   : > { %v1899_v46 = vadd.f32 %v1872_v45, %v1715_v44  ;;  %v3360_v48 = vpop.f32.mrf.mxu1 }
 0x280   : > { %v3368_v52 = vpop.f32.mrf.mxu0  ;;  %v1738_v59 = vadd.f32 %v3360_v48, %v3348_v40 }
 0x281   : > { %v1730_v3 = vpop.f32.mrf.mxu1  ;;  %v1910_v6 = vadd.f32 %v3051_v26, %v1899_v46 }
 0x282   : > { %v1875_v15 = vpop.f32.mrf.mxu0 }
 0x283   : > { %v1900_v49 = vadd.f32 %v1875_v15, %v1718_v53  ;;  %v3377_v54 = vpop.f32.mrf.mxu1  ;;  %v1914_v58 = vmax.f32 %v1910_v6, 0.0 }
 0x284   : > { %v3371_v55 = vpop.f32.mrf.mxu0 }
 0x285   : > { %v1901_v56 = vadd.f32 %v3371_v55, %v1735_v8  ;;  %v2003_v57 = vpop.f32.mrf.mxu1  ;;  %v1911_v63 = vadd.f32 %v3051_v26, %v1900_v49 }
 0x286   : > { %v2004_v18 = vadd.f32 %v4040_v34, %v2003_v57  ;;  %v1886_v20 = vpop.f32.mrf.mxu0 }
 0x287   : > { %v3378_v24 = vpop.f32.mrf.mxu1  ;;  %v1912_v41 = vadd.f32 %v3051_v26, %v1901_v56  ;;  %v1915_v60 = vmax.f32 %v1911_v63, 0.0 }
 0x288   : > { %v2030_v61 = vadd.f32 %v2004_v18, %v1914_v58  ;;  %v3372_v36 = vpop.f32.mrf.mxu0  ;;  %v3125_v24 = vld [vmem:[%s4326_s8] ss:$0 sm:$0xff] }
 0x289   : > { %v1902_v33 = vadd.f32 %v3372_v36, %v1738_v59  ;;  %v2006_v35 = vpop.f32.mrf.mxu1  ;;  %v1916_v4 = vmax.f32 %v1912_v41, 0.0 }
 0x28a   : > { %v2034_v62 = vmax.f32 %v2030_v61, 0.0  ;;  %v2007_v50 = vadd.f32 %v4040_v34, %v2006_v35  ;;  %v1888_v0 = vpop.f32.mrf.mxu0 }
 0x28b   : > { %v3381_v1 = vpop.f32.mrf.mxu1  ;;  %v1913_v5 = vadd.f32 %v3051_v26, %v1902_v33 }
 0x28c   : > { %v2031_v7 = vadd.f32 %v2007_v50, %v1915_v60  ;;  %v2024_v9 = vadd.f32 %v3381_v1, %v4040_v34  ;;  %v3389_v10 = vpop.f32.mrf.mxu0  ;;  %2039 = vst.msk [vmem:[%s4245_s13] sm:$0xff] %vm2038_vm11, %v2034_v62 }
 0x28d   : > { %v2017_v47 = vpop.f32.mrf.mxu1  ;;  %v1917_v13 = vmax.f32 %v1913_v5, 0.0  ;;  %v2735_v5 = vpop.permute.xlu1 %2734 }
 0x28e   : > { %v2035_v19 = vmax.f32 %v2031_v7, 0.0  ;;  %v2032_v31 = vadd.f32 %v2024_v9, %v1916_v4  ;;  %v2188_v11 = vpop.f32.mrf.mxu0 }
 0x28f   : > { %v3382_v12 = vpop.f32.mrf.mxu1 }
 0x290   : > { %v2036_v14 = vmax.f32 %v2032_v31, 0.0  ;;  %v2027_v17 = vadd.f32 %v3382_v12, %v4040_v34  ;;  %v3390_v21 = vpop.f32.mrf.mxu0  ;;  %2040 = vst.msk [vmem:[%s4245_s13 + $0x8] sm:$0xff] %vm2038_vm11, %v2035_v19 }
 0x291   : > { %v2019_v22 = vpop.f32.mrf.mxu1 }
 0x292   : > { %v2033_v27 = vadd.f32 %v2027_v17, %v1917_v13  ;;  %v2191_v23 = vpop.f32.mrf.mxu0  ;;  %3061 = vst.msk [vmem:[%s4245_s13 + $0x10] sm:$0xff] %vm2038_vm11, %v2036_v14 }
 0x293   : > { %v3401_v25 = vpop.f32.mrf.mxu1 }
 0x294   : > { %v2037_v29 = vmax.f32 %v2033_v27, 0.0  ;;  %v3393_v28 = vpop.f32.mrf.mxu0 }
 0x295   : > { %v2285_v16 = vpop.f32.mrf.mxu1 }
 0x296   : > { %v2202_v32 = vpop.f32.mrf.mxu0  ;;  %3062 = vst.msk [vmem:[%s4245_s13 + $0x18] sm:$0xff] %vm2038_vm11, %v2037_v29  ;;  %v2286_v6 = vadd.f32 %v2285_v16, %v2188_v11 }
 0x297   : > { %v3402_v37 = vpop.f32.mrf.mxu1 }
 0x298   : > { %v3394_v38 = vpop.f32.mrf.mxu0 }
 0x299   : > { %v2288_v39 = vpop.f32.mrf.mxu1 }
 0x29a   : > { %v2204_v40 = vpop.f32.mrf.mxu0  ;;  %v2289_v56 = vadd.f32 %v2288_v39, %v2191_v23 }
 0x29b   : > { %v3405_v34 = vpop.f32.mrf.mxu1 }
 0x29c   : > { %v3413_v30 = vpop.f32.mrf.mxu0  ;;  %v2306_v18 = vadd.f32 %v3405_v34, %v3393_v28 }
 0x29d   : > { %v2299_v42 = vpop.f32.mrf.mxu1 }
 0x29e   : > { %v2379_v2 = vpop.f32.mrf.mxu0 }
 0x29f   : > { %v3406_v43 = vpop.f32.mrf.mxu1  ;;  %v2406_v49 = vadd.f32 %v2379_v2, %v2286_v6 }
 0x2a0   : > { %v3414_v44 = vpop.f32.mrf.mxu0  ;;  %v2309_v50 = vadd.f32 %v3406_v43, %v3394_v38 }
 0x2a1   : > { %v2301_v51 = vpop.f32.mrf.mxu1 }
 0x2a2   : > { %v2382_v45 = vpop.f32.mrf.mxu0 }
 0x2a3   : > { %v3425_v46 = vpop.f32.mrf.mxu1  ;;  %v2407_v20 = vadd.f32 %v2382_v45, %v2289_v56 }
 0x2a4   : > { %v3417_v26 = vpop.f32.mrf.mxu0 }
 0x2a5   : > { %v2541_v48 = vpop.f32.mrf.mxu1  ;;  %v2408_v36 = vadd.f32 %v3417_v26, %v2306_v18 }
 0x2a6   : > { %v2393_v52 = vpop.f32.mrf.mxu0  ;;  %v2568_v57 = vadd.f32 %v2541_v48, %v2406_v49 }
 0x2a7   : > { %v3426_v53 = vpop.f32.mrf.mxu1 }
 0x2a8   : > { %v3418_v3 = vpop.f32.mrf.mxu0 }
 0x2a9   : > { %v2544_v15 = vpop.f32.mrf.mxu1  ;;  %v2409_v9 = vadd.f32 %v3418_v3, %v2309_v50 }
 0x2aa   : > { %v2395_v8 = vpop.f32.mrf.mxu0  ;;  %v2569_v33 = vadd.f32 %v2544_v15, %v2407_v20 }
 0x2ab   : > { %v3429_v54 = vpop.f32.mrf.mxu1 }
 0x2ac   : > { %v3437_v55 = vpop.f32.mrf.mxu0  ;;  %v2570_v0 = vadd.f32 %v3429_v54, %v2408_v36 }
 0x2ad   : > { %v2555_v58 = vpop.f32.mrf.mxu1 }
 0x2ae   : > { %v2648_v63 = vpop.f32.mrf.mxu0 }
 0x2af   : > { %v2675_v59 = vadd.f32 %v2648_v63, %v2568_v57  ;;  %v3430_v41 = vpop.f32.mrf.mxu1 }
 0x2b0   : > { %v3438_v61 = vpop.f32.mrf.mxu0  ;;  %v2571_v13 = vadd.f32 %v3430_v41, %v2409_v9 }
 0x2b1   : > { %v2557_v35 = vpop.f32.mrf.mxu1  ;;  %v2686_v60 = vadd.f32 %v3125_v24, %v2675_v59 }
 0x2b2   : > { %v2651_v62 = vpop.f32.mrf.mxu0 }
 0x2b3   : > { %v2676_v1 = vadd.f32 %v2651_v62, %v2569_v33  ;;  %v3447_v4 = vpop.f32.mrf.mxu1  ;;  %v2690_v19 = vmax.f32 %v2686_v60, 0.0 }
 0x2b4   : > { %v3441_v7 = vpop.f32.mrf.mxu0 }
 0x2b5   : > { %v2677_v10 = vadd.f32 %v3441_v7, %v2570_v0  ;;  %v2786_v47 = vpop.f32.mrf.mxu1  ;;  %v2687_v31 = vadd.f32 %v3125_v24, %v2676_v1 }
 0x2b6   : > { %v2787_v11 = vadd.f32 %v2786_v47, %v2735_v5  ;;  %v2662_v12 = vpop.f32.mrf.mxu0 }
 0x2b7   : > { %v3448_v14 = vpop.f32.mrf.mxu1  ;;  %v2688_v17 = vadd.f32 %v3125_v24, %v2677_v10  ;;  %v2691_v25 = vmax.f32 %v2687_v31, 0.0 }
 0x2b8   : > { %v2813_v21 = vadd.f32 %v2787_v11, %v2690_v19  ;;  %v3442_v22 = vpop.f32.mrf.mxu0 }
 0x2b9   : > { %v2678_v27 = vadd.f32 %v3442_v22, %v2571_v13  ;;  %v2789_v23 = vpop.f32.mrf.mxu1  ;;  %v2692_v37 = vmax.f32 %v2688_v17, 0.0 }
 0x2ba   : > { %v2817_v29 = vmax.f32 %v2813_v21, 0.0  ;;  %v2790_v28 = vadd.f32 %v2789_v23, %v2735_v5  ;;  %v2664_v16 = vpop.f32.mrf.mxu0 }
 0x2bb   : > { %v3451_v32 = vpop.f32.mrf.mxu1  ;;  %v2689_v38 = vadd.f32 %v3125_v24, %v2678_v27 }
 0x2bc   : > { %v2814_v39 = vadd.f32 %v2790_v28, %v2691_v25  ;;  %v2807_v40 = vadd.f32 %v3451_v32, %v2735_v5  ;;  %2823 = vrot.lane.b32.xlu0 %v2817_v29, %s3652_s14 }
 0x2bd   : > { %v2800_v34 = vpop.f32.mrf.mxu1  ;;  %v2693_v43 = vmax.f32 %v2689_v38, 0.0 }
 0x2be   : > { %v2818_v30 = vmax.f32 %v2814_v39, 0.0  ;;  %v2815_v42 = vadd.f32 %v2807_v40, %v2692_v37 }
 0x2bf   : > { %v3452_v2 = vpop.f32.mrf.mxu1 }
 0x2c0   : > { %v2819_v44 = vmax.f32 %v2815_v42, 0.0  ;;  %v2810_v51 = vadd.f32 %v3452_v2, %v2735_v5  ;;  %2825 = vrot.lane.b32.xlu1 %v2818_v30, %s3652_s14 }
 0x2c1   : > { %v2802_v45 = vpop.f32.mrf.mxu1 }
 0x2c2   : > { %v2816_v46 = vadd.f32 %v2810_v51, %v2693_v43  ;;  %2834 = vrot.lane.b32.xlu0 %v2819_v44, %s3652_s14 }
 0x2c4   : > { %v2820_v26 = vmax.f32 %v2816_v46, 0.0 }
 0x2c6   : > { %2836 = vrot.lane.b32.xlu1 %v2820_v26, %s3652_s14  ;;  %s4278_s14 = scalar_lea.sflag [#allocation5], %s380_s29 }
 0x32e   : > { %v2824_v48 = vpop.permute.xlu0 %2823 }
 0x32f   : > { %2830 = vst.msk [vmem:[%s4245_s13] sm:$0xff] %vm2829_vm12, %v2824_v48 }
 0x332   : > { %v2826_v52 = vpop.permute.xlu1 %2825 }
 0x333   : > { %2831 = vst.msk [vmem:[%s4245_s13 + $0x8] sm:$0xff] %vm2829_vm12, %v2826_v52 }
 0x334   : > { %v2835_v53 = vpop.permute.xlu0 %2834 }
 0x335   : > { %3136 = vst.msk [vmem:[%s4245_s13 + $0x10] sm:$0xff] %vm2829_vm12, %v2835_v53 }
 0x338   : > { %v2837_v3 = vpop.permute.xlu1 %2836 }
 0x339   : > { %3137 = vst.msk [vmem:[%s4245_s13 + $0x18] sm:$0xff] %vm2829_vm12, %v2837_v3 }
 0x33a   : > { %3602 = shalt.err (!%p3599_p3)
}
 0x33b   : > { %s3603_s29 = scalar_lea.hbm %s4271_s30, 512  ;;  %s3607_s25 = scalar_lea.hbm %s4329_s11, 1024 }
 0x33c   : > { %p3604_p4 = scmp.ne.s32.totalorder %s4271_s30, %s3603_s29  ;;  %p3608_p9 = scmp.lt.s32.totalorder %s4271_s30, %s4329_s11 }
 0x33d   : > { %p3609_p10 = scmp.lt.s32.totalorder %s3607_s25, %s3603_s29 }
 0x33e   : > { %p3605_p7 = pnand %p3604_p4, %p3755_p5 }
 0x33f   : > { %p3610_p11 = por %p3609_p10, %p3608_p9 }
 0x340   : > { %p3606_p8 = pneg %p3605_p7 }
 0x342   : > { %p3611_p12 = pnand %p3610_p11, %p3606_p8 }
 0x344   : > { %3614 = shalt.err (!%p3611_p12)
}
 0x345   : > { %s3655_s15 = smov 128   ;;  %s3656_s12 = smov 8  }
 0x346   : > { %3463 = dma.vmem_to_hbm [thread:$0]  (%p3755_p5), %s4273_s22, 512, %s4271_s30, %s4278_s14, %s3655_s15, %s3655_s15, %s3656_s12  }
 0x347 PF: > { %p3469_p13 = scmp.ge.s32.totalorder %s3649_s20, 2  ;;  %s2872_s16 = sand.u32 1, %s3637_s17  }
 0x348   : > { %s2873_s0 = scalar_lea.sflag [#allocation5], %s2872_s16 }
 0x349   : > { %p3466_p0 = pnand %p3469_p13, %p3759_p6 }
 0x34b   : > { %p3467_p1 = pneg %p3466_p0 }
 0x34d   : > { %3632 = dma.done.wait (%p3467_p1), %s2873_s0, 512  }
 0x34e   : > { %3634 = vsyncadd (%p3467_p1), %s2873_s0, 4294966784  ;;  %p21_p2 = scmp.ge.s32.totalorder %s3742_s23, 4   ;;  %s4334_s17 = smov %s3641_s18 }
 0x34f   : > { %s4335_s18 = smov %s3645_s19  ;;  %s4336_s19 = smov %s3753_s26 }
 0x350   : > { %s4337_s20 = smov %s3742_s23  ;;  %23 = sbr.rel (!%p21_p2) target bundleno = 5 (0x5), region = 113 }
 0x355   :  { %2878 = vsyncpa [#allocation5], 1 }
 0x356   :  { %2880 = vsyncpa [#allocation5 + $0x1], 1 }

// kernel: tpu_custom_call.1
= control target key start
LH: loop header
LB: loop body
LE: loop exit
PB: predicated region body
PF: predicated region fallthrough
CT: control target
= control target key end

     0   :  { %s4318_s0 = inlined_call_operand.vmem [shape: f32[4,16,8], index: 0, kind: input, shape index: {}]   ;;  %s4319_s1 = inlined_call_operand.vmem [shape: bf16[3,8,16], index: 1, kind: input, shape index: {}]   ;;  %s4320_s2 = inlined_call_operand.vmem [shape: bf16[5,8,16], index: 2, kind: input, shape index: {}]   ;;  %s4321_s3 = inlined_call_operand.vmem [shape: f32[1,16], index: 3, kind: input, shape index: {}]   ;;  %s4322_s4 = inlined_call_operand.vmem [shape: f32[1,16], index: 4, kind: input, shape index: {}]   ;;  %s4323_s5 = inlined_call_operand.vmem [shape: bf16[3,32,16], index: 5, kind: input, shape index: {}]   ;;  %s4324_s6 = inlined_call_operand.vmem [shape: bf16[5,32,16], index: 6, kind: input, shape index: {}]   ;;  %s4325_s7 = inlined_call_operand.vmem [shape: f32[1,16], index: 7, kind: input, shape index: {}]   ;;  %s4326_s8 = inlined_call_operand.vmem [shape: f32[1,16], index: 8, kind: input, shape index: {}]   ;;  %s4327_s9 = inlined_call_operand.vmem [shape: bf16[8,32], index: 9, kind: input, shape index: {}]   ;;  %s4328_s10 = inlined_call_operand.vmem [shape: f32[1,32], index: 10, kind: input, shape index: {}]   ;;  %s4329_s11 = inlined_call_operand.hbm [shape: f32[4,16,32], index: 11, kind: output, shape index: {}]  }
   0x1   :  { %4330 = sst [smem:[#allocation7_spill]] %s4318_s0 }
   0x2   :  { %16 = vsyncpa [#allocation5], 0 }
   0x3   :  { %18 = vsyncpa [#allocation5 + $0x1], 0  ;;  %s3717_s17 = smov 0   ;;  %s3719_s18 = smov 0  }
   0x4   :  { %s3721_s19 = smov 0   ;;  %s3723_s20 = smov 0  }
   0x5 LB: > { %s3738_s21 = sadd.s32 4294967295, %s3649_s20   ;;  %s2919_s22 = sadd.s32 4294967294, %s3649_s20   ;;  %s3649_s20 = sphi %s3723_s20, %s4337_s20   ;;  %s3645_s19 = sphi %s3721_s19, %s4336_s19   ;;  %s3641_s18 = sphi %s3719_s18, %s4335_s18   ;;  %s3637_s17 = sphi %s3717_s17, %s4334_s17  }
   0x6   : > { %s3742_s23 = sadd.s32 1, %s3649_s20   ;;  %s267_s24 = sadd.s32 1, %s3645_s19 }
   0x7   : > { %s264_s25 = ssub.s32 %s3649_s20, %s3742_s23  ;;  %p277_p0 = scmp.ne.s32.totalorder %s3645_s19, %s3641_s18 }
   0x8   : > { %p265_p1 = scmp.eq.s32.totalorder %s264_s25, 0  ;;  %p278_p2 = scmp.eq.s32.totalorder %s3738_s21, 1 }
   0x9   : > { %p283_p3 = scmp.ne.s32.totalorder %s3641_s18, %s3637_s17  ;;  %p284_p4 = scmp.eq.s32.totalorder %s2919_s22, 1 }
   0xa   : > { %s3753_s26 = scalar_select %p265_p1, %s3645_s19, %s267_s24  }
   0xb   : > { %p3755_p5 = por %p278_p2, %p277_p0  ;;  %p3759_p6 = por %p284_p4, %p283_p3 }
   0xc   : > { %p2922_p7 = scmp.ge.s32.totalorder %s3649_s20, 1  ;;  %p342_p8 = scmp.lt.s32.totalorder %s3649_s20, 3 }
   0xe   : > { %p343_p9 = pnand %p2922_p7, %p342_p8 }
   0xf   : > { %s2924_s12 = sshll.u32 (!%p343_p9), %s3738_s21, 1  ;;  %s4333_s0 = sld [smem:[#allocation7_spill]] (!%p343_p9) }
  0x10   : > { %346 = sbr.rel (%p343_p9) target bundleno = 839 (0x347), region = 64  ;;  %p384_p10 = scmp.lt.s32.totalorder (!%p343_p9), %s2924_s12, 3 }
  0x11   : > { %s3652_s14 = smov (!%p343_p9), 16   ;;  %s3653_s24 = smov (!%p343_p9), 112  }
  0x12   : > { %s380_s29 = sand.u32 (!%p343_p9), 1, %s3641_s18   ;;  %s3158_s16 = sshll.u32 (!%p343_p9), %s3738_s21, 9 }
  0x13   : > { %s2923_s30 = sshll.u32 (!%p343_p9), %s380_s29, 5  ;;  %s3654_s21 = smov (!%p343_p9), [#allocation4]  }
  0x15   : > { %v2933_v0 = vld [vmem:[%s4319_s1 + $0x4] sm:$0xf]  ;;  %vm480_vm0 = vcmask 1043456   ;;  %vm392_vm1 = vcmask 60416   ;;  %v3651_v2 = vmov 0   ;;  %s4339_s12 = smov (!%p384_p10, %s2924_s12), 3 }
  0x16   : > { %3453 = vmatprep.subr.msk.bf16.mxu0 %vm480_vm0, %v2933_v0  ;;  %v482_v1 = vsel %vm480_vm0, %v2933_v0, 0  ;;  %394 = vst.msk [vmem:[#allocation2 + $0x4] sm:$0xf] %vm392_vm1, %v3651_v2  ;;  %398 = vst.msk [vmem:[#allocation2 + $0x10] sm:$0xf] %vm392_vm1, %v3651_v2  ;;  %s3144_s25 = sshll.u32 %s4339_s12, 4 }
  0x17   : > { %399 = vst.msk [vmem:[#allocation2 + $0x14] sm:$0xf] %vm392_vm1, %v3651_v2  ;;  %402 = vst.msk [vmem:[#allocation2 + $0x18] sm:$0xf] %vm392_vm1, %v3651_v2  ;;  %v444_v3 = vld [vmem:[%s4319_s1] sm:$0xf]  ;;  %3258 = vmatpush3.bf16.msra.mxu0 %v482_v1  ;;  %s388_s13 = scalar_lea.vmem %s4333_s0, %s3144_s25 }
  0x18   : > { %403 = vst.msk [vmem:[#allocation2 + $0x1c] sm:$0xf] %vm392_vm1, %v3651_v2  ;;  %406 = vst.msk [vmem:[#allocation2 + $0x28] sm:$0xf] %vm392_vm1, %v3651_v2  ;;  %3454 = vmatprep.subr.msk.bf16.mxu1 %vm480_vm0, %v444_v3  ;;  %v610_v4 = vsel %vm480_vm0, %v444_v3, 0  ;;  %v410_v7 = vld [vmem:[%s388_s13] sm:$0xff] }
  0x19   : > { %v2951_v5 = vld [vmem:[%s4319_s1 + $0x8] sm:$0xf]  ;;  %3268 = vmatpush3.bf16.msra.mxu1 %v610_v4  ;;  %v2966_v6 = vld [vmem:[%s4320_s2 + $0x4] sm:$0xf]  ;;  %v2929_v9 = vld [vmem:[%s388_s13 + $0x10] sm:$0xff]  ;;  %v3145_v10 = vpack.c.bf16 %v410_v7, %v410_v7  ;;  %vm467_vm2 = vcmask 64512  }
  0x1a   : > { %3455 = vmatprep.subr.msk.bf16.mxu0 %vm480_vm0, %v2951_v5  ;;  %3456 = vmatprep.subr.msk.bf16.mxu1 %vm480_vm0, %v2966_v6  ;;  %v411_v8 = vld [vmem:[%s388_s13 + $0x8] sm:$0xff]  ;;  %v3147_v13 = vpack.c.bf16 %v2929_v9, %v2929_v9  ;;  %v2930_v15 = vld [vmem:[%s388_s13 + $0x18] sm:$0xff]  ;;  %v3804_v16 = vld [vmem:[%s4320_s2] sm:$0xf]  ;;  %v757_v23 = vsel %vm480_vm0, %v2951_v5, 0  ;;  %v3817_v26 = vsel %vm480_vm0, %v2966_v6, 0 }
  0x1b   : > { %v3146_v11 = vpack.c.bf16 %v411_v8, %v411_v8  ;;  %420 = vst.msk [vmem:[#allocation2 + $0x8] sm:$0xf] %vm392_vm1, %v3145_v10  ;;  %v3148_v18 = vpack.c.bf16 %v2930_v15, %v2930_v15  ;;  %v3821_v27 = vsel %vm480_vm0, %v3804_v16, 0  ;;  %vm552_vm3 = vsmask.f32 4352  ;;  %s4245_s13 = scalar_lea.vmem [#allocation4], %s2923_s30  ;;  %s4271_s30 = scalar_lea.hbm %s4329_s11, %s3158_s16 }
  0x1c   : > { %433 = vst.msk [vmem:[#allocation2 + $0x20] sm:$0xf] %vm392_vm1, %v3147_v13  ;;  %vm707_vm4 = vsmask.f32 7424  ;;  %vm1019_vm5 = vcmask 1044480   ;;  %vm1347_vm6 = vcmask 1046528  }
  0x1d   : > { %421 = vst.msk [vmem:[#allocation2 + $0xc] sm:$0xf] %vm392_vm1, %v3146_v11  ;;  %434 = vst.msk [vmem:[#allocation2 + $0x24] sm:$0xf] %vm392_vm1, %v3148_v18  ;;  %v435_v24 = vld [vmem:[#allocation2 + $0x4] sm:$0x8] }
  0x1e   : > { %v439_v12 = vld [vmem:[#allocation2 + $0x14] sm:$0xf]  ;;  %v3799_v14 = vld [vmem:[#allocation2 + $0x18] sm:$0xf]  ;;  %v438_v25 = vld [vmem:[#allocation2 + $0x10] sm:$0xf] }
  0x1f   : > { %v2944_v17 = vcombine.low %v439_v12, %v3799_v14  ;;  %v3810_v19 = vld [vmem:[#allocation2 + $0x10] sm:$0xff]   ;;  %v3812_v20 = vld [vmem:[#allocation2 + $0x18] sm:$0xff]   ;;  %v2935_v39 = vcombine.low %v438_v25, %v439_v12  ;;  %v860_v56 = vld [vmem:[#allocation2 + $0x4] sm:$0x8]  ;;  %vm848_vm7 = vcmask 125952   ;;  %vm395_vm8 = vcmask 257024  }
  0x20   : > { %v441_v28 = vld [vmem:[#allocation2 + $0x1c] sm:$0xf]  ;;  %v716_v29 = vshll.u32 %v3810_v19, 16  ;;  %v720_v30 = vshrl.u32 %v3810_v19, 16  ;;  %v3825_v31 = vld [vmem:[#allocation2 + $0x14] sm:$0xf] }
  0x21   : > { %v571_v21 = vshrl.u32 %v2944_v17, 16  ;;  %v574_v22 = vshll.u32 %v2944_v17, 16  ;;  %v724_v34 = vshll.u32 %v3812_v20, 16  ;;  %v728_v35 = vshrl.u32 %v3812_v20, 16  ;;  %v3829_v36 = vld [vmem:[#allocation2 + $0x18] sm:$0xf] }
  0x22   : > { %v436_v37 = vld [vmem:[#allocation2 + $0x8] sm:$0xf]  ;;  %v2936_v40 = vcombine.low %v3799_v14, %v441_v28  ;;  %v3835_v49 = vrot.slane %v716_v29, 1  ;;  %v3841_v51 = vcombine.low %v3825_v31, %v3829_v36  ;;  %v3846_v61 = vld [vmem:[#allocation2 + $0x10] sm:$0xf]  ;;  %vm1465_vm9 = vcmask 257152  }
  0x23   : > { %v573_v32 = vrot.slane %v571_v21, 3  ;;  %v576_v33 = vrot.slane %v574_v22, 4  ;;  %v3832_v41 = vld [vmem:[#allocation2 + $0x20] sm:$0xf]  ;;  %v2942_v43 = vcombine.low %v435_v24, %v436_v37  ;;  %v3837_v50 = vrot.slane %v724_v34, 1  ;;  %s2857_s22 = sshll.u32 %s4245_s13, 4  ;;  %s4273_s22 = int_to_ptr.vmem [resolvable:$true] %s2857_s22 }
  0x24   : > { %v437_v38 = vld [vmem:[#allocation2 + $0xc] sm:$0xf]  ;;  %v2945_v45 = vcombine.low %v441_v28, %v3832_v41  ;;  %v443_v47 = vld [vmem:[#allocation2 + $0x24] sm:$0xf]  ;;  %v3849_v3 = vld [vmem:[#allocation2 + $0x8] sm:$0xf]  ;;  %v722_v28 = vor.u32 %v720_v30, %v3835_v49 }
  0x25   : > { %v2934_v42 = vcombine.low %v436_v37, %v437_v38  ;;  %v2943_v44 = vcombine.low %v437_v38, %v438_v25  ;;  %v577_v46 = vor.u32 %v576_v33, %v573_v32  ;;  %v3514_v48 = vld [vmem:[#allocation2 + $0x8] sm:$0xff]   ;;  %v554_v52 = vshrl.u32 %v2942_v43, 16  ;;  %v3855_v13 = vld [vmem:[#allocation2 + $0x20] sm:$0xff]   ;;  %v3878_v33 = vld [vmem:[#allocation2 + $0x1c] sm:$0xf]  ;;  %s3589_s15 = scalar_lea.vmem %s4273_s22, 512 }
  0x26   : > { %v557_v53 = vshll.u32 %v2942_v43, 16  ;;  %v2937_v57 = vcombine.low %v3832_v41, %v443_v47  ;;  %v2946_v58 = vcombine.low %v443_v47, %v443_v47  ;;  %v580_v59 = vshrl.u32 %v2945_v45, 16  ;;  %v3853_v8 = vld [vmem:[#allocation2 + $0xc] sm:$0xf]  ;;  %v3869_v24 = vld [vmem:[%s4320_s2 + $0x8] sm:$0xf]  ;;  %p3590_p11 = scmp.ne.s32.totalorder %s4273_s22, %s3589_s15 }
  0x27   : > { %3259 = vmatprep.mubr.msk.bf16.mxu0 %vm467_vm2, %v2934_v42  ;;  %v562_v54 = vshrl.u32 %v2943_v44, 16  ;;  %v565_v55 = vshll.u32 %v2943_v44, 16  ;;  %v583_v60 = vshll.u32 %v2945_v45, 16  ;;  %v556_v62 = vrot.slane %v554_v52, 3  ;;  %v3880_v34 = vld [vmem:[#allocation2 + $0x20] sm:$0xf] }
  0x28   : > { %3260 = vmatmul.mubr.msk.bf16.vlgmr.msra.gmra.mxu0 %vm467_vm2, %v2935_v39  ;;  %v559_v63 = vrot.slane %v557_v53, 4  ;;  %v582_v4 = vrot.slane %v580_v59, 3  ;;  %v589_v6 = vshrl.u32 %v2946_v58, 16  ;;  %v592_v7 = vshll.u32 %v2946_v58, 16  ;;  %v3894_v47 = vld [vmem:[#allocation2 + $0x24] sm:$0xf]  ;;  %p3591_p12 = pnand %p3590_p11, %p3755_p5 }
  0x29   : > { %v564_v0 = vrot.slane %v562_v54, 3  ;;  %v567_v1 = vrot.slane %v565_v55, 4  ;;  %3278 = vmatpush3.bf16.msra.mxu0 %v757_v23  ;;  %3263 = vmatprep.mubr.msk.bf16.mxu0 %vm467_vm2, %v2936_v40  ;;  %v585_v5 = vrot.slane %v583_v60, 4  ;;  %v709_v11 = vshrl.u32 %v3514_v48, 16  ;;  %397 = vst.msk [vmem:[#allocation3 + $0x4] sm:$0xf] %vm395_vm8, %v3651_v2 }
  0x2a   : > { %3457 = vmatprep.subr.msk.bf16.mxu0 %vm480_vm0, %v3804_v16  ;;  %v560_v9 = vor.u32 %v559_v63, %v556_v62  ;;  %v711_v12 = vshll.u32 %v3514_v48, 16  ;;  %v591_v15 = vrot.slane %v589_v6, 3  ;;  %v594_v17 = vrot.slane %v592_v7, 4  ;;  %v3522_v41 = vld [vmem:[#allocation2 + $0x28] ss:$0 sps:$4 sm:$0x11]   ;;  %p3592_p13 = pneg %p3591_p12 }
  0x2b   : > { %v568_v10 = vor.u32 %v567_v1, %v564_v0  ;;  %v586_v14 = vor.u32 %v585_v5, %v582_v4  ;;  %v3858_v18 = vcombine.low %v860_v56, %v3849_v3  ;;  %v3864_v16 = vcombine.low %v3853_v8, %v3846_v61  ;;  %v2990_v0 = vld [vmem:[%s4320_s2 + $0xc] sm:$0xf]  ;;  %v1191_v1 = vld [vmem:[#allocation2 + $0x8] sm:$0xf]  ;;  %400 = vst.msk [vmem:[#allocation3 + $0x10] sm:$0xf] %vm395_vm8, %v3651_v2 }
  0x2c   : > { %v713_v23 = vrot.slane %v711_v12, 1  ;;  %v732_v40 = vshll.u32 %v3855_v13, 16  ;;  %v595_v19 = vor.u32 %v594_v17, %v591_v15  ;;  %v914_v43 = vshrl.u32 %v3841_v51, 16  ;;  %v3919_v6 = vld [vmem:[#allocation2 + $0xc] sm:$0xf]  ;;  %s3593_s12 = sshll.u32 %s3654_s21, 4  ;;  %s3594_s12 = int_to_ptr.vmem [resolvable:$false] %s3593_s12 }
  0x2d   : > { %v569_v21 = vsel %vm552_vm3, %v560_v9, %v568_v10  ;;  %v578_v22 = vsel %vm552_vm3, %v568_v10, %v577_v46  ;;  %v587_v25 = vsel %vm552_vm3, %v577_v46, %v586_v14  ;;  %v897_v29 = vshrl.u32 %v3858_v18, 16  ;;  %401 = vst.msk [vmem:[#allocation3 + $0x14] sm:$0xf] %vm395_vm8, %v3651_v2  ;;  %404 = vst.msk [vmem:[#allocation3 + $0x18] sm:$0xf] %vm395_vm8, %v3651_v2  ;;  %s3595_s16 = scalar_lea.vmem %s3594_s12, 1024  ;;  %p3596_p0 = scmp.lt.s32.totalorder %s4273_s22, %s3594_s12 }
  0x2e   : > { %3269 = vmatprep.mubr.msk.bf16.mxu1 %vm467_vm2, %v569_v21  ;;  %v900_v32 = vshll.u32 %v3858_v18, 16  ;;  %v714_v37 = vor.u32 %v713_v23, %v709_v11  ;;  %v905_v38 = vshrl.u32 %v3864_v16, 16  ;;  %v908_v39 = vshll.u32 %v3864_v16, 16  ;;  %405 = vst.msk [vmem:[#allocation3 + $0x1c] sm:$0xf] %vm395_vm8, %v3651_v2  ;;  %p3597_p1 = scmp.lt.s32.totalorder %s3595_s16, %s3589_s15 }
  0x2f   : > { %3270 = vmatmul.mubr.msk.bf16.vlgmr.msra.gmra.mxu1 %vm467_vm2, %v578_v22  ;;  %v899_v30 = vrot.slane %v897_v29, 3  ;;  %v730_v48 = vor.u32 %v728_v35, %v3837_v50  ;;  %v734_v52 = vrot.slane %v732_v40, 1  ;;  %v917_v53 = vshll.u32 %v3841_v51, 16  ;;  %v3933_v29 = vld [vmem:[#allocation2 + $0x10] sm:$0xff]   ;;  %408 = vst.msk [vmem:[#allocation3 + $0x28] sm:$0xf] %vm395_vm8, %v3651_v2 }
  0x30   : > { %3288 = vmatpush3.bf16.msra.mxu1 %v3817_v26  ;;  %3264 = vmatmul.mubr.msk.bf16.gmra.mxu0 %vm467_vm2, %v2937_v57  ;;  %v902_v42 = vrot.slane %v900_v32, 4  ;;  %v719_v44 = vsel %vm707_vm4, %v714_v37, %v3835_v49  ;;  %v907_v45 = vrot.slane %v905_v38, 3  ;;  %v910_v46 = vrot.slane %v908_v39, 4  ;;  %p3598_p2 = por %p3597_p1, %p3596_p0 }
  0x31   : > { %3273 = vmatprep.mubr.msk.bf16.mxu1 %vm467_vm2, %v587_v25  ;;  %3458 = vmatprep.subr.msk.bf16.mxu1 %vm480_vm0, %v3869_v24  ;;  %v727_v49 = vsel %vm707_vm4, %v722_v28, %v3837_v50  ;;  %v916_v55 = vrot.slane %v914_v43, 3  ;;  %v3905_v56 = vcombine.low %v3878_v33, %v3880_v34  ;;  %v596_v57 = vsel %vm552_vm3, %v586_v14, %v595_v19  ;;  %v3526_v28 = vld [vmem:[#allocation2 + $0x24] ss:$0 sps:$4 sm:$0x77]  }
  0x32   : > { %3279 = vmatprep.mubr.msk.bf16.mxu0 %vm467_vm2, %v719_v44  ;;  %v903_v26 = vor.u32 %v902_v42, %v899_v30  ;;  %v911_v54 = vor.u32 %v910_v46, %v907_v45  ;;  %v919_v58 = vrot.slane %v917_v53, 4  ;;  %v736_v59 = vshrl.u32 %v3855_v13, 16  ;;  %v3531_v46 = vld [vmem:[#allocation2 + $0x18] sm:$0xff]   ;;  %v3533_v53 = vld [vmem:[#allocation2 + $0x20] sm:$0xff]   ;;  %p3599_p3 = pnand %p3598_p2, %p3592_p13 }
  0x33   : > { %v2971_v20 = vcombine.low %v3894_v47, %v3894_v47  ;;  %v740_v60 = vshll.u32 %v3522_v41, 16  ;;  %v923_v62 = vshrl.u32 %v3905_v56, 16  ;;  %v926_v50 = vshll.u32 %v3905_v56, 16 }
  0x34   : > { %v912_v35 = vsel %vm552_vm3, %v903_v26, %v911_v54  ;;  %v735_v63 = vsel %vm707_vm4, %v730_v48, %v734_v52  ;;  %v920_v7 = vor.u32 %v919_v58, %v916_v55  ;;  %v738_v11 = vor.u32 %v736_v59, %v734_v52  ;;  %v1341_v52 = vld [vmem:[#allocation2 + $0x8] sm:$0xe] }
  0x35   : > { %v925_v4 = vrot.slane %v923_v62, 3  ;;  %v928_v5 = vrot.slane %v926_v50, 4  ;;  %v932_v9 = vshrl.u32 %v2971_v20, 16  ;;  %v935_v10 = vshll.u32 %v2971_v20, 16 }
  0x36   : > { %v742_v12 = vrot.slane %v740_v60, 1  ;;  %v1020_v14 = vrot.slane %v3858_v18, 3  ;;  %v1021_v15 = vrot.slane %v3864_v16, 3  ;;  %v2991_v17 = vcombine.low %v1191_v1, %v3919_v6 }
  0x37   : > { %3274 = vmatmul.mubr.msk.bf16.gmra.mxu1 %vm467_vm2, %v596_v57  ;;  %v929_v13 = vor.u32 %v928_v5, %v925_v4  ;;  %v1124_v21 = vsel %vm480_vm0, %v3869_v24, 0  ;;  %v921_v22 = vsel %vm552_vm3, %v911_v54, %v920_v7  ;;  %v937_v23 = vrot.slane %v935_v10, 4  ;;  %v3000_v24 = vld [vmem:[%s4320_s2 + $0x10] sm:$0xf] }
  0x38   : > { %3280 = vmatmul.mubr.msk.bf16.vlgmr.msra.gmra.mxu0 %vm467_vm2, %v727_v49  ;;  %3289 = vmatprep.mubr.msk.bf16.mxu1 %vm467_vm2, %v912_v35  ;;  %v743_v25 = vsel %vm707_vm4, %v738_v11, %v742_v12  ;;  %v1022_v16 = vsel %vm1019_vm5, %v1020_v14, %v1021_v15  ;;  %v1228_v32 = vshll.u32 %v2991_v17, 16  ;;  %v1274_v37 = vsel %vm480_vm0, %v2990_v0, 0  ;;  %v3534_v35 = vld [vmem:[#allocation2 + $0x28] ss:$0 sps:$4 sm:$0x11]  }
  0x39   : > { %3298 = vmatpush3.bf16.msra.mxu0 %v3821_v27  ;;  %3283 = vmatprep.mubr.msk.bf16.mxu0 %vm467_vm2, %v735_v63  ;;  %v934_v27 = vrot.slane %v932_v9, 3  ;;  %v930_v18 = vsel %vm552_vm3, %v920_v7, %v929_v13  ;;  %v1023_v39 = vrot.slane %v3841_v51, 3  ;;  %v1025_v40 = vrot.slane %v3905_v56, 3 }
  0x3a   : > { %3459 = vmatprep.subr.msk.bf16.mxu0 %vm480_vm0, %v2990_v0  ;;  %v1027_v41 = vrot.slane %v3526_v28, 3  ;;  %v1233_v19 = vshll.u32 %v3933_v29, 16  ;;  %v1226_v30 = vshrl.u32 %v2991_v17, 16  ;;  %v1230_v42 = vrot.slane %v1228_v32, 1 }
  0x3b   : > { %v938_v38 = vor.u32 %v937_v23, %v934_v27  ;;  %v2982_v44 = vcombine.low %v3849_v3, %v3853_v8  ;;  %v1024_v51 = vsel %vm1019_vm5, %v1021_v15, %v1023_v39  ;;  %v1026_v45 = vsel %vm1019_vm5, %v1023_v39, %v1025_v40 }
  0x3c   : > { %v1231_v26 = vor.u32 %v1230_v42, %v1226_v30  ;;  %v1235_v48 = vrot.slane %v1233_v19, 1  ;;  %v2983_v3 = vcombine.low %v3846_v61, %v3825_v31  ;;  %v1370_v8 = vsel %vm480_vm0, %v3000_v24, 0 }
  0x3d   : > { %v939_v43 = vsel %vm552_vm3, %v929_v13, %v938_v38  ;;  %v1241_v49 = vshll.u32 %v3531_v46, 16  ;;  %v1028_v54 = vsel %vm1019_vm5, %v1025_v40, %v1027_v41  ;;  %v2984_v55 = vcombine.low %v3829_v36, %v3878_v33  ;;  %v2961_v40 = vld [vmem:[%s4321_s3] ss:$0 sm:$0xff] }
  0x3e   : > { %v1237_v56 = vshrl.u32 %v3933_v29, 16  ;;  %v3001_v57 = vcombine.low %v1341_v52, %v3919_v6  ;;  %v1236_v58 = vsel %vm707_vm4, %v1231_v26, %v1235_v48  ;;  %v1245_v59 = vshrl.u32 %v3531_v46, 16 }
  0x3f   : > { %3290 = vmatmul.mubr.msk.bf16.vlgmr.msra.gmra.mxu1 %vm467_vm2, %v921_v22  ;;  %v1249_v20 = vshll.u32 %v3533_v53, 16  ;;  %v1243_v31 = vrot.slane %v1241_v49, 1  ;;  %v1349_v33 = vrot.slane %v3933_v29, 1  ;;  %v2985_v50 = vcombine.low %v3880_v34, %v3894_v47 }
  0x40   : > { %3308 = vmatpush3.bf16.msra.mxu1 %v1124_v21  ;;  %3284 = vmatmul.mubr.msk.bf16.gmra.mxu0 %vm467_vm2, %v743_v25  ;;  %v1239_v61 = vor.u32 %v1237_v56, %v1235_v48  ;;  %v1348_v36 = vrot.slane %v3001_v57, 1  ;;  %v1253_v1 = vshrl.u32 %v3533_v53, 16  ;;  %v1257_v4 = vshll.u32 %v3534_v35, 16 }
  0x41   : > { %3293 = vmatprep.mubr.msk.bf16.mxu1 %vm467_vm2, %v930_v18  ;;  %3299 = vmatprep.mubr.msk.bf16.mxu0 %vm467_vm2, %v1022_v16  ;;  %v1247_v60 = vor.u32 %v1245_v59, %v1243_v31  ;;  %v1251_v62 = vrot.slane %v1249_v20, 1  ;;  %v1351_v6 = vrot.slane %v3531_v46, 1  ;;  %v1353_v34 = vrot.slane %v3533_v53, 1 }
  0x42   : > { %3460 = vmatprep.subr.msk.bf16.mxu1 %vm480_vm0, %v3000_v24  ;;  %v1244_v63 = vsel %vm707_vm4, %v1239_v61, %v1243_v31  ;;  %v1350_v0 = vsel %vm1347_vm6, %v1348_v36, %v1349_v33  ;;  %v1259_v9 = vrot.slane %v1257_v4, 1  ;;  %v1355_v12 = vrot.slane %v3534_v35, 1 }
  0x43   : > { %v1252_v5 = vsel %vm707_vm4, %v1247_v60, %v1251_v62  ;;  %v1255_v7 = vor.u32 %v1253_v1, %v1251_v62  ;;  %v1352_v47 = vsel %vm1347_vm6, %v1349_v33, %v1351_v6  ;;  %v1354_v11 = vsel %vm1347_vm6, %v1351_v6, %v1353_v34 }
  0x44   : > { %v1356_v13 = vsel %vm1347_vm6, %v1353_v34, %v1355_v12  ;;  %vm1531_vm10 = vcmask 261120   ;;  %vm2038_vm11 = vcmask 130048   ;;  %vm2829_vm12 = vcmask 261248  }
  0x45   : > { %v1260_v10 = vsel %vm707_vm4, %v1255_v7, %v1259_v9 }
  0x47   : > { %3294 = vmatmul.mubr.msk.bf16.gmra.mxu1 %vm467_vm2, %v939_v43 }
  0x48   : > { %3300 = vmatmul.mubr.msk.bf16.vlgmr.msra.gmra.mxu0 %vm467_vm2, %v1024_v51  ;;  %3309 = vmatprep.mubr.msk.bf16.mxu1 %vm467_vm2, %v2982_v44 }
  0x49   : > { %3318 = vmatpush3.bf16.msra.mxu0 %v1274_v37  ;;  %3303 = vmatprep.mubr.msk.bf16.mxu0 %vm467_vm2, %v1026_v45 }
  0x4f   : > { %3310 = vmatmul.mubr.msk.bf16.vlgmr.msra.gmra.mxu1 %vm467_vm2, %v2983_v3 }
  0x50   : > { %3328 = vmatpush3.bf16.msra.mxu1 %v1370_v8  ;;  %3304 = vmatmul.mubr.msk.bf16.gmra.mxu0 %vm467_vm2, %v1028_v54 }
  0x51   : > { %3313 = vmatprep.mubr.msk.bf16.mxu1 %vm467_vm2, %v2984_v55  ;;  %3319 = vmatprep.mubr.msk.bf16.mxu0 %vm467_vm2, %v1236_v58 }
  0x57   : > { %3314 = vmatmul.mubr.msk.bf16.gmra.mxu1 %vm467_vm2, %v2985_v50 }
  0x58   : > { %3320 = vmatmul.mubr.msk.bf16.vlgmr.msra.gmra.mxu0 %vm467_vm2, %v1244_v63  ;;  %3329 = vmatprep.mubr.msk.bf16.mxu1 %vm467_vm2, %v1350_v0 }
  0x59   : > { %3323 = vmatprep.mubr.msk.bf16.mxu0 %vm467_vm2, %v1252_v5 }
  0x5f   : > { %3330 = vmatmul.mubr.msk.bf16.vlgmr.msra.gmra.mxu1 %vm467_vm2, %v1352_v47 }
  0x60   : > { %3324 = vmatmul.mubr.msk.bf16.gmra.mxu0 %vm467_vm2, %v1260_v10  ;;  %3333 = vmatprep.mubr.msk.bf16.mxu1 %vm467_vm2, %v1354_v11 }
  0x67   : > { %3334 = vmatmul.mubr.msk.bf16.gmra.mxu1 %vm467_vm2, %v1356_v13 }
  0xe8   : > { %v3261_v14 = vpop.f32.mrf.mxu0 }
  0xea   : > { %v518_v15 = vpop.f32.mrf.mxu0 }
  0xec   : > { %v3262_v17 = vpop.f32.mrf.mxu0 }
  0xee   : > { %v521_v21 = vpop.f32.mrf.mxu0 }
  0xef   : > { %v3271_v22 = vpop.f32.mrf.mxu1 }
  0xf0   : > { %v3265_v27 = vpop.f32.mrf.mxu0 }
  0xf1   : > { %v646_v23 = vpop.f32.mrf.mxu1 }
  0xf2   : > { %v532_v25 = vpop.f32.mrf.mxu0  ;;  %v647_v24 = vadd.f32 %v646_v23, %v518_v15 }
  0xf3   : > { %v3272_v28 = vpop.f32.mrf.mxu1 }
  0xf4   : > { %v3266_v29 = vpop.f32.mrf.mxu0 }
  0xf5   : > { %v649_v18 = vpop.f32.mrf.mxu1 }
  0xf6   : > { %v534_v16 = vpop.f32.mrf.mxu0  ;;  %v650_v42 = vadd.f32 %v649_v18, %v521_v21  ;;  %v3536_v18 = vld [vmem:[%s4323_s5 + $0x18] sm:$0xff]  }
  0xf7   : > { %v3275_v32 = vpop.f32.mrf.mxu1  ;;  %3337 = vmatprep.subr.bf16.mxu0 %v3536_v18 }
  0xf8   : > { %v3281_v37 = vpop.f32.mrf.mxu0  ;;  %v667_v45 = vadd.f32 %v3275_v32, %v3265_v27  ;;  %3338 = vmatpush3.bf16.msra.mxu0 %v3536_v18 }
  0xf9   : > { %v660_v38 = vpop.f32.mrf.mxu1 }
  0xfa   : > { %v793_v39 = vpop.f32.mrf.mxu0 }
  0xfb   : > { %v820_v41 = vadd.f32 %v793_v39, %v647_v24  ;;  %v3276_v19 = vpop.f32.mrf.mxu1 }
  0xfc   : > { %v3282_v30 = vpop.f32.mrf.mxu0  ;;  %v670_v55 = vadd.f32 %v3276_v19, %v3266_v29  ;;  %v3537_v19 = vld [vmem:[%s4323_s5 + $0x8] sm:$0xff]  }
  0xfd   : > { %v831_v43 = vadd.f32 %v2961_v40, %v820_v41  ;;  %v662_v44 = vpop.f32.mrf.mxu1  ;;  %v3006_v41 = vld [vmem:[%s4322_s4] ss:$0 sm:$0xff]  ;;  %3349 = vmatprep.subr.bf16.mxu1 %v3537_v19 }
  0xfe   : > { %v796_v51 = vpop.f32.mrf.mxu0  ;;  %3350 = vmatpush3.bf16.msra.mxu1 %v3537_v19 }
  0xff   : > { %v835_v46 = vmax.f32 %v831_v43, 0.0  ;;  %v821_v26 = vadd.f32 %v796_v51, %v650_v42  ;;  %v3291_v48 = vpop.f32.mrf.mxu1  ;;  %v3538_v51 = vld [vmem:[%s4323_s5 + $0x10] sm:$0xff]  }
 0x100   : > { %v3285_v52 = vpop.f32.mrf.mxu0  ;;  %3339 = vmatprep.subr.bf16.mxu0 %v3538_v51 }
 0x101   : > { %v3149_v53 = vpack.c.bf16 %v835_v46, %v835_v46  ;;  %v832_v3 = vadd.f32 %v2961_v40, %v821_v26  ;;  %v822_v8 = vadd.f32 %v3285_v52, %v667_v45  ;;  %v989_v49 = vpop.f32.mrf.mxu1  ;;  %3340 = vmatpush3.bf16.msra.mxu0 %v3538_v51 }
 0x102   : > { %v807_v54 = vpop.f32.mrf.mxu0 }
 0x103   : > { %v836_v56 = vmax.f32 %v832_v3, 0.0  ;;  %v833_v57 = vadd.f32 %v2961_v40, %v822_v8  ;;  %v3292_v58 = vpop.f32.mrf.mxu1  ;;  %849 = vst.msk [vmem:[#allocation3 + $0x8] sm:$0xf] %vm848_vm7, %v3149_v53 }
 0x104   : > { %v3286_v59 = vpop.f32.mrf.mxu0 }
 0x105   : > { %v3150_v20 = vpack.c.bf16 %v836_v56, %v836_v56  ;;  %v837_v31 = vmax.f32 %v833_v57, 0.0  ;;  %v823_v61 = vadd.f32 %v3286_v59, %v670_v55  ;;  %v992_v36 = vpop.f32.mrf.mxu1  ;;  %v3539_v56 = vld [vmem:[%s4323_s5] sm:$0xff]  }
 0x106   : > { %v809_v33 = vpop.f32.mrf.mxu0  ;;  %3351 = vmatprep.subr.bf16.mxu1 %v3539_v56 }
 0x107   : > { %v3151_v35 = vpack.c.bf16 %v837_v31, %v837_v31  ;;  %v834_v60 = vadd.f32 %v2961_v40, %v823_v61  ;;  %v3295_v62 = vpop.f32.mrf.mxu1  ;;  %850 = vst.msk [vmem:[#allocation3 + $0xc] sm:$0xf] %vm848_vm7, %v3150_v20  ;;  %3352 = vmatpush3.bf16.msra.mxu1 %v3539_v56 }
 0x108   : > { %v3301_v50 = vpop.f32.mrf.mxu0 }
 0x109   : > { %v838_v63 = vmax.f32 %v834_v60, 0.0  ;;  %v1003_v0 = vpop.f32.mrf.mxu1  ;;  %858 = vst.msk [vmem:[#allocation3 + $0x20] sm:$0xf] %vm848_vm7, %v3151_v35 }
 0x10a   : > { %v1078_v1 = vpop.f32.mrf.mxu0 }
 0x10b   : > { %v3152_v4 = vpack.c.bf16 %v838_v63, %v838_v63  ;;  %v3296_v5 = vpop.f32.mrf.mxu1  ;;  %v1079_v25 = vadd.f32 %v1078_v1, %v989_v49  ;;  %v4021_v63 = vld [vmem:[%s4323_s5 + $0x28] sm:$0xff]  }
 0x10c   : > { %v3302_v6 = vpop.f32.mrf.mxu0  ;;  %3361 = vmatprep.subr.bf16.mxu0 %v4021_v63 }
 0x10d   : > { %v1005_v7 = vpop.f32.mrf.mxu1  ;;  %859 = vst.msk [vmem:[#allocation3 + $0x24] sm:$0xf] %vm848_vm7, %v3152_v4 }
 0x10e   : > { %v1081_v9 = vpop.f32.mrf.mxu0 }
 0x10f   : > { %v3311_v34 = vpop.f32.mrf.mxu1  ;;  %v1082_v24 = vadd.f32 %v1081_v9, %v992_v36  ;;  %v4032_v9 = vld [vmem:[%s4327_s9] sm:$0xf] }
 0x110   : > { %v3305_v47 = vpop.f32.mrf.mxu0  ;;  %3461 = vmatprep.subr.msk.bf16.mxu1 %vm480_vm0, %v4032_v9  ;;  %v4040_v34 = vld [vmem:[%s4328_s10] ss:$0 sm:$0xff] }
 0x111   : > { %v1160_v10 = vpop.f32.mrf.mxu1  ;;  %v1099_v30 = vadd.f32 %v3305_v47, %v3295_v62 }
 0x112   : > { %v1092_v11 = vpop.f32.mrf.mxu0  ;;  %v1187_v16 = vadd.f32 %v1160_v10, %v1079_v25  ;;  %v1485_v10 = vld [vmem:[#allocation3 + $0x14] sm:$0xf] }
 0x113   : > { %v3312_v12 = vpop.f32.mrf.mxu1  ;;  %v1486_v11 = vld [vmem:[#allocation3 + $0x18] sm:$0xf] }
 0x114   : > { %v3306_v13 = vpop.f32.mrf.mxu0  ;;  %v3027_v12 = vcombine.low %v1485_v10, %v1486_v11 }
 0x115   : > { %v1163_v14 = vpop.f32.mrf.mxu1  ;;  %v1102_v53 = vadd.f32 %v3306_v13, %v3296_v5  ;;  %v3535_v5 = vld [vmem:[%s4327_s9] ss:$0 sps:$4 sm:$0xff]  }
 0x116   : > { %v1094_v15 = vpop.f32.mrf.mxu0  ;;  %v1188_v42 = vadd.f32 %v1163_v14, %v1082_v24  ;;  %v4049_v24 = vld [vmem:[#allocation3 + $0x18] sm:$0xff]  }
 0x117   : > { %v3315_v17 = vpop.f32.mrf.mxu1  ;;  %v1481_v15 = vld [vmem:[#allocation3 + $0x4] sm:$0x8] }
 0x118   : > { %v3321_v21 = vpop.f32.mrf.mxu0  ;;  %v1189_v45 = vadd.f32 %v3315_v17, %v1099_v30  ;;  %v1630_v17 = vshrl.u32 %v3027_v12, 16 }
 0x119   : > { %v1174_v22 = vpop.f32.mrf.mxu1  ;;  %v1633_v21 = vshll.u32 %v3027_v12, 16 }
 0x11a   : > { %v1310_v27 = vpop.f32.mrf.mxu0 }
 0x11b   : > { %v3316_v23 = vpop.f32.mrf.mxu1  ;;  %v1337_v38 = vadd.f32 %v1310_v27, %v1187_v16  ;;  %v4046_v27 = vld [vmem:[#allocation3 + $0x10] sm:$0xff]  }
 0x11c   : > { %v3322_v28 = vpop.f32.mrf.mxu0  ;;  %v1190_v57 = vadd.f32 %v3316_v23, %v1102_v53  ;;  %v1484_v23 = vld [vmem:[#allocation3 + $0x10] sm:$0xf] }
 0x11d   : > { %v1176_v29 = vpop.f32.mrf.mxu1 }
 0x11e   : > { %v1313_v32 = vpop.f32.mrf.mxu0  ;;  %v1487_v29 = vld [vmem:[#allocation3 + $0x1c] sm:$0xf] }
 0x11f   : > { %v3331_v37 = vpop.f32.mrf.mxu1  ;;  %v1338_v46 = vadd.f32 %v1313_v32, %v1188_v42  ;;  %v1632_v32 = vrot.slane %v1630_v17, 3  ;;  %v3017_v42 = vcombine.low %v1486_v11, %v1487_v29 }
 0x120   : > { %v3325_v39 = vpop.f32.mrf.mxu0  ;;  %v1635_v37 = vrot.slane %v1633_v21, 4 }
 0x121   : > { %v1406_v40 = vpop.f32.mrf.mxu1  ;;  %v1339_v3 = vadd.f32 %v3325_v39, %v1189_v45  ;;  %v3016_v39 = vcombine.low %v1484_v23, %v1485_v10  ;;  %v2044_v10 = vld [vmem:[#allocation3 + $0x4] sm:$0x8] }
 0x122   : > { %v1433_v2 = vadd.f32 %v1406_v40, %v1337_v38  ;;  %v1324_v43 = vpop.f32.mrf.mxu0 }
 0x123   : > { %v3332_v44 = vpop.f32.mrf.mxu1 }
 0x124   : > { %v3326_v26 = vpop.f32.mrf.mxu0  ;;  %v1444_v48 = vadd.f32 %v3006_v41, %v1433_v2  ;;  %v3551_v2 = vld [vmem:[%s4323_s5 + $0x20] sm:$0xff]  }
 0x125   : > { %v1409_v52 = vpop.f32.mrf.mxu1  ;;  %v1340_v61 = vadd.f32 %v3326_v26, %v1190_v57 }
 0x126   : > { %v1434_v8 = vadd.f32 %v1409_v52, %v1338_v46  ;;  %v1326_v49 = vpop.f32.mrf.mxu0  ;;  %v1448_v54 = vmax.f32 %v1444_v48, 0.0  ;;  %v1636_v52 = vor.u32 %v1635_v37, %v1632_v32  ;;  %v3555_v37 = vld [vmem:[#allocation2 + $0x8] sm:$0xff]  }
 0x127   : > { %v3335_v55 = vpop.f32.mrf.mxu1 }
 0x128   : > { %v1445_v58 = vadd.f32 %v3006_v41, %v1434_v8  ;;  %v1435_v59 = vadd.f32 %v3335_v55, %v1339_v3  ;;  %v3153_v20 = vpack.c.bf16 %v1448_v54, %v1448_v54  ;;  %v1794_v8 = vshll.u32 %v4049_v24, 16 }
 0x129   : > { %v1420_v31 = vpop.f32.mrf.mxu1 }
 0x12a   : > { %v1449_v36 = vmax.f32 %v1445_v58, 0.0  ;;  %1459 = vrot.lane.b32.xlu0 %v3153_v20, %s3652_s14  ;;  %v1446_v33 = vadd.f32 %v3006_v41, %v1435_v59  ;;  %v4063_v59 = vld [vmem:[%s4324_s6 + $0x18] sm:$0xff]  }
 0x12b   : > { %v3336_v35 = vpop.f32.mrf.mxu1 }
 0x12c   : > { %v3154_v60 = vpack.c.bf16 %v1449_v36, %v1449_v36  ;;  %v1436_v62 = vadd.f32 %v3336_v35, %v1340_v61  ;;  %v1450_v50 = vmax.f32 %v1446_v33, 0.0  ;;  %v1967_v33 = vsel %vm480_vm0, %v4032_v9, 0 }
 0x12d   : > { %v1422_v0 = vpop.f32.mrf.mxu1 }
 0x12e   : > { %v1447_v1 = vadd.f32 %v3006_v41, %v1436_v62  ;;  %1461 = vrot.lane.b32.xlu0 %v3154_v60, %s3652_s14  ;;  %v3155_v4 = vpack.c.bf16 %v1450_v50, %v1450_v50  ;;  %v1786_v41 = vshll.u32 %v4046_v27, 16  ;;  %v1790_v62 = vshrl.u32 %v4046_v27, 16 }
 0x130   : > { %v1451_v6 = vmax.f32 %v1447_v1, 0.0  ;;  %1473 = vrot.lane.b32.xlu1 %v3155_v4, %s3652_s14  ;;  %v1788_v3 = vrot.slane %v1786_v41, 1  ;;  %v4108_v41 = vld [vmem:[#allocation3 + $0x1c] sm:$0xf] }
 0x132   : > { %v3156_v7 = vpack.c.bf16 %v1451_v6, %v1451_v6  ;;  %2732 = vrot.lane.b32.xlu0 %v3535_v5, %s3653_s24 }
 0x134   : > { %1475 = vrot.lane.b32.xlu1 %v3156_v7, %s3652_s14 }
 0x138   : > { %2734 = vrot.lane.b32.xlu1 %v4040_v34, %s3653_s24 }
 0x19c   : > { %v1460_v47 = vpop.permute.xlu0 %1459 }
 0x19d   : > { %1466 = vst.msk [vmem:[#allocation3 + $0x8] sm:$0xf] %vm1465_vm9, %v1460_v47  ;;  %v4081_v47 = vld [vmem:[%s4324_s6 + $0x8] sm:$0xff]  }
 0x1a0   : > { %v1462_v13 = vpop.permute.xlu0 %1461 }
 0x1a1   : > { %1467 = vst.msk [vmem:[#allocation3 + $0xc] sm:$0xf] %vm1465_vm9, %v1462_v13  ;;  %v1796_v13 = vrot.slane %v1794_v8, 1  ;;  %v3568_v8 = vld [vmem:[%s4324_s6 + $0x28] sm:$0xff]  }
 0x1a2   : > { %v1474_v14 = vpop.permute.xlu1 %1473 }
 0x1a3   : > { %1479 = vst.msk [vmem:[#allocation3 + $0x20] sm:$0xf] %vm1465_vm9, %v1474_v14  ;;  %v1798_v14 = vshrl.u32 %v4049_v24, 16  ;;  %v4103_v24 = vld [vmem:[#allocation3 + $0x18] sm:$0xf] }
 0x1a4   : > { %v1482_v22 = vld [vmem:[#allocation3 + $0x8] sm:$0xf] }
 0x1a5   : > { %v3025_v25 = vcombine.low %v1481_v15, %v1482_v22  ;;  %v4085_v15 = vld [vmem:[#allocation3 + $0x8] sm:$0xf] }
 0x1a6   : > { %v1476_v28 = vpop.permute.xlu1 %1475 }
 0x1a7   : > { %1480 = vst.msk [vmem:[#allocation3 + $0x24] sm:$0xf] %vm1465_vm9, %v1476_v28  ;;  %v1613_v18 = vshrl.u32 %v3025_v25, 16  ;;  %v1616_v16 = vshll.u32 %v3025_v25, 16  ;;  %v4099_v28 = vcombine.low %v2044_v10, %v4085_v15 }
 0x1a8   : > { %v1483_v38 = vld [vmem:[#allocation3 + $0xc] sm:$0xf] }
 0x1a9   : > { %v3549_v40 = vld [vmem:[#allocation3 + $0x8] sm:$0xff]   ;;  %v3015_v19 = vcombine.low %v1482_v22, %v1483_v38  ;;  %v3026_v30 = vcombine.low %v1483_v38, %v1484_v23  ;;  %v1615_v43 = vrot.slane %v1613_v18, 3  ;;  %v1618_v45 = vrot.slane %v1616_v16, 4  ;;  %v4101_v18 = vld [vmem:[#allocation3 + $0x14] sm:$0xf] }
 0x1aa   : > { %v1488_v44 = vld [vmem:[#allocation3 + $0x20] sm:$0xf]  ;;  %v1781_v51 = vshll.u32 %v3549_v40, 16  ;;  %v1779_v58 = vshrl.u32 %v3549_v40, 16  ;;  %v4074_v6 = vld [vmem:[#allocation3 + $0xc] sm:$0xf]  ;;  %v1792_v23 = vor.u32 %v1790_v62, %v1788_v3  ;;  %v1800_v16 = vor.u32 %v1798_v14, %v1796_v13 }
 0x1ab   : > { %3341 = vmatprep.mubr.msk.bf16.mxu0 %vm1531_vm10, %v3015_v19  ;;  %v1621_v46 = vshrl.u32 %v3026_v30, 16  ;;  %v1624_v26 = vshll.u32 %v3026_v30, 16  ;;  %v3028_v48 = vcombine.low %v1487_v29, %v1488_v44  ;;  %v1619_v20 = vor.u32 %v1618_v45, %v1615_v43  ;;  %v3558_v29 = vld [vmem:[#allocation3 + $0x28] ss:$0 sps:$4 sm:$0x11]   ;;  %v3563_v43 = vld [vmem:[%s4324_s6 + $0x10] sm:$0xff]  }
 0x1ac   : > { %3342 = vmatmul.mubr.msk.bf16.vlgmr.msra.gmra.mxu0 %vm1531_vm10, %v3016_v39  ;;  %v1783_v53 = vrot.slane %v1781_v51, 1  ;;  %v1797_v40 = vsel %vm707_vm4, %v1792_v23, %v1796_v13  ;;  %v4110_v19 = vld [vmem:[#allocation3 + $0x20] sm:$0xf]  ;;  %v4121_v51 = vcombine.low %v4101_v18, %v4103_v24  ;;  %v4159_v14 = vld [vmem:[#allocation3 + $0xc] sm:$0xf] }
 0x1ad   : > { %3362 = vmatpush3.bf16.msra.mxu0 %v4021_v63  ;;  %v1623_v49 = vrot.slane %v1621_v46, 3  ;;  %v1626_v54 = vrot.slane %v1624_v26, 4  ;;  %3345 = vmatprep.mubr.msk.bf16.mxu0 %vm1531_vm10, %v3017_v42  ;;  %v1639_v55 = vshrl.u32 %v3028_v48, 16  ;;  %v1642_v56 = vshll.u32 %v3028_v48, 16  ;;  %v4070_v63 = vld [vmem:[#allocation3 + $0x10] sm:$0xf] }
 0x1ae   : > { %v1489_v57 = vld [vmem:[#allocation3 + $0x24] sm:$0xf]  ;;  %3363 = vmatprep.subr.bf16.mxu0 %v3551_v2  ;;  %v1784_v60 = vor.u32 %v1783_v53, %v1779_v58  ;;  %v4093_v27 = vcombine.low %v4074_v6, %v4070_v63  ;;  %v2087_v42 = vshrl.u32 %v4099_v28, 16  ;;  %v4128_v48 = vcombine.low %v4108_v41, %v4110_v19 }
 0x1af   : > { %v1627_v31 = vor.u32 %v1626_v54, %v1623_v49  ;;  %v3029_v61 = vcombine.low %v1489_v57, %v1489_v57  ;;  %v1641_v36 = vrot.slane %v1639_v55, 3  ;;  %v1644_v35 = vrot.slane %v1642_v56, 4  ;;  %v4068_v50 = vld [vmem:[#allocation3 + $0x20] sm:$0xff]  }
 0x1b0   : > { %v3018_v7 = vcombine.low %v1488_v44, %v1489_v57  ;;  %v1789_v21 = vsel %vm707_vm4, %v1784_v60, %v1788_v3  ;;  %v1802_v22 = vshll.u32 %v4068_v50, 16  ;;  %v2095_v38 = vshrl.u32 %v4093_v27, 16  ;;  %v3557_v49 = vld [vmem:[#allocation2 + $0x10] sm:$0xff]  }
 0x1b1   : > { %v1628_v0 = vsel %vm552_vm3, %v1619_v20, %v1627_v31  ;;  %v1637_v1 = vsel %vm552_vm3, %v1627_v31, %v1636_v52  ;;  %3364 = vmatpush3.bf16.msra.mxu0 %v3551_v2  ;;  %v1648_v4 = vshrl.u32 %v3029_v61, 16  ;;  %v1651_v5 = vshll.u32 %v3029_v61, 16  ;;  %v4140_v31 = vld [vmem:[#allocation3 + $0x24] sm:$0xf]  ;;  %v3564_v61 = vld [vmem:[#allocation2 + $0x18] sm:$0xff]  }
 0x1b2   : > { %3353 = vmatprep.mubr.msk.bf16.mxu1 %vm1531_vm10, %v1628_v0  ;;  %v1645_v9 = vor.u32 %v1644_v35, %v1641_v36  ;;  %3383 = vmatprep.subr.bf16.mxu0 %v4063_v59  ;;  %v1804_v32 = vrot.slane %v1802_v22, 1  ;;  %v2098_v39 = vshll.u32 %v4093_v27, 16  ;;  %v2090_v2 = vshll.u32 %v4099_v28, 16  ;;  %v2410_v22 = vld [vmem:[#allocation3 + $0x8] sm:$0xf] }
 0x1b3   : > { %3354 = vmatmul.mubr.msk.bf16.vlgmr.msra.gmra.mxu1 %vm1531_vm10, %v1637_v1  ;;  %v1650_v11 = vrot.slane %v1648_v4, 3  ;;  %v1653_v12 = vrot.slane %v1651_v5, 4  ;;  %v1810_v44 = vshll.u32 %v3558_v29, 16  ;;  %v2097_v46 = vrot.slane %v2095_v38, 3  ;;  %v3569_v5 = vld [vmem:[%s4324_s6 + $0x38] sm:$0xff]  }
 0x1b4   : > { %3374 = vmatpush3.bf16.msra.mxu1 %v1967_v33  ;;  %3346 = vmatmul.mubr.msk.bf16.gmra.mxu0 %vm1531_vm10, %v3018_v7  ;;  %v1646_v17 = vsel %vm552_vm3, %v1636_v52, %v1645_v9  ;;  %v1805_v45 = vsel %vm707_vm4, %v1800_v16, %v1804_v32  ;;  %v2100_v26 = vrot.slane %v2098_v39, 4  ;;  %v1806_v52 = vshrl.u32 %v4068_v50, 16  ;;  %v3565_v33 = vld [vmem:[%s4324_s6] sm:$0xff]  }
 0x1b5   : > { %3357 = vmatprep.mubr.msk.bf16.mxu1 %vm1531_vm10, %v1646_v17  ;;  %3365 = vmatprep.mubr.msk.bf16.mxu0 %vm1531_vm10, %v1789_v21  ;;  %v1654_v25 = vor.u32 %v1653_v12, %v1650_v11  ;;  %v2089_v53 = vrot.slane %v2087_v42, 3  ;;  %v2092_v3 = vrot.slane %v2090_v2, 4  ;;  %v1812_v55 = vrot.slane %v1810_v44, 1  ;;  %v3572_v21 = vld [vmem:[%s4324_s6 + $0x20] sm:$0xff]   ;;  %v3573_v42 = vld [vmem:[%s4324_s6 + $0x30] sm:$0xff]  }
 0x1b6   : > { %3395 = vmatprep.subr.bf16.mxu1 %v4081_v47  ;;  %v1808_v54 = vor.u32 %v1806_v52, %v1804_v32  ;;  %v2104_v56 = vshrl.u32 %v4121_v51, 16  ;;  %v2107_v57 = vshll.u32 %v4121_v51, 16  ;;  %v2101_v58 = vor.u32 %v2100_v26, %v2097_v46  ;;  %v3577_v32 = vld [vmem:[%s4324_s6 + $0x48] sm:$0xff]   ;;  %v3574_v2 = vld [vmem:[#allocation3 + $0x24] ss:$0 sps:$4 sm:$0x77]  }
 0x1b7   : > { %v1655_v30 = vsel %vm552_vm3, %v1645_v9, %v1654_v25  ;;  %v2113_v20 = vshrl.u32 %v4128_v48, 16  ;;  %v2093_v36 = vor.u32 %v2092_v3, %v2089_v53  ;;  %v3071_v50 = vcombine.low %v4140_v31, %v4140_v31  ;;  %v3566_v9 = vld [vmem:[#allocation2 + $0x20] sm:$0xff]   ;;  %v4188_v46 = vld [vmem:[#allocation3 + $0x18] sm:$0xff]   ;;  %v2733_v53 = vpop.permute.xlu0 %2732 }
 0x1b8   : > { %v1813_v35 = vsel %vm707_vm4, %v1808_v54, %v1812_v55  ;;  %v2106_v60 = vrot.slane %v2104_v56, 3  ;;  %v2109_v62 = vrot.slane %v2107_v57, 4  ;;  %v2219_v7 = vrot.slane %v4093_v27, 3  ;;  %v3581_v54 = vld [vmem:[#allocation3 + $0x20] sm:$0xff]   ;;  %v3583_v57 = vld [vmem:[%s4324_s6 + $0x40] sm:$0xff]  }
 0x1b9   : > { %v2102_v0 = vsel %vm552_vm3, %v2093_v36, %v2101_v58  ;;  %v2115_v1 = vrot.slane %v2113_v20, 3  ;;  %v2125_v11 = vshll.u32 %v3071_v50, 16  ;;  %v2218_v12 = vrot.slane %v4099_v28, 3 }
 0x1ba   : > { %v2110_v10 = vor.u32 %v2109_v62, %v2106_v60  ;;  %v3103_v29 = vcombine.low %v2410_v22, %v4159_v14  ;;  %v2221_v16 = vrot.slane %v4121_v51, 3  ;;  %v2223_v39 = vrot.slane %v4128_v48, 3  ;;  %v3584_v62 = vld [vmem:[#allocation3 + $0x28] ss:$0 sps:$4 sm:$0x11]  }
 0x1bb   : > { %3358 = vmatmul.mubr.msk.bf16.gmra.mxu1 %vm1531_vm10, %v1655_v30  ;;  %v2220_v17 = vsel %vm1019_vm5, %v2218_v12, %v2219_v7  ;;  %v2127_v25 = vrot.slane %v2125_v11, 4  ;;  %v3089_v44 = vcombine.low %v4085_v15, %v4074_v6  ;;  %v2225_v52 = vrot.slane %v3574_v2, 3 }
 0x1bc   : > { %3366 = vmatmul.mubr.msk.bf16.vlgmr.msra.gmra.mxu0 %vm1531_vm10, %v1797_v40  ;;  %3375 = vmatprep.mubr.msk.bf16.mxu1 %vm467_vm2, %v3555_v37  ;;  %v2111_v27 = vsel %vm552_vm3, %v2101_v58, %v2110_v10  ;;  %v2450_v38 = vshll.u32 %v3103_v29, 16  ;;  %v4177_v40 = vld [vmem:[#allocation3 + $0x10] sm:$0xff]   ;;  %v2222_v30 = vsel %vm1019_vm5, %v2219_v7, %v2221_v16  ;;  %v2224_v26 = vsel %vm1019_vm5, %v2221_v16, %v2223_v39 }
 0x1bd   : > { %3369 = vmatprep.mubr.msk.bf16.mxu0 %vm1531_vm10, %v1805_v45  ;;  %3384 = vmatpush3.bf16.msra.mxu0 %v4063_v59  ;;  %v2116_v59 = vshll.u32 %v4128_v48, 16  ;;  %v2455_v45 = vshll.u32 %v4177_v40, 16  ;;  %v2448_v48 = vshrl.u32 %v3103_v29, 16  ;;  %v2463_v15 = vshll.u32 %v4188_v46, 16 }
 0x1be   : > { %3385 = vmatprep.subr.bf16.mxu0 %v3563_v43  ;;  %v2452_v51 = vrot.slane %v2450_v38, 1  ;;  %v3091_v55 = vcombine.low %v4103_v24, %v4108_v41  ;;  %v2226_v56 = vsel %vm1019_vm5, %v2223_v39, %v2225_v52  ;;  %v2471_v24 = vshll.u32 %v3581_v54, 16 }
 0x1bf   : > { %v2118_v4 = vrot.slane %v2116_v59, 4  ;;  %v2457_v6 = vrot.slane %v2455_v45, 1  ;;  %v2467_v59 = vshrl.u32 %v4188_v46, 16  ;;  %v2475_v7 = vshrl.u32 %v3581_v54, 16 }
 0x1c0   : > { %v2453_v3 = vor.u32 %v2452_v51, %v2448_v48 }
 0x1c1   : > { %3386 = vmatpush3.bf16.msra.mxu0 %v3563_v43  ;;  %v2119_v13 = vor.u32 %v2118_v4, %v2115_v1  ;;  %v2479_v1 = vshll.u32 %v3584_v62, 16 }
 0x1c2   : > { %3407 = vmatprep.subr.bf16.mxu0 %v3568_v8  ;;  %v2458_v58 = vsel %vm707_vm4, %v2453_v3, %v2457_v6 }
 0x1c3   : > { %3376 = vmatmul.mubr.msk.bf16.vlgmr.msra.gmra.mxu1 %vm467_vm2, %v3557_v49  ;;  %v2120_v28 = vsel %vm552_vm3, %v2110_v10, %v2119_v13  ;;  %v2459_v49 = vshrl.u32 %v4177_v40, 16  ;;  %v2481_v10 = vrot.slane %v2479_v1, 1 }
 0x1c4   : > { %3396 = vmatpush3.bf16.msra.mxu1 %v4081_v47  ;;  %3370 = vmatmul.mubr.msk.bf16.gmra.mxu0 %vm1531_vm10, %v1813_v35  ;;  %v2122_v47 = vshrl.u32 %v3071_v50, 16  ;;  %v2473_v35 = vrot.slane %v2471_v24, 1  ;;  %v2750_v50 = vsel %vm480_vm0, %v2733_v53, 0 }
 0x1c5   : > { %3387 = vmatprep.mubr.msk.bf16.mxu0 %vm1531_vm10, %v2102_v0  ;;  %3379 = vmatprep.mubr.msk.bf16.mxu1 %vm467_vm2, %v3564_v61  ;;  %v2461_v20 = vor.u32 %v2459_v49, %v2457_v6  ;;  %v2582_v61 = vrot.slane %v4177_v40, 1  ;;  %v3092_v0 = vcombine.low %v4110_v19, %v4140_v31  ;;  %v2586_v19 = vrot.slane %v3581_v54, 1  ;;  %v3585_v31 = vld [vmem:[#allocation2 + $0x8] sm:$0xff]  }
 0x1c6   : > { %3397 = vmatprep.subr.bf16.mxu1 %v3565_v33  ;;  %v2124_v23 = vrot.slane %v2122_v47, 3  ;;  %v2584_v47 = vrot.slane %v4188_v46, 1 }
 0x1c8   : > { %3398 = vmatpush3.bf16.msra.mxu1 %v3565_v33  ;;  %v2128_v37 = vor.u32 %v2127_v25, %v2124_v23  ;;  %v2585_v11 = vsel %vm1347_vm6, %v2582_v61, %v2584_v47 }
 0x1c9   : > { %3419 = vmatprep.subr.bf16.mxu1 %v3569_v5 }
 0x1ca   : > { %v2129_v43 = vsel %vm552_vm3, %v2119_v13, %v2128_v37  ;;  %v2587_v13 = vsel %vm1347_vm6, %v2584_v47, %v2586_v19 }
 0x1cb   : > { %3380 = vmatmul.mubr.msk.bf16.gmra.mxu1 %vm467_vm2, %v3566_v9  ;;  %v2477_v9 = vor.u32 %v2475_v7, %v2473_v35 }
 0x1cc   : > { %3388 = vmatmul.mubr.msk.bf16.vlgmr.msra.gmra.mxu0 %vm1531_vm10, %v2111_v27  ;;  %3399 = vmatprep.mubr.msk.bf16.mxu1 %vm1531_vm10, %v2220_v17  ;;  %v2588_v17 = vrot.slane %v3584_v62, 1  ;;  %v3588_v27 = vld [vmem:[#allocation2 + $0x20] sm:$0xff]  }
 0x1cd   : > { %3391 = vmatprep.mubr.msk.bf16.mxu0 %vm1531_vm10, %v2120_v28  ;;  %3408 = vmatpush3.bf16.msra.mxu0 %v3568_v8  ;;  %v3090_v8 = vcombine.low %v4070_v63, %v4101_v18  ;;  %v2465_v63 = vrot.slane %v2463_v15, 1  ;;  %v2572_v18 = vld [vmem:[#allocation3 + $0x8] sm:$0xe]  ;;  %v2482_v12 = vsel %vm707_vm4, %v2477_v9, %v2481_v10 }
 0x1ce   : > { %3409 = vmatprep.subr.bf16.mxu0 %v3572_v21  ;;  %v3118_v41 = vcombine.low %v2572_v18, %v4159_v14  ;;  %v3586_v14 = vld [vmem:[#allocation2 + $0x10] sm:$0xff]   ;;  %v2589_v22 = vsel %vm1347_vm6, %v2586_v19, %v2588_v17 }
 0x1cf   : > { %v2466_v36 = vsel %vm707_vm4, %v2461_v20, %v2465_v63  ;;  %v2469_v33 = vor.u32 %v2467_v59, %v2465_v63 }
 0x1d0   : > { %v2581_v60 = vrot.slane %v3118_v41, 1 }
 0x1d1   : > { %3410 = vmatpush3.bf16.msra.mxu0 %v3572_v21  ;;  %v2474_v4 = vsel %vm707_vm4, %v2469_v33, %v2473_v35  ;;  %v3587_v21 = vld [vmem:[#allocation2 + $0x18] sm:$0xff]  }
 0x1d2   : > { %3431 = vmatprep.subr.bf16.mxu0 %v3577_v32 }
 0x1d3   : > { %3400 = vmatmul.mubr.msk.bf16.vlgmr.msra.gmra.mxu1 %vm1531_vm10, %v2222_v30 }
 0x1d4   : > { %3420 = vmatpush3.bf16.msra.mxu1 %v3569_v5  ;;  %3392 = vmatmul.mubr.msk.bf16.gmra.mxu0 %vm1531_vm10, %v2129_v43  ;;  %v2583_v5 = vsel %vm1347_vm6, %v2581_v60, %v2582_v61 }
 0x1d5   : > { %3403 = vmatprep.mubr.msk.bf16.mxu1 %vm1531_vm10, %v2224_v26  ;;  %3411 = vmatprep.mubr.msk.bf16.mxu0 %vm1531_vm10, %v3089_v44  ;;  %v3051_v26 = vld [vmem:[%s4325_s7] ss:$0 sm:$0xff] }
 0x1d6   : > { %3421 = vmatprep.subr.bf16.mxu1 %v3573_v42 }
 0x1d8   : > { %3422 = vmatpush3.bf16.msra.mxu1 %v3573_v42 }
 0x1d9   : > { %3462 = vmatprep.subr.msk.bf16.mxu1 %vm480_vm0, %v2733_v53 }
 0x1db   : > { %3404 = vmatmul.mubr.msk.bf16.gmra.mxu1 %vm1531_vm10, %v2226_v56 }
 0x1dc   : > { %3412 = vmatmul.mubr.msk.bf16.vlgmr.msra.gmra.mxu0 %vm1531_vm10, %v3090_v8  ;;  %3423 = vmatprep.mubr.msk.bf16.mxu1 %vm1531_vm10, %v2458_v58 }
 0x1dd   : > { %3432 = vmatpush3.bf16.msra.mxu0 %v3577_v32  ;;  %3415 = vmatprep.mubr.msk.bf16.mxu0 %vm1531_vm10, %v3091_v55 }
 0x1de   : > { %3433 = vmatprep.subr.bf16.mxu0 %v3583_v57 }
 0x1e1   : > { %3434 = vmatpush3.bf16.msra.mxu0 %v3583_v57 }
 0x1e3   : > { %3424 = vmatmul.mubr.msk.bf16.vlgmr.msra.gmra.mxu1 %vm1531_vm10, %v2466_v36 }
 0x1e4   : > { %3444 = vmatpush3.bf16.msra.mxu1 %v2750_v50  ;;  %3416 = vmatmul.mubr.msk.bf16.gmra.mxu0 %vm1531_vm10, %v3092_v0 }
 0x1e5   : > { %3427 = vmatprep.mubr.msk.bf16.mxu1 %vm1531_vm10, %v2474_v4  ;;  %3435 = vmatprep.mubr.msk.bf16.mxu0 %vm1531_vm10, %v2583_v5 }
 0x1eb   : > { %3428 = vmatmul.mubr.msk.bf16.gmra.mxu1 %vm1531_vm10, %v2482_v12 }
 0x1ec   : > { %3436 = vmatmul.mubr.msk.bf16.vlgmr.msra.gmra.mxu0 %vm1531_vm10, %v2585_v11  ;;  %3445 = vmatprep.mubr.msk.bf16.mxu1 %vm467_vm2, %v3585_v31 }
 0x1ed   : > { %3439 = vmatprep.mubr.msk.bf16.mxu0 %vm1531_vm10, %v2587_v13 }
 0x1f3   : > { %3446 = vmatmul.mubr.msk.bf16.vlgmr.msra.gmra.mxu1 %vm467_vm2, %v3586_v14 }
 0x1f4   : > { %3440 = vmatmul.mubr.msk.bf16.gmra.mxu0 %vm1531_vm10, %v2589_v22  ;;  %3449 = vmatprep.mubr.msk.bf16.mxu1 %vm467_vm2, %v3587_v21 }
 0x1fb   : > { %3450 = vmatmul.mubr.msk.bf16.gmra.mxu1 %vm467_vm2, %v3588_v27 }
 0x26c   : > { %v3343_v23 = vpop.f32.mrf.mxu0 }
 0x26e   : > { %v1578_v25 = vpop.f32.mrf.mxu0 }
 0x270   : > { %v3344_v29 = vpop.f32.mrf.mxu0 }
 0x272   : > { %v1581_v28 = vpop.f32.mrf.mxu0 }
 0x273   : > { %v3355_v16 = vpop.f32.mrf.mxu1 }
 0x274   : > { %v3347_v32 = vpop.f32.mrf.mxu0 }
 0x275   : > { %v1714_v37 = vpop.f32.mrf.mxu1 }
 0x276   : > { %v1592_v38 = vpop.f32.mrf.mxu0  ;;  %v1715_v44 = vadd.f32 %v1714_v37, %v1578_v25 }
 0x277   : > { %v3356_v39 = vpop.f32.mrf.mxu1 }
 0x278   : > { %v3348_v40 = vpop.f32.mrf.mxu0 }
 0x279   : > { %v1717_v30 = vpop.f32.mrf.mxu1 }
 0x27a   : > { %v1594_v42 = vpop.f32.mrf.mxu0  ;;  %v1718_v53 = vadd.f32 %v1717_v30, %v1581_v28 }
 0x27b   : > { %v3359_v2 = vpop.f32.mrf.mxu1 }
 0x27c   : > { %v3367_v43 = vpop.f32.mrf.mxu0  ;;  %v1735_v8 = vadd.f32 %v3359_v2, %v3347_v32 }
 0x27d   : > { %v1728_v51 = vpop.f32.mrf.mxu1 }
 0x27e   : > { %v1872_v45 = vpop.f32.mrf.mxu0 }
 0x27f   : > { %v1899_v46 = vadd.f32 %v1872_v45, %v1715_v44  ;;  %v3360_v48 = vpop.f32.mrf.mxu1 }
 0x280   : > { %v3368_v52 = vpop.f32.mrf.mxu0  ;;  %v1738_v59 = vadd.f32 %v3360_v48, %v3348_v40 }
 0x281   : > { %v1730_v3 = vpop.f32.mrf.mxu1  ;;  %v1910_v6 = vadd.f32 %v3051_v26, %v1899_v46 }
 0x282   : > { %v1875_v15 = vpop.f32.mrf.mxu0 }
 0x283   : > { %v1900_v49 = vadd.f32 %v1875_v15, %v1718_v53  ;;  %v3377_v54 = vpop.f32.mrf.mxu1  ;;  %v1914_v58 = vmax.f32 %v1910_v6, 0.0 }
 0x284   : > { %v3371_v55 = vpop.f32.mrf.mxu0 }
 0x285   : > { %v1901_v56 = vadd.f32 %v3371_v55, %v1735_v8  ;;  %v2003_v57 = vpop.f32.mrf.mxu1  ;;  %v1911_v63 = vadd.f32 %v3051_v26, %v1900_v49 }
 0x286   : > { %v2004_v18 = vadd.f32 %v4040_v34, %v2003_v57  ;;  %v1886_v20 = vpop.f32.mrf.mxu0 }
 0x287   : > { %v3378_v24 = vpop.f32.mrf.mxu1  ;;  %v1912_v41 = vadd.f32 %v3051_v26, %v1901_v56  ;;  %v1915_v60 = vmax.f32 %v1911_v63, 0.0 }
 0x288   : > { %v2030_v61 = vadd.f32 %v2004_v18, %v1914_v58  ;;  %v3372_v36 = vpop.f32.mrf.mxu0  ;;  %v3125_v24 = vld [vmem:[%s4326_s8] ss:$0 sm:$0xff] }
 0x289   : > { %v1902_v33 = vadd.f32 %v3372_v36, %v1738_v59  ;;  %v2006_v35 = vpop.f32.mrf.mxu1  ;;  %v1916_v4 = vmax.f32 %v1912_v41, 0.0 }
 0x28a   : > { %v2034_v62 = vmax.f32 %v2030_v61, 0.0  ;;  %v2007_v50 = vadd.f32 %v4040_v34, %v2006_v35  ;;  %v1888_v0 = vpop.f32.mrf.mxu0 }
 0x28b   : > { %v3381_v1 = vpop.f32.mrf.mxu1  ;;  %v1913_v5 = vadd.f32 %v3051_v26, %v1902_v33 }
 0x28c   : > { %v2031_v7 = vadd.f32 %v2007_v50, %v1915_v60  ;;  %v2024_v9 = vadd.f32 %v3381_v1, %v4040_v34  ;;  %v3389_v10 = vpop.f32.mrf.mxu0  ;;  %2039 = vst.msk [vmem:[%s4245_s13] sm:$0xff] %vm2038_vm11, %v2034_v62 }
 0x28d   : > { %v2017_v47 = vpop.f32.mrf.mxu1  ;;  %v1917_v13 = vmax.f32 %v1913_v5, 0.0  ;;  %v2735_v5 = vpop.permute.xlu1 %2734 }
 0x28e   : > { %v2035_v19 = vmax.f32 %v2031_v7, 0.0  ;;  %v2032_v31 = vadd.f32 %v2024_v9, %v1916_v4  ;;  %v2188_v11 = vpop.f32.mrf.mxu0 }
 0x28f   : > { %v3382_v12 = vpop.f32.mrf.mxu1 }
 0x290   : > { %v2036_v14 = vmax.f32 %v2032_v31, 0.0  ;;  %v2027_v17 = vadd.f32 %v3382_v12, %v4040_v34  ;;  %v3390_v21 = vpop.f32.mrf.mxu0  ;;  %2040 = vst.msk [vmem:[%s4245_s13 + $0x8] sm:$0xff] %vm2038_vm11, %v2035_v19 }
 0x291   : > { %v2019_v22 = vpop.f32.mrf.mxu1 }
 0x292   : > { %v2033_v27 = vadd.f32 %v2027_v17, %v1917_v13  ;;  %v2191_v23 = vpop.f32.mrf.mxu0  ;;  %3061 = vst.msk [vmem:[%s4245_s13 + $0x10] sm:$0xff] %vm2038_vm11, %v2036_v14 }
 0x293   : > { %v3401_v25 = vpop.f32.mrf.mxu1 }
 0x294   : > { %v2037_v29 = vmax.f32 %v2033_v27, 0.0  ;;  %v3393_v28 = vpop.f32.mrf.mxu0 }
 0x295   : > { %v2285_v16 = vpop.f32.mrf.mxu1 }
 0x296   : > { %v2202_v32 = vpop.f32.mrf.mxu0  ;;  %3062 = vst.msk [vmem:[%s4245_s13 + $0x18] sm:$0xff] %vm2038_vm11, %v2037_v29  ;;  %v2286_v6 = vadd.f32 %v2285_v16, %v2188_v11 }
 0x297   : > { %v3402_v37 = vpop.f32.mrf.mxu1 }
 0x298   : > { %v3394_v38 = vpop.f32.mrf.mxu0 }
 0x299   : > { %v2288_v39 = vpop.f32.mrf.mxu1 }
 0x29a   : > { %v2204_v40 = vpop.f32.mrf.mxu0  ;;  %v2289_v56 = vadd.f32 %v2288_v39, %v2191_v23 }
 0x29b   : > { %v3405_v34 = vpop.f32.mrf.mxu1 }
 0x29c   : > { %v3413_v30 = vpop.f32.mrf.mxu0  ;;  %v2306_v18 = vadd.f32 %v3405_v34, %v3393_v28 }
 0x29d   : > { %v2299_v42 = vpop.f32.mrf.mxu1 }
 0x29e   : > { %v2379_v2 = vpop.f32.mrf.mxu0 }
 0x29f   : > { %v3406_v43 = vpop.f32.mrf.mxu1  ;;  %v2406_v49 = vadd.f32 %v2379_v2, %v2286_v6 }
 0x2a0   : > { %v3414_v44 = vpop.f32.mrf.mxu0  ;;  %v2309_v50 = vadd.f32 %v3406_v43, %v3394_v38 }
 0x2a1   : > { %v2301_v51 = vpop.f32.mrf.mxu1 }
 0x2a2   : > { %v2382_v45 = vpop.f32.mrf.mxu0 }
 0x2a3   : > { %v3425_v46 = vpop.f32.mrf.mxu1  ;;  %v2407_v20 = vadd.f32 %v2382_v45, %v2289_v56 }
 0x2a4   : > { %v3417_v26 = vpop.f32.mrf.mxu0 }
 0x2a5   : > { %v2541_v48 = vpop.f32.mrf.mxu1  ;;  %v2408_v36 = vadd.f32 %v3417_v26, %v2306_v18 }
 0x2a6   : > { %v2393_v52 = vpop.f32.mrf.mxu0  ;;  %v2568_v57 = vadd.f32 %v2541_v48, %v2406_v49 }
 0x2a7   : > { %v3426_v53 = vpop.f32.mrf.mxu1 }
 0x2a8   : > { %v3418_v3 = vpop.f32.mrf.mxu0 }
 0x2a9   : > { %v2544_v15 = vpop.f32.mrf.mxu1  ;;  %v2409_v9 = vadd.f32 %v3418_v3, %v2309_v50 }
 0x2aa   : > { %v2395_v8 = vpop.f32.mrf.mxu0  ;;  %v2569_v33 = vadd.f32 %v2544_v15, %v2407_v20 }
 0x2ab   : > { %v3429_v54 = vpop.f32.mrf.mxu1 }
 0x2ac   : > { %v3437_v55 = vpop.f32.mrf.mxu0  ;;  %v2570_v0 = vadd.f32 %v3429_v54, %v2408_v36 }
 0x2ad   : > { %v2555_v58 = vpop.f32.mrf.mxu1 }
 0x2ae   : > { %v2648_v63 = vpop.f32.mrf.mxu0 }
 0x2af   : > { %v2675_v59 = vadd.f32 %v2648_v63, %v2568_v57  ;;  %v3430_v41 = vpop.f32.mrf.mxu1 }
 0x2b0   : > { %v3438_v61 = vpop.f32.mrf.mxu0  ;;  %v2571_v13 = vadd.f32 %v3430_v41, %v2409_v9 }
 0x2b1   : > { %v2557_v35 = vpop.f32.mrf.mxu1  ;;  %v2686_v60 = vadd.f32 %v3125_v24, %v2675_v59 }
 0x2b2   : > { %v2651_v62 = vpop.f32.mrf.mxu0 }
 0x2b3   : > { %v2676_v1 = vadd.f32 %v2651_v62, %v2569_v33  ;;  %v3447_v4 = vpop.f32.mrf.mxu1  ;;  %v2690_v19 = vmax.f32 %v2686_v60, 0.0 }
 0x2b4   : > { %v3441_v7 = vpop.f32.mrf.mxu0 }
 0x2b5   : > { %v2677_v10 = vadd.f32 %v3441_v7, %v2570_v0  ;;  %v2786_v47 = vpop.f32.mrf.mxu1  ;;  %v2687_v31 = vadd.f32 %v3125_v24, %v2676_v1 }
 0x2b6   : > { %v2787_v11 = vadd.f32 %v2786_v47, %v2735_v5  ;;  %v2662_v12 = vpop.f32.mrf.mxu0 }
 0x2b7   : > { %v3448_v14 = vpop.f32.mrf.mxu1  ;;  %v2688_v17 = vadd.f32 %v3125_v24, %v2677_v10  ;;  %v2691_v25 = vmax.f32 %v2687_v31, 0.0 }
 0x2b8   : > { %v2813_v21 = vadd.f32 %v2787_v11, %v2690_v19  ;;  %v3442_v22 = vpop.f32.mrf.mxu0 }
 0x2b9   : > { %v2678_v27 = vadd.f32 %v3442_v22, %v2571_v13  ;;  %v2789_v23 = vpop.f32.mrf.mxu1  ;;  %v2692_v37 = vmax.f32 %v2688_v17, 0.0 }
 0x2ba   : > { %v2817_v29 = vmax.f32 %v2813_v21, 0.0  ;;  %v2790_v28 = vadd.f32 %v2789_v23, %v2735_v5  ;;  %v2664_v16 = vpop.f32.mrf.mxu0 }
 0x2bb   : > { %v3451_v32 = vpop.f32.mrf.mxu1  ;;  %v2689_v38 = vadd.f32 %v3125_v24, %v2678_v27 }
 0x2bc   : > { %v2814_v39 = vadd.f32 %v2790_v28, %v2691_v25  ;;  %v2807_v40 = vadd.f32 %v3451_v32, %v2735_v5  ;;  %2823 = vrot.lane.b32.xlu0 %v2817_v29, %s3652_s14 }
 0x2bd   : > { %v2800_v34 = vpop.f32.mrf.mxu1  ;;  %v2693_v43 = vmax.f32 %v2689_v38, 0.0 }
 0x2be   : > { %v2818_v30 = vmax.f32 %v2814_v39, 0.0  ;;  %v2815_v42 = vadd.f32 %v2807_v40, %v2692_v37 }
 0x2bf   : > { %v3452_v2 = vpop.f32.mrf.mxu1 }
 0x2c0   : > { %v2819_v44 = vmax.f32 %v2815_v42, 0.0  ;;  %v2810_v51 = vadd.f32 %v3452_v2, %v2735_v5  ;;  %2825 = vrot.lane.b32.xlu1 %v2818_v30, %s3652_s14 }
 0x2c1   : > { %v2802_v45 = vpop.f32.mrf.mxu1 }
 0x2c2   : > { %v2816_v46 = vadd.f32 %v2810_v51, %v2693_v43  ;;  %2834 = vrot.lane.b32.xlu0 %v2819_v44, %s3652_s14 }
 0x2c4   : > { %v2820_v26 = vmax.f32 %v2816_v46, 0.0 }
 0x2c6   : > { %2836 = vrot.lane.b32.xlu1 %v2820_v26, %s3652_s14  ;;  %s4278_s14 = scalar_lea.sflag [#allocation5], %s380_s29 }
 0x32e   : > { %v2824_v48 = vpop.permute.xlu0 %2823 }
 0x32f   : > { %2830 = vst.msk [vmem:[%s4245_s13] sm:$0xff] %vm2829_vm12, %v2824_v48 }
 0x332   : > { %v2826_v52 = vpop.permute.xlu1 %2825 }
 0x333   : > { %2831 = vst.msk [vmem:[%s4245_s13 + $0x8] sm:$0xff] %vm2829_vm12, %v2826_v52 }
 0x334   : > { %v2835_v53 = vpop.permute.xlu0 %2834 }
 0x335   : > { %3136 = vst.msk [vmem:[%s4245_s13 + $0x10] sm:$0xff] %vm2829_vm12, %v2835_v53 }
 0x338   : > { %v2837_v3 = vpop.permute.xlu1 %2836 }
 0x339   : > { %3137 = vst.msk [vmem:[%s4245_s13 + $0x18] sm:$0xff] %vm2829_vm12, %v2837_v3 }
 0x33a   : > { %3602 = shalt.err (!%p3599_p3)
}
 0x33b   : > { %s3603_s29 = scalar_lea.hbm %s4271_s30, 512  ;;  %s3607_s25 = scalar_lea.hbm %s4329_s11, 1024 }
 0x33c   : > { %p3604_p4 = scmp.ne.s32.totalorder %s4271_s30, %s3603_s29  ;;  %p3608_p9 = scmp.lt.s32.totalorder %s4271_s30, %s4329_s11 }
 0x33d   : > { %p3609_p10 = scmp.lt.s32.totalorder %s3607_s25, %s3603_s29 }
 0x33e   : > { %p3605_p7 = pnand %p3604_p4, %p3755_p5 }
 0x33f   : > { %p3610_p11 = por %p3609_p10, %p3608_p9 }
 0x340   : > { %p3606_p8 = pneg %p3605_p7 }
 0x342   : > { %p3611_p12 = pnand %p3610_p11, %p3606_p8 }
 0x344   : > { %3614 = shalt.err (!%p3611_p12)
}
 0x345   : > { %s3655_s15 = smov 128   ;;  %s3656_s12 = smov 8  }
 0x346   : > { %3463 = dma.vmem_to_hbm [thread:$0]  (%p3755_p5), %s4273_s22, 512, %s4271_s30, %s4278_s14, %s3655_s15, %s3655_s15, %s3656_s12  }
 0x347 PF: > { %p3469_p13 = scmp.ge.s32.totalorder %s3649_s20, 2  ;;  %s2872_s16 = sand.u32 1, %s3637_s17  }
 0x348   : > { %s2873_s0 = scalar_lea.sflag [#allocation5], %s2872_s16 }
 0x349   : > { %p3466_p0 = pnand %p3469_p13, %p3759_p6 }
 0x34b   : > { %p3467_p1 = pneg %p3466_p0 }
 0x34d   : > { %3632 = dma.done.wait (%p3467_p1), %s2873_s0, 512  }
 0x34e   : > { %3634 = vsyncadd (%p3467_p1), %s2873_s0, 4294966784  ;;  %p21_p2 = scmp.ge.s32.totalorder %s3742_s23, 4   ;;  %s4334_s17 = smov %s3641_s18 }
 0x34f   : > { %s4335_s18 = smov %s3645_s19  ;;  %s4336_s19 = smov %s3753_s26 }
 0x350   : > { %s4337_s20 = smov %s3742_s23  ;;  %23 = sbr.rel (!%p21_p2) target bundleno = 5 (0x5), region = 113 }
 0x355   :  { %2878 = vsyncpa [#allocation5], 1 }
 0x356   :  { %2880 = vsyncpa [#allocation5 + $0x1], 1 }

</bundles_post_ra>
